<compile_context>
chip_gen: v7x
topology: tpu7x:2x2x1
jax: 0.10.0
libtpu: 0.0.40
codegen_flags: <defaults>
</compile_context>

<pallas_src>
import functools

import jax
import jax.numpy as jnp
from jax.experimental import pallas as pl
from jax.experimental.pallas import tpu as pltpu

# ----------------------------- small config ---------------------------------
BATCH = 2
IN_CH = 3
IMG = 64                         # cfg['image_size'][0]
PATCH = 16
FEAT = IMG // 16                 # feature_size = 4
SEQ = FEAT * FEAT                # 16 tokens
PATCH_DIM = PATCH * PATCH * IN_CH  # 768
BACKBONE_OUT = 16                # GELAN.out_channels (synthetic)
EMBED = 32                       # embedded_dim
HEADS = 2                        # num_heads
LAYERS = 2                       # num_layers
JOINTS = 8                       # num_joints
HEAT_PAD = 128                   # lane-dense padded decoder output width
MLP_HIDDEN = 2 * EMBED           # transformer feed-forward width
LN_EPS = 1e-5
N_LAYER_PARAMS = 16              # weights/biases per transformer layer


# ----------------------------- Pallas kernel ---------------------------------
def _layer_norm(h, gamma, beta):
    mu = jnp.mean(h, axis=-1, keepdims=True)
    var = jnp.mean((h - mu) ** 2, axis=-1, keepdims=True)
    return (h - mu) * jax.lax.rsqrt(var + LN_EPS) * gamma + beta


def mononet_fused_kernel(*refs, nlayers, nheads, batch, seq):
    """Entire MonoNet forward on one (B*S, C) token slab, fully VMEM-resident."""
    patches_ref, w_bb_ref, b_bb_ref, w_proj_ref, pos_ref = refs[:5]
    layer_refs = refs[5:5 + N_LAYER_PARAMS * nlayers]
    base = 5 + N_LAYER_PARAMS * nlayers
    w_d1_ref, b_d1_ref, w_d2_ref, b_d2_ref = refs[base:base + 4]
    heat_ref, attn_ref = refs[base + 4:base + 6]

    # ---- backbone (stride-16 patch embedding) + ReLU -------------------------
    x = jnp.dot(patches_ref[...], w_bb_ref[...],
                preferred_element_type=jnp.float32) + b_bb_ref[...]
    x = jnp.maximum(x, 0.0)

    # ---- proj: 1x1 conv, bias=False ------------------------------------------
    x = jnp.dot(x, w_proj_ref[...], preferred_element_type=jnp.float32)

    # ---- learnable positional embedding (pre-tiled to (B*S, D)) ---------------
    x = x + pos_ref[...]

    D = x.shape[-1]
    dh = D // nheads
    scale = 1.0 / (dh ** 0.5)

    # ---- transformer encoder layers (post-LN, ReLU FFN; dropout = inference no-op)
    for layer in range(nlayers):
        (wq, bq, wk, bk, wv, bv, wo, bo,
         g1, be1, w1, bm1, w2, bm2, g2, be2) = layer_refs[
            layer * N_LAYER_PARAMS:(layer + 1) * N_LAYER_PARAMS]

        # QKV on the full batch-folded slab (one matmul each).
        q = jnp.dot(x, wq[...], preferred_element_type=jnp.float32) + bq[...]
        k = jnp.dot(x, wk[...], preferred_element_type=jnp.float32) + bk[...]
        v = jnp.dot(x, wv[...], preferred_element_type=jnp.float32) + bv[...]

        last = layer == nlayers - 1
        ctx_rows = []
        for b in range(batch):                   # static unroll: B*H tiny matmuls
            head_parts = []
            for h in range(nheads):
                r0, c0 = b * seq, h * dh
                qh = q[r0:r0 + seq, c0:c0 + dh]
                kh = k[r0:r0 + seq, c0:c0 + dh]
                vh = v[r0:r0 + seq, c0:c0 + dh]
                s = jnp.dot(qh, kh.T, preferred_element_type=jnp.float32) * scale
                s = s - jnp.max(s, axis=-1, keepdims=True)
                e = jnp.exp(s)
                p = e * pl.reciprocal(jnp.sum(e, axis=-1, keepdims=True),
                                      approx=True)
                if last:                         # only final-layer attention -> HBM
                    attn_ref[b, h] = p.astype(attn_ref.dtype)
                head_parts.append(
                    jnp.dot(p, vh, preferred_element_type=jnp.float32))
            ctx_rows.append(jnp.concatenate(head_parts, axis=-1))
        ctx = jnp.concatenate(ctx_rows, axis=0)  # (B*S, D)

        attn_out = jnp.dot(ctx, wo[...],
                           preferred_element_type=jnp.float32) + bo[...]
        h1 = _layer_norm(x + attn_out, g1[...], be1[...])

        m = jnp.dot(h1, w1[...], preferred_element_type=jnp.float32) + bm1[...]
        m = jnp.maximum(m, 0.0)
        m = jnp.dot(m, w2[...], preferred_element_type=jnp.float32) + bm2[...]
        x = _layer_norm(h1 + m, g2[...], be2[...])

    # ---- keypoint decoder: two 1x1 convs; second is padded to 128 lanes -------
    hdec = jnp.dot(x, w_d1_ref[...],
                   preferred_element_type=jnp.float32) + b_d1_ref[...]
    hdec = jnp.maximum(hdec, 0.0)
    heat = jnp.dot(hdec, w_d2_ref[...],
                   preferred_element_type=jnp.float32) + b_d2_ref[...]
    heat_ref[...] = heat.astype(heat_ref.dtype)


# ----------------------------- wrapper ----------------------------------------
def _full_spec(shape):
    return pl.BlockSpec(shape, lambda i, _n=len(shape): (0,) * _n)


def mononet_pallas(patches, pos_tiled, params):
    inputs = [patches, params["w_backbone"], params["b_backbone"],
              params["w_proj"], pos_tiled]
    for layer in params["layers"]:
        inputs.extend(layer)
    inputs.extend([params["w_dec1"], params["b_dec1"],
                   params["w_dec2_pad"], params["b_dec2_pad"]])

    kernel = functools.partial(mononet_fused_kernel, nlayers=LAYERS,
                               nheads=HEADS, batch=BATCH, seq=SEQ)

    heat, attn = pl.pallas_call(
        kernel,
        grid=(1,),
        out_shape=(
            jax.ShapeDtypeStruct((BATCH * SEQ, HEAT_PAD), jnp.float32),
            jax.ShapeDtypeStruct((BATCH, HEADS, SEQ, SEQ), jnp.float32),
        ),
        in_specs=[_full_spec(a.shape) for a in inputs],
        out_specs=(
            _full_spec((BATCH * SEQ, HEAT_PAD)),
            _full_spec((BATCH, HEADS, SEQ, SEQ)),
        ),
        compiler_params=pltpu.CompilerParams(
            dimension_semantics=("arbitrary",)),
    )(*inputs)
    return heat, attn


# ----------------------------- parameters ------------------------------------
def init_params(key):
    def nrm(k, shape, scale=0.02):
        return scale * jax.random.normal(k, shape, dtype=jnp.float32)

    keys = iter(jax.random.split(key, 64))
    p = {}
    # "backbone": stride-16 patch-embedding conv (+ReLU)
    p["w_backbone"] = nrm(next(keys), (PATCH_DIM, BACKBONE_OUT))
    p["b_backbone"] = jnp.zeros((1, BACKBONE_OUT), jnp.float32)
    # proj: 1x1 conv, bias=False
    p["w_proj"] = nrm(next(keys), (BACKBONE_OUT, EMBED))
    # learnable positional embedding for FeatureTransformer
    p["pos_embed"] = nrm(next(keys), (SEQ, EMBED))
    # transformer layers
    p["layers"] = []
    for _ in range(LAYERS):
        layer = (
            nrm(next(keys), (EMBED, EMBED)), jnp.zeros((1, EMBED), jnp.float32),   # Wq, bq
            nrm(next(keys), (EMBED, EMBED)), jnp.zeros((1, EMBED), jnp.float32),   # Wk, bk
            nrm(next(keys), (EMBED, EMBED)), jnp.zeros((1, EMBED), jnp.float32),   # Wv, bv
            nrm(next(keys), (EMBED, EMBED)), jnp.zeros((1, EMBED), jnp.float32),   # Wo, bo
            jnp.ones((1, EMBED), jnp.float32), jnp.zeros((1, EMBED), jnp.float32), # LN1
            nrm(next(keys), (EMBED, MLP_HIDDEN)), jnp.zeros((1, MLP_HIDDEN), jnp.float32),
            nrm(next(keys), (MLP_HIDDEN, EMBED)), jnp.zeros((1, EMBED), jnp.float32),
            jnp.ones((1, EMBED), jnp.float32), jnp.zeros((1, EMBED), jnp.float32), # LN2
        )
        p["layers"].append(layer)
    # keypoint decoder: two 1x1 convs (ReLU between), EMBED -> EMBED -> JOINTS
    p["w_dec1"] = nrm(next(keys), (EMBED, EMBED))
    p["b_dec1"] = jnp.zeros((1, EMBED), jnp.float32)
    w_dec2 = nrm(next(keys), (EMBED, JOINTS))
    # zero-pad the decoder head to 128 output lanes -> lane-dense heatmap store
    p["w_dec2_pad"] = jnp.pad(w_dec2, ((0, 0), (0, HEAT_PAD - JOINTS)))
    p["b_dec2_pad"] = jnp.zeros((1, HEAT_PAD), jnp.float32)
    return p


# ----------------------------- forward ----------------------------------------
def mononet_forward(x, params):
    """x: (B, 3, IMG, IMG) NCHW -> (heatmaps (B, JOINTS, FEAT, FEAT), attn)."""
    B = x.shape[0]

    # NCHW -> (B*S, PATCH*PATCH*C) patch slab with a single reshape/transpose pair
    patches = x.reshape(B, IN_CH, FEAT, PATCH, FEAT, PATCH)
    patches = patches.transpose(0, 2, 4, 3, 5, 1).reshape(B * SEQ, PATCH_DIM)
    pos_tiled = jnp.tile(params["pos_embed"], (B, 1))        # (B*S, EMBED)

    heat_pad, attn = mononet_pallas(patches, pos_tiled, params)

    heatmaps = heat_pad[:, :JOINTS].reshape(B, FEAT, FEAT, JOINTS)
    heatmaps = heatmaps.transpose(0, 3, 1, 2)                # NCHW
    return heatmaps, attn


# ----------------------------- main -------------------------------------------
if __name__ == "__main__":
    key = jax.random.PRNGKey(0)
    k_x, k_p = jax.random.split(key)
    x = jax.random.normal(k_x, (BATCH, IN_CH, IMG, IMG), dtype=jnp.float32)
    params = init_params(k_p)

    fwd = jax.jit(lambda inp: mononet_forward(inp, params))
    heatmaps, attn = fwd(x)
    jax.block_until_ready((heatmaps, attn))

    assert heatmaps.shape == (BATCH, JOINTS, FEAT, FEAT)
    assert attn.shape == (BATCH, HEADS, SEQ, SEQ)
    print("KERNEL_OK")
</pallas_src>

<mosaic_0001>
module attributes {stable_mosaic.version = 11 : i64} {
  func.func @mononet_fused_kernel(%arg0: i32, %arg1: memref<32x768xf32, #tpu.memory_space<vmem>>, %arg2: memref<768x16xf32, #tpu.memory_space<vmem>>, %arg3: memref<1x16xf32, #tpu.memory_space<vmem>>, %arg4: memref<16x32xf32, #tpu.memory_space<vmem>>, %arg5: memref<32x32xf32, #tpu.memory_space<vmem>>, %arg6: memref<32x32xf32, #tpu.memory_space<vmem>>, %arg7: memref<1x32xf32, #tpu.memory_space<vmem>>, %arg8: memref<32x32xf32, #tpu.memory_space<vmem>>, %arg9: memref<1x32xf32, #tpu.memory_space<vmem>>, %arg10: memref<32x32xf32, #tpu.memory_space<vmem>>, %arg11: memref<1x32xf32, #tpu.memory_space<vmem>>, %arg12: memref<32x32xf32, #tpu.memory_space<vmem>>, %arg13: memref<1x32xf32, #tpu.memory_space<vmem>>, %arg14: memref<1x32xf32, #tpu.memory_space<vmem>>, %arg15: memref<1x32xf32, #tpu.memory_space<vmem>>, %arg16: memref<32x64xf32, #tpu.memory_space<vmem>>, %arg17: memref<1x64xf32, #tpu.memory_space<vmem>>, %arg18: memref<64x32xf32, #tpu.memory_space<vmem>>, %arg19: memref<1x32xf32, #tpu.memory_space<vmem>>, %arg20: memref<1x32xf32, #tpu.memory_space<vmem>>, %arg21: memref<1x32xf32, #tpu.memory_space<vmem>>, %arg22: memref<32x32xf32, #tpu.memory_space<vmem>>, %arg23: memref<1x32xf32, #tpu.memory_space<vmem>>, %arg24: memref<32x32xf32, #tpu.memory_space<vmem>>, %arg25: memref<1x32xf32, #tpu.memory_space<vmem>>, %arg26: memref<32x32xf32, #tpu.memory_space<vmem>>, %arg27: memref<1x32xf32, #tpu.memory_space<vmem>>, %arg28: memref<32x32xf32, #tpu.memory_space<vmem>>, %arg29: memref<1x32xf32, #tpu.memory_space<vmem>>, %arg30: memref<1x32xf32, #tpu.memory_space<vmem>>, %arg31: memref<1x32xf32, #tpu.memory_space<vmem>>, %arg32: memref<32x64xf32, #tpu.memory_space<vmem>>, %arg33: memref<1x64xf32, #tpu.memory_space<vmem>>, %arg34: memref<64x32xf32, #tpu.memory_space<vmem>>, %arg35: memref<1x32xf32, #tpu.memory_space<vmem>>, %arg36: memref<1x32xf32, #tpu.memory_space<vmem>>, %arg37: memref<1x32xf32, #tpu.memory_space<vmem>>, %arg38: memref<32x32xf32, #tpu.memory_space<vmem>>, %arg39: memref<1x32xf32, #tpu.memory_space<vmem>>, %arg40: memref<32x128xf32, #tpu.memory_space<vmem>>, %arg41: memref<1x128xf32, #tpu.memory_space<vmem>>, %arg42: memref<32x128xf32, #tpu.memory_space<vmem>>, %arg43: memref<2x2x16x16xf32, #tpu.memory_space<vmem>>) attributes {dimension_semantics = [#tpu.dimension_semantics<arbitrary>], iteration_bounds = array<i64: 1>, scalar_prefetch = 0 : i64, scratch_operands = 0 : i64, tpu.core_type = #tpu.core_type<tc>, window_params = [{pipeline_mode = #tpu.pipeline_mode<synchronous>, transform_indices = @transform_0, window_bounds = array<i64: 32, 768>}, {pipeline_mode = #tpu.pipeline_mode<synchronous>, transform_indices = @transform_1, window_bounds = array<i64: 768, 16>}, {pipeline_mode = #tpu.pipeline_mode<synchronous>, transform_indices = @transform_2, window_bounds = array<i64: 1, 16>}, {pipeline_mode = #tpu.pipeline_mode<synchronous>, transform_indices = @transform_3, window_bounds = array<i64: 16, 32>}, {pipeline_mode = #tpu.pipeline_mode<synchronous>, transform_indices = @transform_4, window_bounds = array<i64: 32, 32>}, {pipeline_mode = #tpu.pipeline_mode<synchronous>, transform_indices = @transform_5, window_bounds = array<i64: 32, 32>}, {pipeline_mode = #tpu.pipeline_mode<synchronous>, transform_indices = @transform_6, window_bounds = array<i64: 1, 32>}, {pipeline_mode = #tpu.pipeline_mode<synchronous>, transform_indices = @transform_7, window_bounds = array<i64: 32, 32>}, {pipeline_mode = #tpu.pipeline_mode<synchronous>, transform_indices = @transform_8, window_bounds = array<i64: 1, 32>}, {pipeline_mode = #tpu.pipeline_mode<synchronous>, transform_indices = @transform_9, window_bounds = array<i64: 32, 32>}, {pipeline_mode = #tpu.pipeline_mode<synchronous>, transform_indices = @transform_10, window_bounds = array<i64: 1, 32>}, {pipeline_mode = #tpu.pipeline_mode<synchronous>, transform_indices = @transform_11, window_bounds = array<i64: 32, 32>}, {pipeline_mode = #tpu.pipeline_mode<synchronous>, transform_indices = @transform_12, window_bounds = array<i64: 1, 32>}, {pipeline_mode = #tpu.pipeline_mode<synchronous>, transform_indices = @transform_13, window_bounds = array<i64: 1, 32>}, {pipeline_mode = #tpu.pipeline_mode<synchronous>, transform_indices = @transform_14, window_bounds = array<i64: 1, 32>}, {pipeline_mode = #tpu.pipeline_mode<synchronous>, transform_indices = @transform_15, window_bounds = array<i64: 32, 64>}, {pipeline_mode = #tpu.pipeline_mode<synchronous>, transform_indices = @transform_16, window_bounds = array<i64: 1, 64>}, {pipeline_mode = #tpu.pipeline_mode<synchronous>, transform_indices = @transform_17, window_bounds = array<i64: 64, 32>}, {pipeline_mode = #tpu.pipeline_mode<synchronous>, transform_indices = @transform_18, window_bounds = array<i64: 1, 32>}, {pipeline_mode = #tpu.pipeline_mode<synchronous>, transform_indices = @transform_19, window_bounds = array<i64: 1, 32>}, {pipeline_mode = #tpu.pipeline_mode<synchronous>, transform_indices = @transform_20, window_bounds = array<i64: 1, 32>}, {pipeline_mode = #tpu.pipeline_mode<synchronous>, transform_indices = @transform_21, window_bounds = array<i64: 32, 32>}, {pipeline_mode = #tpu.pipeline_mode<synchronous>, transform_indices = @transform_22, window_bounds = array<i64: 1, 32>}, {pipeline_mode = #tpu.pipeline_mode<synchronous>, transform_indices = @transform_23, window_bounds = array<i64: 32, 32>}, {pipeline_mode = #tpu.pipeline_mode<synchronous>, transform_indices = @transform_24, window_bounds = array<i64: 1, 32>}, {pipeline_mode = #tpu.pipeline_mode<synchronous>, transform_indices = @transform_25, window_bounds = array<i64: 32, 32>}, {pipeline_mode = #tpu.pipeline_mode<synchronous>, transform_indices = @transform_26, window_bounds = array<i64: 1, 32>}, {pipeline_mode = #tpu.pipeline_mode<synchronous>, transform_indices = @transform_27, window_bounds = array<i64: 32, 32>}, {pipeline_mode = #tpu.pipeline_mode<synchronous>, transform_indices = @transform_28, window_bounds = array<i64: 1, 32>}, {pipeline_mode = #tpu.pipeline_mode<synchronous>, transform_indices = @transform_29, window_bounds = array<i64: 1, 32>}, {pipeline_mode = #tpu.pipeline_mode<synchronous>, transform_indices = @transform_30, window_bounds = array<i64: 1, 32>}, {pipeline_mode = #tpu.pipeline_mode<synchronous>, transform_indices = @transform_31, window_bounds = array<i64: 32, 64>}, {pipeline_mode = #tpu.pipeline_mode<synchronous>, transform_indices = @transform_32, window_bounds = array<i64: 1, 64>}, {pipeline_mode = #tpu.pipeline_mode<synchronous>, transform_indices = @transform_33, window_bounds = array<i64: 64, 32>}, {pipeline_mode = #tpu.pipeline_mode<synchronous>, transform_indices = @transform_34, window_bounds = array<i64: 1, 32>}, {pipeline_mode = #tpu.pipeline_mode<synchronous>, transform_indices = @transform_35, window_bounds = array<i64: 1, 32>}, {pipeline_mode = #tpu.pipeline_mode<synchronous>, transform_indices = @transform_36, window_bounds = array<i64: 1, 32>}, {pipeline_mode = #tpu.pipeline_mode<synchronous>, transform_indices = @transform_37, window_bounds = array<i64: 32, 32>}, {pipeline_mode = #tpu.pipeline_mode<synchronous>, transform_indices = @transform_38, window_bounds = array<i64: 1, 32>}, {pipeline_mode = #tpu.pipeline_mode<synchronous>, transform_indices = @transform_39, window_bounds = array<i64: 32, 128>}, {pipeline_mode = #tpu.pipeline_mode<synchronous>, transform_indices = @transform_40, window_bounds = array<i64: 1, 128>}, {pipeline_mode = #tpu.pipeline_mode<synchronous>, transform_indices = @transform_41, window_bounds = array<i64: 32, 128>}, {pipeline_mode = #tpu.pipeline_mode<synchronous>, transform_indices = @transform_42, window_bounds = array<i64: 2, 2, 16, 16>}]} {
    %c0 = arith.constant 0 : index
    %c0_0 = arith.constant 0 : index
    %0 = vector.load %arg1[%c0, %c0_0] : memref<32x768xf32, #tpu.memory_space<vmem>>, vector<32x768xf32>
    %c0_1 = arith.constant 0 : index
    %c0_2 = arith.constant 0 : index
    %1 = vector.load %arg2[%c0_1, %c0_2] : memref<768x16xf32, #tpu.memory_space<vmem>>, vector<768x16xf32>
    %cst = arith.constant dense<0.000000e+00> : vector<32x16xf32>
    %2 = tpu.matmul %0, %1, %cst {dimension_numbers = #tpu.dot_dimension_numbers<[1], [0], [0], [1], [0, 0, 1, 1], [], []>} : vector<32x768xf32>, vector<768x16xf32>, vector<32x16xf32> -> vector<32x16xf32>
    %c0_3 = arith.constant 0 : index
    %c0_4 = arith.constant 0 : index
    %3 = vector.load %arg3[%c0_3, %c0_4] : memref<1x16xf32, #tpu.memory_space<vmem>>, vector<1x16xf32>
    %4 = vector.broadcast %3 : vector<1x16xf32> to vector<32x16xf32>
    %5 = arith.addf %2, %4 : vector<32x16xf32>
    %cst_5 = arith.constant 0.000000e+00 : f32
    %6 = vector.broadcast %cst_5 : f32 to vector<32x16xf32>
    %7 = arith.maximumf %5, %6 : vector<32x16xf32>
    %c0_6 = arith.constant 0 : index
    %c0_7 = arith.constant 0 : index
    %8 = vector.load %arg4[%c0_6, %c0_7] : memref<16x32xf32, #tpu.memory_space<vmem>>, vector<16x32xf32>
    %cst_8 = arith.constant dense<0.000000e+00> : vector<32x32xf32>
    %9 = tpu.matmul %7, %8, %cst_8 {dimension_numbers = #tpu.dot_dimension_numbers<[1], [0], [0], [1], [0, 0, 1, 1], [], []>} : vector<32x16xf32>, vector<16x32xf32>, vector<32x32xf32> -> vector<32x32xf32>
    %c0_9 = arith.constant 0 : index
    %c0_10 = arith.constant 0 : index
    %10 = vector.load %arg5[%c0_9, %c0_10] : memref<32x32xf32, #tpu.memory_space<vmem>>, vector<32x32xf32>
    %11 = arith.addf %9, %10 : vector<32x32xf32>
    %c0_11 = arith.constant 0 : index
    %c0_12 = arith.constant 0 : index
    %12 = vector.load %arg6[%c0_11, %c0_12] : memref<32x32xf32, #tpu.memory_space<vmem>>, vector<32x32xf32>
    %cst_13 = arith.constant dense<0.000000e+00> : vector<32x32xf32>
    %13 = tpu.matmul %11, %12, %cst_13 {dimension_numbers = #tpu.dot_dimension_numbers<[1], [0], [0], [1], [0, 0, 1, 1], [], []>} : vector<32x32xf32>, vector<32x32xf32>, vector<32x32xf32> -> vector<32x32xf32>
    %c0_14 = arith.constant 0 : index
    %c0_15 = arith.constant 0 : index
    %14 = vector.load %arg7[%c0_14, %c0_15] : memref<1x32xf32, #tpu.memory_space<vmem>>, vector<1x32xf32>
    %15 = vector.broadcast %14 : vector<1x32xf32> to vector<32x32xf32>
    %16 = arith.addf %13, %15 : vector<32x32xf32>
    %c0_16 = arith.constant 0 : index
    %c0_17 = arith.constant 0 : index
    %17 = vector.load %arg8[%c0_16, %c0_17] : memref<32x32xf32, #tpu.memory_space<vmem>>, vector<32x32xf32>
    %cst_18 = arith.constant dense<0.000000e+00> : vector<32x32xf32>
    %18 = tpu.matmul %11, %17, %cst_18 {dimension_numbers = #tpu.dot_dimension_numbers<[1], [0], [0], [1], [0, 0, 1, 1], [], []>} : vector<32x32xf32>, vector<32x32xf32>, vector<32x32xf32> -> vector<32x32xf32>
    %c0_19 = arith.constant 0 : index
    %c0_20 = arith.constant 0 : index
    %19 = vector.load %arg9[%c0_19, %c0_20] : memref<1x32xf32, #tpu.memory_space<vmem>>, vector<1x32xf32>
    %20 = vector.broadcast %19 : vector<1x32xf32> to vector<32x32xf32>
    %21 = arith.addf %18, %20 : vector<32x32xf32>
    %c0_21 = arith.constant 0 : index
    %c0_22 = arith.constant 0 : index
    %22 = vector.load %arg10[%c0_21, %c0_22] : memref<32x32xf32, #tpu.memory_space<vmem>>, vector<32x32xf32>
    %cst_23 = arith.constant dense<0.000000e+00> : vector<32x32xf32>
    %23 = tpu.matmul %11, %22, %cst_23 {dimension_numbers = #tpu.dot_dimension_numbers<[1], [0], [0], [1], [0, 0, 1, 1], [], []>} : vector<32x32xf32>, vector<32x32xf32>, vector<32x32xf32> -> vector<32x32xf32>
    %c0_24 = arith.constant 0 : index
    %c0_25 = arith.constant 0 : index
    %24 = vector.load %arg11[%c0_24, %c0_25] : memref<1x32xf32, #tpu.memory_space<vmem>>, vector<1x32xf32>
    %25 = vector.broadcast %24 : vector<1x32xf32> to vector<32x32xf32>
    %26 = arith.addf %23, %25 : vector<32x32xf32>
    %27 = vector.extract_strided_slice %16 {offsets = [0, 0], sizes = [16, 16], strides = [1, 1]} : vector<32x32xf32> to vector<16x16xf32>
    %28 = vector.extract_strided_slice %21 {offsets = [0, 0], sizes = [16, 16], strides = [1, 1]} : vector<32x32xf32> to vector<16x16xf32>
    %29 = vector.extract_strided_slice %26 {offsets = [0, 0], sizes = [16, 16], strides = [1, 1]} : vector<32x32xf32> to vector<16x16xf32>
    %30 = tpu.transpose %28, [1, 0] : vector<16x16xf32> -> vector<16x16xf32>
    %cst_26 = arith.constant dense<0.000000e+00> : vector<16x16xf32>
    %31 = tpu.matmul %27, %30, %cst_26 {dimension_numbers = #tpu.dot_dimension_numbers<[1], [0], [0], [1], [0, 0, 1, 1], [], []>} : vector<16x16xf32>, vector<16x16xf32>, vector<16x16xf32> -> vector<16x16xf32>
    %cst_27 = arith.constant 2.500000e-01 : f32
    %32 = vector.broadcast %cst_27 : f32 to vector<16x16xf32>
    %33 = arith.mulf %31, %32 : vector<16x16xf32>
    %cst_28 = arith.constant dense<0xFF800000> : vector<16xf32>
    %34 = vector.multi_reduction <maximumf>, %33, %cst_28 [1] : vector<16x16xf32> to vector<16xf32>
    %35 = vector.shape_cast %34 : vector<16xf32> to vector<16x1xf32>
    %36 = vector.broadcast %35 : vector<16x1xf32> to vector<16x16xf32>
    %37 = arith.subf %33, %36 : vector<16x16xf32>
    %38 = math.exp %37 : vector<16x16xf32>
    %cst_29 = arith.constant dense<0.000000e+00> : vector<16xf32>
    %39 = vector.multi_reduction <add>, %38, %cst_29 [1] : vector<16x16xf32> to vector<16xf32>
    %40 = vector.shape_cast %39 : vector<16xf32> to vector<16x1xf32>
    %41 = tpu.reciprocal %40 {approx = true} : vector<16x1xf32> -> vector<16x1xf32>
    %42 = vector.broadcast %41 : vector<16x1xf32> to vector<16x16xf32>
    %43 = arith.mulf %38, %42 : vector<16x16xf32>
    %cst_30 = arith.constant dense<0.000000e+00> : vector<16x16xf32>
    %44 = tpu.matmul %43, %29, %cst_30 {dimension_numbers = #tpu.dot_dimension_numbers<[1], [0], [0], [1], [0, 0, 1, 1], [], []>} : vector<16x16xf32>, vector<16x16xf32>, vector<16x16xf32> -> vector<16x16xf32>
    %45 = vector.extract_strided_slice %16 {offsets = [0, 16], sizes = [16, 16], strides = [1, 1]} : vector<32x32xf32> to vector<16x16xf32>
    %46 = vector.extract_strided_slice %21 {offsets = [0, 16], sizes = [16, 16], strides = [1, 1]} : vector<32x32xf32> to vector<16x16xf32>
    %47 = vector.extract_strided_slice %26 {offsets = [0, 16], sizes = [16, 16], strides = [1, 1]} : vector<32x32xf32> to vector<16x16xf32>
    %48 = tpu.transpose %46, [1, 0] : vector<16x16xf32> -> vector<16x16xf32>
    %cst_31 = arith.constant dense<0.000000e+00> : vector<16x16xf32>
    %49 = tpu.matmul %45, %48, %cst_31 {dimension_numbers = #tpu.dot_dimension_numbers<[1], [0], [0], [1], [0, 0, 1, 1], [], []>} : vector<16x16xf32>, vector<16x16xf32>, vector<16x16xf32> -> vector<16x16xf32>
    %cst_32 = arith.constant 2.500000e-01 : f32
    %50 = vector.broadcast %cst_32 : f32 to vector<16x16xf32>
    %51 = arith.mulf %49, %50 : vector<16x16xf32>
    %cst_33 = arith.constant dense<0xFF800000> : vector<16xf32>
    %52 = vector.multi_reduction <maximumf>, %51, %cst_33 [1] : vector<16x16xf32> to vector<16xf32>
    %53 = vector.shape_cast %52 : vector<16xf32> to vector<16x1xf32>
    %54 = vector.broadcast %53 : vector<16x1xf32> to vector<16x16xf32>
    %55 = arith.subf %51, %54 : vector<16x16xf32>
    %56 = math.exp %55 : vector<16x16xf32>
    %cst_34 = arith.constant dense<0.000000e+00> : vector<16xf32>
    %57 = vector.multi_reduction <add>, %56, %cst_34 [1] : vector<16x16xf32> to vector<16xf32>
    %58 = vector.shape_cast %57 : vector<16xf32> to vector<16x1xf32>
    %59 = tpu.reciprocal %58 {approx = true} : vector<16x1xf32> -> vector<16x1xf32>
    %60 = vector.broadcast %59 : vector<16x1xf32> to vector<16x16xf32>
    %61 = arith.mulf %56, %60 : vector<16x16xf32>
    %cst_35 = arith.constant dense<0.000000e+00> : vector<16x16xf32>
    %62 = tpu.matmul %61, %47, %cst_35 {dimension_numbers = #tpu.dot_dimension_numbers<[1], [0], [0], [1], [0, 0, 1, 1], [], []>} : vector<16x16xf32>, vector<16x16xf32>, vector<16x16xf32> -> vector<16x16xf32>
    %63 = tpu.concatenate %44, %62 in 1 : vector<16x16xf32>, vector<16x16xf32> -> vector<16x32xf32>
    %64 = vector.extract_strided_slice %16 {offsets = [16, 0], sizes = [16, 16], strides = [1, 1]} : vector<32x32xf32> to vector<16x16xf32>
    %65 = vector.extract_strided_slice %21 {offsets = [16, 0], sizes = [16, 16], strides = [1, 1]} : vector<32x32xf32> to vector<16x16xf32>
    %66 = vector.extract_strided_slice %26 {offsets = [16, 0], sizes = [16, 16], strides = [1, 1]} : vector<32x32xf32> to vector<16x16xf32>
    %67 = tpu.transpose %65, [1, 0] : vector<16x16xf32> -> vector<16x16xf32>
    %cst_36 = arith.constant dense<0.000000e+00> : vector<16x16xf32>
    %68 = tpu.matmul %64, %67, %cst_36 {dimension_numbers = #tpu.dot_dimension_numbers<[1], [0], [0], [1], [0, 0, 1, 1], [], []>} : vector<16x16xf32>, vector<16x16xf32>, vector<16x16xf32> -> vector<16x16xf32>
    %cst_37 = arith.constant 2.500000e-01 : f32
    %69 = vector.broadcast %cst_37 : f32 to vector<16x16xf32>
    %70 = arith.mulf %68, %69 : vector<16x16xf32>
    %cst_38 = arith.constant dense<0xFF800000> : vector<16xf32>
    %71 = vector.multi_reduction <maximumf>, %70, %cst_38 [1] : vector<16x16xf32> to vector<16xf32>
    %72 = vector.shape_cast %71 : vector<16xf32> to vector<16x1xf32>
    %73 = vector.broadcast %72 : vector<16x1xf32> to vector<16x16xf32>
    %74 = arith.subf %70, %73 : vector<16x16xf32>
    %75 = math.exp %74 : vector<16x16xf32>
    %cst_39 = arith.constant dense<0.000000e+00> : vector<16xf32>
    %76 = vector.multi_reduction <add>, %75, %cst_39 [1] : vector<16x16xf32> to vector<16xf32>
    %77 = vector.shape_cast %76 : vector<16xf32> to vector<16x1xf32>
    %78 = tpu.reciprocal %77 {approx = true} : vector<16x1xf32> -> vector<16x1xf32>
    %79 = vector.broadcast %78 : vector<16x1xf32> to vector<16x16xf32>
    %80 = arith.mulf %75, %79 : vector<16x16xf32>
    %cst_40 = arith.constant dense<0.000000e+00> : vector<16x16xf32>
    %81 = tpu.matmul %80, %66, %cst_40 {dimension_numbers = #tpu.dot_dimension_numbers<[1], [0], [0], [1], [0, 0, 1, 1], [], []>} : vector<16x16xf32>, vector<16x16xf32>, vector<16x16xf32> -> vector<16x16xf32>
    %82 = vector.extract_strided_slice %16 {offsets = [16, 16], sizes = [16, 16], strides = [1, 1]} : vector<32x32xf32> to vector<16x16xf32>
    %83 = vector.extract_strided_slice %21 {offsets = [16, 16], sizes = [16, 16], strides = [1, 1]} : vector<32x32xf32> to vector<16x16xf32>
    %84 = vector.extract_strided_slice %26 {offsets = [16, 16], sizes = [16, 16], strides = [1, 1]} : vector<32x32xf32> to vector<16x16xf32>
    %85 = tpu.transpose %83, [1, 0] : vector<16x16xf32> -> vector<16x16xf32>
    %cst_41 = arith.constant dense<0.000000e+00> : vector<16x16xf32>
    %86 = tpu.matmul %82, %85, %cst_41 {dimension_numbers = #tpu.dot_dimension_numbers<[1], [0], [0], [1], [0, 0, 1, 1], [], []>} : vector<16x16xf32>, vector<16x16xf32>, vector<16x16xf32> -> vector<16x16xf32>
    %cst_42 = arith.constant 2.500000e-01 : f32
    %87 = vector.broadcast %cst_42 : f32 to vector<16x16xf32>
    %88 = arith.mulf %86, %87 : vector<16x16xf32>
    %cst_43 = arith.constant dense<0xFF800000> : vector<16xf32>
    %89 = vector.multi_reduction <maximumf>, %88, %cst_43 [1] : vector<16x16xf32> to vector<16xf32>
    %90 = vector.shape_cast %89 : vector<16xf32> to vector<16x1xf32>
    %91 = vector.broadcast %90 : vector<16x1xf32> to vector<16x16xf32>
    %92 = arith.subf %88, %91 : vector<16x16xf32>
    %93 = math.exp %92 : vector<16x16xf32>
    %cst_44 = arith.constant dense<0.000000e+00> : vector<16xf32>
    %94 = vector.multi_reduction <add>, %93, %cst_44 [1] : vector<16x16xf32> to vector<16xf32>
    %95 = vector.shape_cast %94 : vector<16xf32> to vector<16x1xf32>
    %96 = tpu.reciprocal %95 {approx = true} : vector<16x1xf32> -> vector<16x1xf32>
    %97 = vector.broadcast %96 : vector<16x1xf32> to vector<16x16xf32>
    %98 = arith.mulf %93, %97 : vector<16x16xf32>
    %cst_45 = arith.constant dense<0.000000e+00> : vector<16x16xf32>
    %99 = tpu.matmul %98, %84, %cst_45 {dimension_numbers = #tpu.dot_dimension_numbers<[1], [0], [0], [1], [0, 0, 1, 1], [], []>} : vector<16x16xf32>, vector<16x16xf32>, vector<16x16xf32> -> vector<16x16xf32>
    %100 = tpu.concatenate %81, %99 in 1 : vector<16x16xf32>, vector<16x16xf32> -> vector<16x32xf32>
    %101 = tpu.concatenate %63, %100 in 0 : vector<16x32xf32>, vector<16x32xf32> -> vector<32x32xf32>
    %c0_46 = arith.constant 0 : index
    %c0_47 = arith.constant 0 : index
    %102 = vector.load %arg12[%c0_46, %c0_47] : memref<32x32xf32, #tpu.memory_space<vmem>>, vector<32x32xf32>
    %cst_48 = arith.constant dense<0.000000e+00> : vector<32x32xf32>
    %103 = tpu.matmul %101, %102, %cst_48 {dimension_numbers = #tpu.dot_dimension_numbers<[1], [0], [0], [1], [0, 0, 1, 1], [], []>} : vector<32x32xf32>, vector<32x32xf32>, vector<32x32xf32> -> vector<32x32xf32>
    %c0_49 = arith.constant 0 : index
    %c0_50 = arith.constant 0 : index
    %104 = vector.load %arg13[%c0_49, %c0_50] : memref<1x32xf32, #tpu.memory_space<vmem>>, vector<1x32xf32>
    %105 = vector.broadcast %104 : vector<1x32xf32> to vector<32x32xf32>
    %106 = arith.addf %103, %105 : vector<32x32xf32>
    %107 = arith.addf %11, %106 : vector<32x32xf32>
    %c0_51 = arith.constant 0 : index
    %c0_52 = arith.constant 0 : index
    %108 = vector.load %arg14[%c0_51, %c0_52] : memref<1x32xf32, #tpu.memory_space<vmem>>, vector<1x32xf32>
    %c0_53 = arith.constant 0 : index
    %c0_54 = arith.constant 0 : index
    %109 = vector.load %arg15[%c0_53, %c0_54] : memref<1x32xf32, #tpu.memory_space<vmem>>, vector<1x32xf32>
    %cst_55 = arith.constant dense<0.000000e+00> : vector<32xf32>
    %110 = vector.multi_reduction <add>, %107, %cst_55 [1] : vector<32x32xf32> to vector<32xf32>
    %111 = vector.shape_cast %110 : vector<32xf32> to vector<32x1xf32>
    %cst_56 = arith.constant 3.200000e+01 : f32
    %112 = vector.broadcast %cst_56 : f32 to vector<32x1xf32>
    %113 = arith.divf %111, %112 : vector<32x1xf32>
    %114 = vector.broadcast %113 : vector<32x1xf32> to vector<32x32xf32>
    %115 = arith.subf %107, %114 : vector<32x32xf32>
    %116 = arith.mulf %115, %115 : vector<32x32xf32>
    %cst_57 = arith.constant dense<0.000000e+00> : vector<32xf32>
    %117 = vector.multi_reduction <add>, %116, %cst_57 [1] : vector<32x32xf32> to vector<32xf32>
    %118 = vector.shape_cast %117 : vector<32xf32> to vector<32x1xf32>
    %cst_58 = arith.constant 3.200000e+01 : f32
    %119 = vector.broadcast %cst_58 : f32 to vector<32x1xf32>
    %120 = arith.divf %118, %119 : vector<32x1xf32>
    %121 = vector.broadcast %113 : vector<32x1xf32> to vector<32x32xf32>
    %122 = arith.subf %107, %121 : vector<32x32xf32>
    %cst_59 = arith.constant 9.99999974E-6 : f32
    %123 = vector.broadcast %cst_59 : f32 to vector<32x1xf32>
    %124 = arith.addf %120, %123 : vector<32x1xf32>
    %125 = math.rsqrt %124 : vector<32x1xf32>
    %126 = vector.broadcast %125 : vector<32x1xf32> to vector<32x32xf32>
    %127 = arith.mulf %122, %126 : vector<32x32xf32>
    %128 = vector.broadcast %108 : vector<1x32xf32> to vector<32x32xf32>
    %129 = arith.mulf %127, %128 : vector<32x32xf32>
    %130 = vector.broadcast %109 : vector<1x32xf32> to vector<32x32xf32>
    %131 = arith.addf %129, %130 : vector<32x32xf32>
    %c0_60 = arith.constant 0 : index
    %c0_61 = arith.constant 0 : index
    %132 = vector.load %arg16[%c0_60, %c0_61] : memref<32x64xf32, #tpu.memory_space<vmem>>, vector<32x64xf32>
    %cst_62 = arith.constant dense<0.000000e+00> : vector<32x64xf32>
    %133 = tpu.matmul %131, %132, %cst_62 {dimension_numbers = #tpu.dot_dimension_numbers<[1], [0], [0], [1], [0, 0, 1, 1], [], []>} : vector<32x32xf32>, vector<32x64xf32>, vector<32x64xf32> -> vector<32x64xf32>
    %c0_63 = arith.constant 0 : index
    %c0_64 = arith.constant 0 : index
    %134 = vector.load %arg17[%c0_63, %c0_64] : memref<1x64xf32, #tpu.memory_space<vmem>>, vector<1x64xf32>
    %135 = vector.broadcast %134 : vector<1x64xf32> to vector<32x64xf32>
    %136 = arith.addf %133, %135 : vector<32x64xf32>
    %cst_65 = arith.constant 0.000000e+00 : f32
    %137 = vector.broadcast %cst_65 : f32 to vector<32x64xf32>
    %138 = arith.maximumf %136, %137 : vector<32x64xf32>
    %c0_66 = arith.constant 0 : index
    %c0_67 = arith.constant 0 : index
    %139 = vector.load %arg18[%c0_66, %c0_67] : memref<64x32xf32, #tpu.memory_space<vmem>>, vector<64x32xf32>
    %cst_68 = arith.constant dense<0.000000e+00> : vector<32x32xf32>
    %140 = tpu.matmul %138, %139, %cst_68 {dimension_numbers = #tpu.dot_dimension_numbers<[1], [0], [0], [1], [0, 0, 1, 1], [], []>} : vector<32x64xf32>, vector<64x32xf32>, vector<32x32xf32> -> vector<32x32xf32>
    %c0_69 = arith.constant 0 : index
    %c0_70 = arith.constant 0 : index
    %141 = vector.load %arg19[%c0_69, %c0_70] : memref<1x32xf32, #tpu.memory_space<vmem>>, vector<1x32xf32>
    %142 = vector.broadcast %141 : vector<1x32xf32> to vector<32x32xf32>
    %143 = arith.addf %140, %142 : vector<32x32xf32>
    %144 = arith.addf %131, %143 : vector<32x32xf32>
    %c0_71 = arith.constant 0 : index
    %c0_72 = arith.constant 0 : index
    %145 = vector.load %arg20[%c0_71, %c0_72] : memref<1x32xf32, #tpu.memory_space<vmem>>, vector<1x32xf32>
    %c0_73 = arith.constant 0 : index
    %c0_74 = arith.constant 0 : index
    %146 = vector.load %arg21[%c0_73, %c0_74] : memref<1x32xf32, #tpu.memory_space<vmem>>, vector<1x32xf32>
    %cst_75 = arith.constant dense<0.000000e+00> : vector<32xf32>
    %147 = vector.multi_reduction <add>, %144, %cst_75 [1] : vector<32x32xf32> to vector<32xf32>
    %148 = vector.shape_cast %147 : vector<32xf32> to vector<32x1xf32>
    %cst_76 = arith.constant 3.200000e+01 : f32
    %149 = vector.broadcast %cst_76 : f32 to vector<32x1xf32>
    %150 = arith.divf %148, %149 : vector<32x1xf32>
    %151 = vector.broadcast %150 : vector<32x1xf32> to vector<32x32xf32>
    %152 = arith.subf %144, %151 : vector<32x32xf32>
    %153 = arith.mulf %152, %152 : vector<32x32xf32>
    %cst_77 = arith.constant dense<0.000000e+00> : vector<32xf32>
    %154 = vector.multi_reduction <add>, %153, %cst_77 [1] : vector<32x32xf32> to vector<32xf32>
    %155 = vector.shape_cast %154 : vector<32xf32> to vector<32x1xf32>
    %cst_78 = arith.constant 3.200000e+01 : f32
    %156 = vector.broadcast %cst_78 : f32 to vector<32x1xf32>
    %157 = arith.divf %155, %156 : vector<32x1xf32>
    %158 = vector.broadcast %150 : vector<32x1xf32> to vector<32x32xf32>
    %159 = arith.subf %144, %158 : vector<32x32xf32>
    %cst_79 = arith.constant 9.99999974E-6 : f32
    %160 = vector.broadcast %cst_79 : f32 to vector<32x1xf32>
    %161 = arith.addf %157, %160 : vector<32x1xf32>
    %162 = math.rsqrt %161 : vector<32x1xf32>
    %163 = vector.broadcast %162 : vector<32x1xf32> to vector<32x32xf32>
    %164 = arith.mulf %159, %163 : vector<32x32xf32>
    %165 = vector.broadcast %145 : vector<1x32xf32> to vector<32x32xf32>
    %166 = arith.mulf %164, %165 : vector<32x32xf32>
    %167 = vector.broadcast %146 : vector<1x32xf32> to vector<32x32xf32>
    %168 = arith.addf %166, %167 : vector<32x32xf32>
    %c0_80 = arith.constant 0 : index
    %c0_81 = arith.constant 0 : index
    %169 = vector.load %arg22[%c0_80, %c0_81] : memref<32x32xf32, #tpu.memory_space<vmem>>, vector<32x32xf32>
    %cst_82 = arith.constant dense<0.000000e+00> : vector<32x32xf32>
    %170 = tpu.matmul %168, %169, %cst_82 {dimension_numbers = #tpu.dot_dimension_numbers<[1], [0], [0], [1], [0, 0, 1, 1], [], []>} : vector<32x32xf32>, vector<32x32xf32>, vector<32x32xf32> -> vector<32x32xf32>
    %c0_83 = arith.constant 0 : index
    %c0_84 = arith.constant 0 : index
    %171 = vector.load %arg23[%c0_83, %c0_84] : memref<1x32xf32, #tpu.memory_space<vmem>>, vector<1x32xf32>
    %172 = vector.broadcast %171 : vector<1x32xf32> to vector<32x32xf32>
    %173 = arith.addf %170, %172 : vector<32x32xf32>
    %c0_85 = arith.constant 0 : index
    %c0_86 = arith.constant 0 : index
    %174 = vector.load %arg24[%c0_85, %c0_86] : memref<32x32xf32, #tpu.memory_space<vmem>>, vector<32x32xf32>
    %cst_87 = arith.constant dense<0.000000e+00> : vector<32x32xf32>
    %175 = tpu.matmul %168, %174, %cst_87 {dimension_numbers = #tpu.dot_dimension_numbers<[1], [0], [0], [1], [0, 0, 1, 1], [], []>} : vector<32x32xf32>, vector<32x32xf32>, vector<32x32xf32> -> vector<32x32xf32>
    %c0_88 = arith.constant 0 : index
    %c0_89 = arith.constant 0 : index
    %176 = vector.load %arg25[%c0_88, %c0_89] : memref<1x32xf32, #tpu.memory_space<vmem>>, vector<1x32xf32>
    %177 = vector.broadcast %176 : vector<1x32xf32> to vector<32x32xf32>
    %178 = arith.addf %175, %177 : vector<32x32xf32>
    %c0_90 = arith.constant 0 : index
    %c0_91 = arith.constant 0 : index
    %179 = vector.load %arg26[%c0_90, %c0_91] : memref<32x32xf32, #tpu.memory_space<vmem>>, vector<32x32xf32>
    %cst_92 = arith.constant dense<0.000000e+00> : vector<32x32xf32>
    %180 = tpu.matmul %168, %179, %cst_92 {dimension_numbers = #tpu.dot_dimension_numbers<[1], [0], [0], [1], [0, 0, 1, 1], [], []>} : vector<32x32xf32>, vector<32x32xf32>, vector<32x32xf32> -> vector<32x32xf32>
    %c0_93 = arith.constant 0 : index
    %c0_94 = arith.constant 0 : index
    %181 = vector.load %arg27[%c0_93, %c0_94] : memref<1x32xf32, #tpu.memory_space<vmem>>, vector<1x32xf32>
    %182 = vector.broadcast %181 : vector<1x32xf32> to vector<32x32xf32>
    %183 = arith.addf %180, %182 : vector<32x32xf32>
    %184 = vector.extract_strided_slice %173 {offsets = [0, 0], sizes = [16, 16], strides = [1, 1]} : vector<32x32xf32> to vector<16x16xf32>
    %185 = vector.extract_strided_slice %178 {offsets = [0, 0], sizes = [16, 16], strides = [1, 1]} : vector<32x32xf32> to vector<16x16xf32>
    %186 = vector.extract_strided_slice %183 {offsets = [0, 0], sizes = [16, 16], strides = [1, 1]} : vector<32x32xf32> to vector<16x16xf32>
    %187 = tpu.transpose %185, [1, 0] : vector<16x16xf32> -> vector<16x16xf32>
    %cst_95 = arith.constant dense<0.000000e+00> : vector<16x16xf32>
    %188 = tpu.matmul %184, %187, %cst_95 {dimension_numbers = #tpu.dot_dimension_numbers<[1], [0], [0], [1], [0, 0, 1, 1], [], []>} : vector<16x16xf32>, vector<16x16xf32>, vector<16x16xf32> -> vector<16x16xf32>
    %cst_96 = arith.constant 2.500000e-01 : f32
    %189 = vector.broadcast %cst_96 : f32 to vector<16x16xf32>
    %190 = arith.mulf %188, %189 : vector<16x16xf32>
    %cst_97 = arith.constant dense<0xFF800000> : vector<16xf32>
    %191 = vector.multi_reduction <maximumf>, %190, %cst_97 [1] : vector<16x16xf32> to vector<16xf32>
    %192 = vector.shape_cast %191 : vector<16xf32> to vector<16x1xf32>
    %193 = vector.broadcast %192 : vector<16x1xf32> to vector<16x16xf32>
    %194 = arith.subf %190, %193 : vector<16x16xf32>
    %195 = math.exp %194 : vector<16x16xf32>
    %cst_98 = arith.constant dense<0.000000e+00> : vector<16xf32>
    %196 = vector.multi_reduction <add>, %195, %cst_98 [1] : vector<16x16xf32> to vector<16xf32>
    %197 = vector.shape_cast %196 : vector<16xf32> to vector<16x1xf32>
    %198 = tpu.reciprocal %197 {approx = true} : vector<16x1xf32> -> vector<16x1xf32>
    %199 = vector.broadcast %198 : vector<16x1xf32> to vector<16x16xf32>
    %200 = arith.mulf %195, %199 : vector<16x16xf32>
    %c0_99 = arith.constant 0 : index
    %c0_100 = arith.constant 0 : index
    %c0_101 = arith.constant 0 : index
    %c0_102 = arith.constant 0 : index
    %201 = vector.load %arg43[%c0_99, %c0_100, %c0_101, %c0_102] : memref<2x2x16x16xf32, #tpu.memory_space<vmem>>, vector<1x1x16x16xf32>
    %202 = vector.shape_cast %201 : vector<1x1x16x16xf32> to vector<16x16xf32>
    %203 = vector.shape_cast %200 : vector<16x16xf32> to vector<1x1x16x16xf32>
    tpu.vector_store %arg43[%c0_99, %c0_100, %c0_101, %c0_102], %203 {strides = array<i32>} : memref<2x2x16x16xf32, #tpu.memory_space<vmem>>, vector<1x1x16x16xf32>,
    %cst_103 = arith.constant dense<0.000000e+00> : vector<16x16xf32>
    %204 = tpu.matmul %200, %186, %cst_103 {dimension_numbers = #tpu.dot_dimension_numbers<[1], [0], [0], [1], [0, 0, 1, 1], [], []>} : vector<16x16xf32>, vector<16x16xf32>, vector<16x16xf32> -> vector<16x16xf32>
    %205 = vector.extract_strided_slice %173 {offsets = [0, 16], sizes = [16, 16], strides = [1, 1]} : vector<32x32xf32> to vector<16x16xf32>
    %206 = vector.extract_strided_slice %178 {offsets = [0, 16], sizes = [16, 16], strides = [1, 1]} : vector<32x32xf32> to vector<16x16xf32>
    %207 = vector.extract_strided_slice %183 {offsets = [0, 16], sizes = [16, 16], strides = [1, 1]} : vector<32x32xf32> to vector<16x16xf32>
    %208 = tpu.transpose %206, [1, 0] : vector<16x16xf32> -> vector<16x16xf32>
    %cst_104 = arith.constant dense<0.000000e+00> : vector<16x16xf32>
    %209 = tpu.matmul %205, %208, %cst_104 {dimension_numbers = #tpu.dot_dimension_numbers<[1], [0], [0], [1], [0, 0, 1, 1], [], []>} : vector<16x16xf32>, vector<16x16xf32>, vector<16x16xf32> -> vector<16x16xf32>
    %cst_105 = arith.constant 2.500000e-01 : f32
    %210 = vector.broadcast %cst_105 : f32 to vector<16x16xf32>
    %211 = arith.mulf %209, %210 : vector<16x16xf32>
    %cst_106 = arith.constant dense<0xFF800000> : vector<16xf32>
    %212 = vector.multi_reduction <maximumf>, %211, %cst_106 [1] : vector<16x16xf32> to vector<16xf32>
    %213 = vector.shape_cast %212 : vector<16xf32> to vector<16x1xf32>
    %214 = vector.broadcast %213 : vector<16x1xf32> to vector<16x16xf32>
    %215 = arith.subf %211, %214 : vector<16x16xf32>
    %216 = math.exp %215 : vector<16x16xf32>
    %cst_107 = arith.constant dense<0.000000e+00> : vector<16xf32>
    %217 = vector.multi_reduction <add>, %216, %cst_107 [1] : vector<16x16xf32> to vector<16xf32>
    %218 = vector.shape_cast %217 : vector<16xf32> to vector<16x1xf32>
    %219 = tpu.reciprocal %218 {approx = true} : vector<16x1xf32> -> vector<16x1xf32>
    %220 = vector.broadcast %219 : vector<16x1xf32> to vector<16x16xf32>
    %221 = arith.mulf %216, %220 : vector<16x16xf32>
    %c0_108 = arith.constant 0 : index
    %c1 = arith.constant 1 : index
    %c0_109 = arith.constant 0 : index
    %c0_110 = arith.constant 0 : index
    %222 = vector.load %arg43[%c0_108, %c1, %c0_109, %c0_110] : memref<2x2x16x16xf32, #tpu.memory_space<vmem>>, vector<1x1x16x16xf32>
    %223 = vector.shape_cast %222 : vector<1x1x16x16xf32> to vector<16x16xf32>
    %224 = vector.shape_cast %221 : vector<16x16xf32> to vector<1x1x16x16xf32>
    tpu.vector_store %arg43[%c0_108, %c1, %c0_109, %c0_110], %224 {strides = array<i32>} : memref<2x2x16x16xf32, #tpu.memory_space<vmem>>, vector<1x1x16x16xf32>,
    %cst_111 = arith.constant dense<0.000000e+00> : vector<16x16xf32>
    %225 = tpu.matmul %221, %207, %cst_111 {dimension_numbers = #tpu.dot_dimension_numbers<[1], [0], [0], [1], [0, 0, 1, 1], [], []>} : vector<16x16xf32>, vector<16x16xf32>, vector<16x16xf32> -> vector<16x16xf32>
    %226 = tpu.concatenate %204, %225 in 1 : vector<16x16xf32>, vector<16x16xf32> -> vector<16x32xf32>
    %227 = vector.extract_strided_slice %173 {offsets = [16, 0], sizes = [16, 16], strides = [1, 1]} : vector<32x32xf32> to vector<16x16xf32>
    %228 = vector.extract_strided_slice %178 {offsets = [16, 0], sizes = [16, 16], strides = [1, 1]} : vector<32x32xf32> to vector<16x16xf32>
    %229 = vector.extract_strided_slice %183 {offsets = [16, 0], sizes = [16, 16], strides = [1, 1]} : vector<32x32xf32> to vector<16x16xf32>
    %230 = tpu.transpose %228, [1, 0] : vector<16x16xf32> -> vector<16x16xf32>
    %cst_112 = arith.constant dense<0.000000e+00> : vector<16x16xf32>
    %231 = tpu.matmul %227, %230, %cst_112 {dimension_numbers = #tpu.dot_dimension_numbers<[1], [0], [0], [1], [0, 0, 1, 1], [], []>} : vector<16x16xf32>, vector<16x16xf32>, vector<16x16xf32> -> vector<16x16xf32>
    %cst_113 = arith.constant 2.500000e-01 : f32
    %232 = vector.broadcast %cst_113 : f32 to vector<16x16xf32>
    %233 = arith.mulf %231, %232 : vector<16x16xf32>
    %cst_114 = arith.constant dense<0xFF800000> : vector<16xf32>
    %234 = vector.multi_reduction <maximumf>, %233, %cst_114 [1] : vector<16x16xf32> to vector<16xf32>
    %235 = vector.shape_cast %234 : vector<16xf32> to vector<16x1xf32>
    %236 = vector.broadcast %235 : vector<16x1xf32> to vector<16x16xf32>
    %237 = arith.subf %233, %236 : vector<16x16xf32>
    %238 = math.exp %237 : vector<16x16xf32>
    %cst_115 = arith.constant dense<0.000000e+00> : vector<16xf32>
    %239 = vector.multi_reduction <add>, %238, %cst_115 [1] : vector<16x16xf32> to vector<16xf32>
    %240 = vector.shape_cast %239 : vector<16xf32> to vector<16x1xf32>
    %241 = tpu.reciprocal %240 {approx = true} : vector<16x1xf32> -> vector<16x1xf32>
    %242 = vector.broadcast %241 : vector<16x1xf32> to vector<16x16xf32>
    %243 = arith.mulf %238, %242 : vector<16x16xf32>
    %c1_116 = arith.constant 1 : index
    %c0_117 = arith.constant 0 : index
    %c0_118 = arith.constant 0 : index
    %c0_119 = arith.constant 0 : index
    %244 = vector.load %arg43[%c1_116, %c0_117, %c0_118, %c0_119] : memref<2x2x16x16xf32, #tpu.memory_space<vmem>>, vector<1x1x16x16xf32>
    %245 = vector.shape_cast %244 : vector<1x1x16x16xf32> to vector<16x16xf32>
    %246 = vector.shape_cast %243 : vector<16x16xf32> to vector<1x1x16x16xf32>
    tpu.vector_store %arg43[%c1_116, %c0_117, %c0_118, %c0_119], %246 {strides = array<i32>} : memref<2x2x16x16xf32, #tpu.memory_space<vmem>>, vector<1x1x16x16xf32>,
    %cst_120 = arith.constant dense<0.000000e+00> : vector<16x16xf32>
    %247 = tpu.matmul %243, %229, %cst_120 {dimension_numbers = #tpu.dot_dimension_numbers<[1], [0], [0], [1], [0, 0, 1, 1], [], []>} : vector<16x16xf32>, vector<16x16xf32>, vector<16x16xf32> -> vector<16x16xf32>
    %248 = vector.extract_strided_slice %173 {offsets = [16, 16], sizes = [16, 16], strides = [1, 1]} : vector<32x32xf32> to vector<16x16xf32>
    %249 = vector.extract_strided_slice %178 {offsets = [16, 16], sizes = [16, 16], strides = [1, 1]} : vector<32x32xf32> to vector<16x16xf32>
    %250 = vector.extract_strided_slice %183 {offsets = [16, 16], sizes = [16, 16], strides = [1, 1]} : vector<32x32xf32> to vector<16x16xf32>
    %251 = tpu.transpose %249, [1, 0] : vector<16x16xf32> -> vector<16x16xf32>
    %cst_121 = arith.constant dense<0.000000e+00> : vector<16x16xf32>
    %252 = tpu.matmul %248, %251, %cst_121 {dimension_numbers = #tpu.dot_dimension_numbers<[1], [0], [0], [1], [0, 0, 1, 1], [], []>} : vector<16x16xf32>, vector<16x16xf32>, vector<16x16xf32> -> vector<16x16xf32>
    %cst_122 = arith.constant 2.500000e-01 : f32
    %253 = vector.broadcast %cst_122 : f32 to vector<16x16xf32>
    %254 = arith.mulf %252, %253 : vector<16x16xf32>
    %cst_123 = arith.constant dense<0xFF800000> : vector<16xf32>
    %255 = vector.multi_reduction <maximumf>, %254, %cst_123 [1] : vector<16x16xf32> to vector<16xf32>
    %256 = vector.shape_cast %255 : vector<16xf32> to vector<16x1xf32>
    %257 = vector.broadcast %256 : vector<16x1xf32> to vector<16x16xf32>
    %258 = arith.subf %254, %257 : vector<16x16xf32>
    %259 = math.exp %258 : vector<16x16xf32>
    %cst_124 = arith.constant dense<0.000000e+00> : vector<16xf32>
    %260 = vector.multi_reduction <add>, %259, %cst_124 [1] : vector<16x16xf32> to vector<16xf32>
    %261 = vector.shape_cast %260 : vector<16xf32> to vector<16x1xf32>
    %262 = tpu.reciprocal %261 {approx = true} : vector<16x1xf32> -> vector<16x1xf32>
    %263 = vector.broadcast %262 : vector<16x1xf32> to vector<16x16xf32>
    %264 = arith.mulf %259, %263 : vector<16x16xf32>
    %c1_125 = arith.constant 1 : index
    %c1_126 = arith.constant 1 : index
    %c0_127 = arith.constant 0 : index
    %c0_128 = arith.constant 0 : index
    %265 = vector.load %arg43[%c1_125, %c1_126, %c0_127, %c0_128] : memref<2x2x16x16xf32, #tpu.memory_space<vmem>>, vector<1x1x16x16xf32>
    %266 = vector.shape_cast %265 : vector<1x1x16x16xf32> to vector<16x16xf32>
    %267 = vector.shape_cast %264 : vector<16x16xf32> to vector<1x1x16x16xf32>
    tpu.vector_store %arg43[%c1_125, %c1_126, %c0_127, %c0_128], %267 {strides = array<i32>} : memref<2x2x16x16xf32, #tpu.memory_space<vmem>>, vector<1x1x16x16xf32>,
    %cst_129 = arith.constant dense<0.000000e+00> : vector<16x16xf32>
    %268 = tpu.matmul %264, %250, %cst_129 {dimension_numbers = #tpu.dot_dimension_numbers<[1], [0], [0], [1], [0, 0, 1, 1], [], []>} : vector<16x16xf32>, vector<16x16xf32>, vector<16x16xf32> -> vector<16x16xf32>
    %269 = tpu.concatenate %247, %268 in 1 : vector<16x16xf32>, vector<16x16xf32> -> vector<16x32xf32>
    %270 = tpu.concatenate %226, %269 in 0 : vector<16x32xf32>, vector<16x32xf32> -> vector<32x32xf32>
    %c0_130 = arith.constant 0 : index
    %c0_131 = arith.constant 0 : index
    %271 = vector.load %arg28[%c0_130, %c0_131] : memref<32x32xf32, #tpu.memory_space<vmem>>, vector<32x32xf32>
    %cst_132 = arith.constant dense<0.000000e+00> : vector<32x32xf32>
    %272 = tpu.matmul %270, %271, %cst_132 {dimension_numbers = #tpu.dot_dimension_numbers<[1], [0], [0], [1], [0, 0, 1, 1], [], []>} : vector<32x32xf32>, vector<32x32xf32>, vector<32x32xf32> -> vector<32x32xf32>
    %c0_133 = arith.constant 0 : index
    %c0_134 = arith.constant 0 : index
    %273 = vector.load %arg29[%c0_133, %c0_134] : memref<1x32xf32, #tpu.memory_space<vmem>>, vector<1x32xf32>
    %274 = vector.broadcast %273 : vector<1x32xf32> to vector<32x32xf32>
    %275 = arith.addf %272, %274 : vector<32x32xf32>
    %276 = arith.addf %168, %275 : vector<32x32xf32>
    %c0_135 = arith.constant 0 : index
    %c0_136 = arith.constant 0 : index
    %277 = vector.load %arg30[%c0_135, %c0_136] : memref<1x32xf32, #tpu.memory_space<vmem>>, vector<1x32xf32>
    %c0_137 = arith.constant 0 : index
    %c0_138 = arith.constant 0 : index
    %278 = vector.load %arg31[%c0_137, %c0_138] : memref<1x32xf32, #tpu.memory_space<vmem>>, vector<1x32xf32>
    %cst_139 = arith.constant dense<0.000000e+00> : vector<32xf32>
    %279 = vector.multi_reduction <add>, %276, %cst_139 [1] : vector<32x32xf32> to vector<32xf32>
    %280 = vector.shape_cast %279 : vector<32xf32> to vector<32x1xf32>
    %cst_140 = arith.constant 3.200000e+01 : f32
    %281 = vector.broadcast %cst_140 : f32 to vector<32x1xf32>
    %282 = arith.divf %280, %281 : vector<32x1xf32>
    %283 = vector.broadcast %282 : vector<32x1xf32> to vector<32x32xf32>
    %284 = arith.subf %276, %283 : vector<32x32xf32>
    %285 = arith.mulf %284, %284 : vector<32x32xf32>
    %cst_141 = arith.constant dense<0.000000e+00> : vector<32xf32>
    %286 = vector.multi_reduction <add>, %285, %cst_141 [1] : vector<32x32xf32> to vector<32xf32>
    %287 = vector.shape_cast %286 : vector<32xf32> to vector<32x1xf32>
    %cst_142 = arith.constant 3.200000e+01 : f32
    %288 = vector.broadcast %cst_142 : f32 to vector<32x1xf32>
    %289 = arith.divf %287, %288 : vector<32x1xf32>
    %290 = vector.broadcast %282 : vector<32x1xf32> to vector<32x32xf32>
    %291 = arith.subf %276, %290 : vector<32x32xf32>
    %cst_143 = arith.constant 9.99999974E-6 : f32
    %292 = vector.broadcast %cst_143 : f32 to vector<32x1xf32>
    %293 = arith.addf %289, %292 : vector<32x1xf32>
    %294 = math.rsqrt %293 : vector<32x1xf32>
    %295 = vector.broadcast %294 : vector<32x1xf32> to vector<32x32xf32>
    %296 = arith.mulf %291, %295 : vector<32x32xf32>
    %297 = vector.broadcast %277 : vector<1x32xf32> to vector<32x32xf32>
    %298 = arith.mulf %296, %297 : vector<32x32xf32>
    %299 = vector.broadcast %278 : vector<1x32xf32> to vector<32x32xf32>
    %300 = arith.addf %298, %299 : vector<32x32xf32>
    %c0_144 = arith.constant 0 : index
    %c0_145 = arith.constant 0 : index
    %301 = vector.load %arg32[%c0_144, %c0_145] : memref<32x64xf32, #tpu.memory_space<vmem>>, vector<32x64xf32>
    %cst_146 = arith.constant dense<0.000000e+00> : vector<32x64xf32>
    %302 = tpu.matmul %300, %301, %cst_146 {dimension_numbers = #tpu.dot_dimension_numbers<[1], [0], [0], [1], [0, 0, 1, 1], [], []>} : vector<32x32xf32>, vector<32x64xf32>, vector<32x64xf32> -> vector<32x64xf32>
    %c0_147 = arith.constant 0 : index
    %c0_148 = arith.constant 0 : index
    %303 = vector.load %arg33[%c0_147, %c0_148] : memref<1x64xf32, #tpu.memory_space<vmem>>, vector<1x64xf32>
    %304 = vector.broadcast %303 : vector<1x64xf32> to vector<32x64xf32>
    %305 = arith.addf %302, %304 : vector<32x64xf32>
    %cst_149 = arith.constant 0.000000e+00 : f32
    %306 = vector.broadcast %cst_149 : f32 to vector<32x64xf32>
    %307 = arith.maximumf %305, %306 : vector<32x64xf32>
    %c0_150 = arith.constant 0 : index
    %c0_151 = arith.constant 0 : index
    %308 = vector.load %arg34[%c0_150, %c0_151] : memref<64x32xf32, #tpu.memory_space<vmem>>, vector<64x32xf32>
    %cst_152 = arith.constant dense<0.000000e+00> : vector<32x32xf32>
    %309 = tpu.matmul %307, %308, %cst_152 {dimension_numbers = #tpu.dot_dimension_numbers<[1], [0], [0], [1], [0, 0, 1, 1], [], []>} : vector<32x64xf32>, vector<64x32xf32>, vector<32x32xf32> -> vector<32x32xf32>
    %c0_153 = arith.constant 0 : index
    %c0_154 = arith.constant 0 : index
    %310 = vector.load %arg35[%c0_153, %c0_154] : memref<1x32xf32, #tpu.memory_space<vmem>>, vector<1x32xf32>
    %311 = vector.broadcast %310 : vector<1x32xf32> to vector<32x32xf32>
    %312 = arith.addf %309, %311 : vector<32x32xf32>
    %313 = arith.addf %300, %312 : vector<32x32xf32>
    %c0_155 = arith.constant 0 : index
    %c0_156 = arith.constant 0 : index
    %314 = vector.load %arg36[%c0_155, %c0_156] : memref<1x32xf32, #tpu.memory_space<vmem>>, vector<1x32xf32>
    %c0_157 = arith.constant 0 : index
    %c0_158 = arith.constant 0 : index
    %315 = vector.load %arg37[%c0_157, %c0_158] : memref<1x32xf32, #tpu.memory_space<vmem>>, vector<1x32xf32>
    %cst_159 = arith.constant dense<0.000000e+00> : vector<32xf32>
    %316 = vector.multi_reduction <add>, %313, %cst_159 [1] : vector<32x32xf32> to vector<32xf32>
    %317 = vector.shape_cast %316 : vector<32xf32> to vector<32x1xf32>
    %cst_160 = arith.constant 3.200000e+01 : f32
    %318 = vector.broadcast %cst_160 : f32 to vector<32x1xf32>
    %319 = arith.divf %317, %318 : vector<32x1xf32>
    %320 = vector.broadcast %319 : vector<32x1xf32> to vector<32x32xf32>
    %321 = arith.subf %313, %320 : vector<32x32xf32>
    %322 = arith.mulf %321, %321 : vector<32x32xf32>
    %cst_161 = arith.constant dense<0.000000e+00> : vector<32xf32>
    %323 = vector.multi_reduction <add>, %322, %cst_161 [1] : vector<32x32xf32> to vector<32xf32>
    %324 = vector.shape_cast %323 : vector<32xf32> to vector<32x1xf32>
    %cst_162 = arith.constant 3.200000e+01 : f32
    %325 = vector.broadcast %cst_162 : f32 to vector<32x1xf32>
    %326 = arith.divf %324, %325 : vector<32x1xf32>
    %327 = vector.broadcast %319 : vector<32x1xf32> to vector<32x32xf32>
    %328 = arith.subf %313, %327 : vector<32x32xf32>
    %cst_163 = arith.constant 9.99999974E-6 : f32
    %329 = vector.broadcast %cst_163 : f32 to vector<32x1xf32>
    %330 = arith.addf %326, %329 : vector<32x1xf32>
    %331 = math.rsqrt %330 : vector<32x1xf32>
    %332 = vector.broadcast %331 : vector<32x1xf32> to vector<32x32xf32>
    %333 = arith.mulf %328, %332 : vector<32x32xf32>
    %334 = vector.broadcast %314 : vector<1x32xf32> to vector<32x32xf32>
    %335 = arith.mulf %333, %334 : vector<32x32xf32>
    %336 = vector.broadcast %315 : vector<1x32xf32> to vector<32x32xf32>
    %337 = arith.addf %335, %336 : vector<32x32xf32>
    %c0_164 = arith.constant 0 : index
    %c0_165 = arith.constant 0 : index
    %338 = vector.load %arg38[%c0_164, %c0_165] : memref<32x32xf32, #tpu.memory_space<vmem>>, vector<32x32xf32>
    %cst_166 = arith.constant dense<0.000000e+00> : vector<32x32xf32>
    %339 = tpu.matmul %337, %338, %cst_166 {dimension_numbers = #tpu.dot_dimension_numbers<[1], [0], [0], [1], [0, 0, 1, 1], [], []>} : vector<32x32xf32>, vector<32x32xf32>, vector<32x32xf32> -> vector<32x32xf32>
    %c0_167 = arith.constant 0 : index
    %c0_168 = arith.constant 0 : index
    %340 = vector.load %arg39[%c0_167, %c0_168] : memref<1x32xf32, #tpu.memory_space<vmem>>, vector<1x32xf32>
    %341 = vector.broadcast %340 : vector<1x32xf32> to vector<32x32xf32>
    %342 = arith.addf %339, %341 : vector<32x32xf32>
    %cst_169 = arith.constant 0.000000e+00 : f32
    %343 = vector.broadcast %cst_169 : f32 to vector<32x32xf32>
    %344 = arith.maximumf %342, %343 : vector<32x32xf32>
    %c0_170 = arith.constant 0 : index
    %c0_171 = arith.constant 0 : index
    %345 = vector.load %arg40[%c0_170, %c0_171] : memref<32x128xf32, #tpu.memory_space<vmem>>, vector<32x128xf32>
    %cst_172 = arith.constant dense<0.000000e+00> : vector<32x128xf32>
    %346 = tpu.matmul %344, %345, %cst_172 {dimension_numbers = #tpu.dot_dimension_numbers<[1], [0], [0], [1], [0, 0, 1, 1], [], []>} : vector<32x32xf32>, vector<32x128xf32>, vector<32x128xf32> -> vector<32x128xf32>
    %c0_173 = arith.constant 0 : index
    %c0_174 = arith.constant 0 : index
    %347 = vector.load %arg41[%c0_173, %c0_174] : memref<1x128xf32, #tpu.memory_space<vmem>>, vector<1x128xf32>
    %348 = vector.broadcast %347 : vector<1x128xf32> to vector<32x128xf32>
    %349 = arith.addf %346, %348 : vector<32x128xf32>
    %c0_175 = arith.constant 0 : index
    %c0_176 = arith.constant 0 : index
    %350 = vector.load %arg42[%c0_175, %c0_176] : memref<32x128xf32, #tpu.memory_space<vmem>>, vector<32x128xf32>
    tpu.vector_store %arg42[%c0_175, %c0_176], %349 {strides = array<i32>} : memref<32x128xf32, #tpu.memory_space<vmem>>, vector<32x128xf32>,
    return
  }
  func.func @transform_0(%arg0: i32) -> (i32, i32) {
    %c0_i32 = arith.constant 0 : i32
    %c0_i32_0 = arith.constant 0 : i32
    %c0_i32_1 = arith.constant 0 : i32
    return %c0_i32, %c0_i32_0 : i32, i32
  }
  func.func @transform_1(%arg0: i32) -> (i32, i32) {
    %c0_i32 = arith.constant 0 : i32
    %c0_i32_0 = arith.constant 0 : i32
    %c0_i32_1 = arith.constant 0 : i32
    return %c0_i32, %c0_i32_0 : i32, i32
  }
  func.func @transform_2(%arg0: i32) -> (i32, i32) {
    %c0_i32 = arith.constant 0 : i32
    %c0_i32_0 = arith.constant 0 : i32
    %c0_i32_1 = arith.constant 0 : i32
    return %c0_i32, %c0_i32_0 : i32, i32
  }
  func.func @transform_3(%arg0: i32) -> (i32, i32) {
    %c0_i32 = arith.constant 0 : i32
    %c0_i32_0 = arith.constant 0 : i32
    %c0_i32_1 = arith.constant 0 : i32
    return %c0_i32, %c0_i32_0 : i32, i32
  }
  func.func @transform_4(%arg0: i32) -> (i32, i32) {
    %c0_i32 = arith.constant 0 : i32
    %c0_i32_0 = arith.constant 0 : i32
    %c0_i32_1 = arith.constant 0 : i32
    return %c0_i32, %c0_i32_0 : i32, i32
  }
  func.func @transform_5(%arg0: i32) -> (i32, i32) {
    %c0_i32 = arith.constant 0 : i32
    %c0_i32_0 = arith.constant 0 : i32
    %c0_i32_1 = arith.constant 0 : i32
    return %c0_i32, %c0_i32_0 : i32, i32
  }
  func.func @transform_6(%arg0: i32) -> (i32, i32) {
    %c0_i32 = arith.constant 0 : i32
    %c0_i32_0 = arith.constant 0 : i32
    %c0_i32_1 = arith.constant 0 : i32
    return %c0_i32, %c0_i32_0 : i32, i32
  }
  func.func @transform_7(%arg0: i32) -> (i32, i32) {
    %c0_i32 = arith.constant 0 : i32
    %c0_i32_0 = arith.constant 0 : i32
    %c0_i32_1 = arith.constant 0 : i32
    return %c0_i32, %c0_i32_0 : i32, i32
  }
  func.func @transform_8(%arg0: i32) -> (i32, i32) {
    %c0_i32 = arith.constant 0 : i32
    %c0_i32_0 = arith.constant 0 : i32
    %c0_i32_1 = arith.constant 0 : i32
    return %c0_i32, %c0_i32_0 : i32, i32
  }
  func.func @transform_9(%arg0: i32) -> (i32, i32) {
    %c0_i32 = arith.constant 0 : i32
    %c0_i32_0 = arith.constant 0 : i32
    %c0_i32_1 = arith.constant 0 : i32
    return %c0_i32, %c0_i32_0 : i32, i32
  }
  func.func @transform_10(%arg0: i32) -> (i32, i32) {
    %c0_i32 = arith.constant 0 : i32
    %c0_i32_0 = arith.constant 0 : i32
    %c0_i32_1 = arith.constant 0 : i32
    return %c0_i32, %c0_i32_0 : i32, i32
  }
  func.func @transform_11(%arg0: i32) -> (i32, i32) {
    %c0_i32 = arith.constant 0 : i32
    %c0_i32_0 = arith.constant 0 : i32
    %c0_i32_1 = arith.constant 0 : i32
    return %c0_i32, %c0_i32_0 : i32, i32
  }
  func.func @transform_12(%arg0: i32) -> (i32, i32) {
    %c0_i32 = arith.constant 0 : i32
    %c0_i32_0 = arith.constant 0 : i32
    %c0_i32_1 = arith.constant 0 : i32
    return %c0_i32, %c0_i32_0 : i32, i32
  }
  func.func @transform_13(%arg0: i32) -> (i32, i32) {
    %c0_i32 = arith.constant 0 : i32
    %c0_i32_0 = arith.constant 0 : i32
    %c0_i32_1 = arith.constant 0 : i32
    return %c0_i32, %c0_i32_0 : i32, i32
  }
  func.func @transform_14(%arg0: i32) -> (i32, i32) {
    %c0_i32 = arith.constant 0 : i32
    %c0_i32_0 = arith.constant 0 : i32
    %c0_i32_1 = arith.constant 0 : i32
    return %c0_i32, %c0_i32_0 : i32, i32
  }
  func.func @transform_15(%arg0: i32) -> (i32, i32) {
    %c0_i32 = arith.constant 0 : i32
    %c0_i32_0 = arith.constant 0 : i32
    %c0_i32_1 = arith.constant 0 : i32
    return %c0_i32, %c0_i32_0 : i32, i32
  }
  func.func @transform_16(%arg0: i32) -> (i32, i32) {
    %c0_i32 = arith.constant 0 : i32
    %c0_i32_0 = arith.constant 0 : i32
    %c0_i32_1 = arith.constant 0 : i32
    return %c0_i32, %c0_i32_0 : i32, i32
  }
  func.func @transform_17(%arg0: i32) -> (i32, i32) {
    %c0_i32 = arith.constant 0 : i32
    %c0_i32_0 = arith.constant 0 : i32
    %c0_i32_1 = arith.constant 0 : i32
    return %c0_i32, %c0_i32_0 : i32, i32
  }
  func.func @transform_18(%arg0: i32) -> (i32, i32) {
    %c0_i32 = arith.constant 0 : i32
    %c0_i32_0 = arith.constant 0 : i32
    %c0_i32_1 = arith.constant 0 : i32
    return %c0_i32, %c0_i32_0 : i32, i32
  }
  func.func @transform_19(%arg0: i32) -> (i32, i32) {
    %c0_i32 = arith.constant 0 : i32
    %c0_i32_0 = arith.constant 0 : i32
    %c0_i32_1 = arith.constant 0 : i32
    return %c0_i32, %c0_i32_0 : i32, i32
  }
  func.func @transform_20(%arg0: i32) -> (i32, i32) {
    %c0_i32 = arith.constant 0 : i32
    %c0_i32_0 = arith.constant 0 : i32
    %c0_i32_1 = arith.constant 0 : i32
    return %c0_i32, %c0_i32_0 : i32, i32
  }
  func.func @transform_21(%arg0: i32) -> (i32, i32) {
    %c0_i32 = arith.constant 0 : i32
    %c0_i32_0 = arith.constant 0 : i32
    %c0_i32_1 = arith.constant 0 : i32
    return %c0_i32, %c0_i32_0 : i32, i32
  }
  func.func @transform_22(%arg0: i32) -> (i32, i32) {
    %c0_i32 = arith.constant 0 : i32
    %c0_i32_0 = arith.constant 0 : i32
    %c0_i32_1 = arith.constant 0 : i32
    return %c0_i32, %c0_i32_0 : i32, i32
  }
  func.func @transform_23(%arg0: i32) -> (i32, i32) {
    %c0_i32 = arith.constant 0 : i32
    %c0_i32_0 = arith.constant 0 : i32
    %c0_i32_1 = arith.constant 0 : i32
    return %c0_i32, %c0_i32_0 : i32, i32
  }
  func.func @transform_24(%arg0: i32) -> (i32, i32) {
    %c0_i32 = arith.constant 0 : i32
    %c0_i32_0 = arith.constant 0 : i32
    %c0_i32_1 = arith.constant 0 : i32
    return %c0_i32, %c0_i32_0 : i32, i32
  }
  func.func @transform_25(%arg0: i32) -> (i32, i32) {
    %c0_i32 = arith.constant 0 : i32
    %c0_i32_0 = arith.constant 0 : i32
    %c0_i32_1 = arith.constant 0 : i32
    return %c0_i32, %c0_i32_0 : i32, i32
  }
  func.func @transform_26(%arg0: i32) -> (i32, i32) {
    %c0_i32 = arith.constant 0 : i32
    %c0_i32_0 = arith.constant 0 : i32
    %c0_i32_1 = arith.constant 0 : i32
    return %c0_i32, %c0_i32_0 : i32, i32
  }
  func.func @transform_27(%arg0: i32) -> (i32, i32) {
    %c0_i32 = arith.constant 0 : i32
    %c0_i32_0 = arith.constant 0 : i32
    %c0_i32_1 = arith.constant 0 : i32
    return %c0_i32, %c0_i32_0 : i32, i32
  }
  func.func @transform_28(%arg0: i32) -> (i32, i32) {
    %c0_i32 = arith.constant 0 : i32
    %c0_i32_0 = arith.constant 0 : i32
    %c0_i32_1 = arith.constant 0 : i32
    return %c0_i32, %c0_i32_0 : i32, i32
  }
  func.func @transform_29(%arg0: i32) -> (i32, i32) {
    %c0_i32 = arith.constant 0 : i32
    %c0_i32_0 = arith.constant 0 : i32
    %c0_i32_1 = arith.constant 0 : i32
    return %c0_i32, %c0_i32_0 : i32, i32
  }
  func.func @transform_30(%arg0: i32) -> (i32, i32) {
    %c0_i32 = arith.constant 0 : i32
    %c0_i32_0 = arith.constant 0 : i32
    %c0_i32_1 = arith.constant 0 : i32
    return %c0_i32, %c0_i32_0 : i32, i32
  }
  func.func @transform_31(%arg0: i32) -> (i32, i32) {
    %c0_i32 = arith.constant 0 : i32
    %c0_i32_0 = arith.constant 0 : i32
    %c0_i32_1 = arith.constant 0 : i32
    return %c0_i32, %c0_i32_0 : i32, i32
  }
  func.func @transform_32(%arg0: i32) -> (i32, i32) {
    %c0_i32 = arith.constant 0 : i32
    %c0_i32_0 = arith.constant 0 : i32
    %c0_i32_1 = arith.constant 0 : i32
    return %c0_i32, %c0_i32_0 : i32, i32
  }
  func.func @transform_33(%arg0: i32) -> (i32, i32) {
    %c0_i32 = arith.constant 0 : i32
    %c0_i32_0 = arith.constant 0 : i32
    %c0_i32_1 = arith.constant 0 : i32
    return %c0_i32, %c0_i32_0 : i32, i32
  }
  func.func @transform_34(%arg0: i32) -> (i32, i32) {
    %c0_i32 = arith.constant 0 : i32
    %c0_i32_0 = arith.constant 0 : i32
    %c0_i32_1 = arith.constant 0 : i32
    return %c0_i32, %c0_i32_0 : i32, i32
  }
  func.func @transform_35(%arg0: i32) -> (i32, i32) {
    %c0_i32 = arith.constant 0 : i32
    %c0_i32_0 = arith.constant 0 : i32
    %c0_i32_1 = arith.constant 0 : i32
    return %c0_i32, %c0_i32_0 : i32, i32
  }
  func.func @transform_36(%arg0: i32) -> (i32, i32) {
    %c0_i32 = arith.constant 0 : i32
    %c0_i32_0 = arith.constant 0 : i32
    %c0_i32_1 = arith.constant 0 : i32
    return %c0_i32, %c0_i32_0 : i32, i32
  }
  func.func @transform_37(%arg0: i32) -> (i32, i32) {
    %c0_i32 = arith.constant 0 : i32
    %c0_i32_0 = arith.constant 0 : i32
    %c0_i32_1 = arith.constant 0 : i32
    return %c0_i32, %c0_i32_0 : i32, i32
  }
  func.func @transform_38(%arg0: i32) -> (i32, i32) {
    %c0_i32 = arith.constant 0 : i32
    %c0_i32_0 = arith.constant 0 : i32
    %c0_i32_1 = arith.constant 0 : i32
    return %c0_i32, %c0_i32_0 : i32, i32
  }
  func.func @transform_39(%arg0: i32) -> (i32, i32) {
    %c0_i32 = arith.constant 0 : i32
    %c0_i32_0 = arith.constant 0 : i32
    %c0_i32_1 = arith.constant 0 : i32
    return %c0_i32, %c0_i32_0 : i32, i32
  }
  func.func @transform_40(%arg0: i32) -> (i32, i32) {
    %c0_i32 = arith.constant 0 : i32
    %c0_i32_0 = arith.constant 0 : i32
    %c0_i32_1 = arith.constant 0 : i32
    return %c0_i32, %c0_i32_0 : i32, i32
  }
  func.func @transform_41(%arg0: i32) -> (i32, i32) {
    %c0_i32 = arith.constant 0 : i32
    %c0_i32_0 = arith.constant 0 : i32
    %c0_i32_1 = arith.constant 0 : i32
    return %c0_i32, %c0_i32_0 : i32, i32
  }
  func.func @transform_42(%arg0: i32) -> (i32, i32, i32, i32) {
    %c0_i32 = arith.constant 0 : i32
    %c0_i32_0 = arith.constant 0 : i32
    %c0_i32_1 = arith.constant 0 : i32
    %c0_i32_2 = arith.constant 0 : i32
    %c0_i32_3 = arith.constant 0 : i32
    return %c0_i32, %c0_i32_0, %c0_i32_1, %c0_i32_2 : i32, i32, i32, i32
  }
}

</mosaic_0001>

<bundles_post_ra>
// kernel: _lambda_.1
= control target key start
LH: loop header
LB: loop body
LE: loop exit
PB: predicated region body
PF: predicated region fallthrough
CT: control target
= control target key end

     0   :  { %s5504_s6 = smov 1   ;;  %s5505_s10 = smov 2   ;;  %s6422_s0 = inlined_call_operand.smem [shape: u32[43], index: -1, kind: input, shape index: {}] }
   0x1   :  { %s5560_s5 = sld [smem:[%s6422_s0]]   ;;  %s5506_s14 = smov 3  }
   0x2   :  { %s5565_s9 = sld [smem:[%s6422_s0 + %s5504_s6]]   ;;  %s5507_s18 = smov 4  }
   0x3   :  { %s5570_s13 = sld [smem:[%s6422_s0 + %s5505_s10]]   ;;  %s5508_s22 = smov 5  }
   0x4   :  { %s5575_s17 = sld [smem:[%s6422_s0 + %s5506_s14]]   ;;  %s5509_s26 = smov 6  }
   0x5   :  { %s5580_s21 = sld [smem:[%s6422_s0 + %s5507_s18]]   ;;  %s5510_s30 = smov 7  }
   0x6   :  { %s5585_s25 = sld [smem:[%s6422_s0 + %s5508_s22]]   ;;  %s5511_s4 = smov 8  }
   0x7   :  { %s5590_s29 = sld [smem:[%s6422_s0 + %s5509_s26]]   ;;  %s5512_s10 = smov 9  }
   0x8   :  { %s5595_s3 = sld [smem:[%s6422_s0 + %s5510_s30]]   ;;  %s5513_s15 = smov 10  }
   0x9   :  { %s5600_s8 = sld [smem:[%s6422_s0 + %s5511_s4]]   ;;  %s5514_s20 = smov 11  }
   0xa   :  { %s5605_s14 = sld [smem:[%s6422_s0 + %s5512_s10]]   ;;  %s5515_s26 = smov 12  }
   0xb   :  { %s5610_s19 = sld [smem:[%s6422_s0 + %s5513_s15]]   ;;  %s5516_s1 = smov 13  }
   0xc   :  { %s5615_s24 = sld [smem:[%s6422_s0 + %s5514_s20]]   ;;  %s5517_s7 = smov 14  }
   0xd   :  { %s5620_s30 = sld [smem:[%s6422_s0 + %s5515_s26]]   ;;  %s5518_s15 = smov 15  }
   0xe   :  { %s5625_s6 = sld [smem:[%s6422_s0 + %s5516_s1]]   ;;  %s5519_s22 = smov 16  }
   0xf   :  { %s5630_s12 = sld [smem:[%s6422_s0 + %s5517_s7]]   ;;  %s5520_s28 = smov 17  }
  0x10   :  { %s5635_s20 = sld [smem:[%s6422_s0 + %s5518_s15]]   ;;  %s5521_s7 = smov 18  }
  0x11   :  { %s5640_s27 = sld [smem:[%s6422_s0 + %s5519_s22]]   ;;  %s5522_s15 = smov 19  }
  0x12   :  { %s5645_s4 = sld [smem:[%s6422_s0 + %s5520_s28]]   ;;  %s5523_s22 = smov 20  }
  0x13   :  { %s5524_s28 = smov 21  }
  0x15   :  { %6432 = sst [smem:[#allocation8_spill]] %s5630_s12 }
  0x16   :  { %6433 = sst [smem:[#allocation9_spill]] %s5635_s20 }
  0x17   :  { %6434 = sst [smem:[#allocation10_spill]] %s5640_s27 }
  0x18   :  { %6435 = sst [smem:[#allocation11_spill]] %s5645_s4 }
  0x19   :  { %s5650_s12 = sld [smem:[%s6422_s0 + %s5521_s7]]   ;;  %s5525_s7 = smov 22  }
  0x1a   :  { %s5655_s20 = sld [smem:[%s6422_s0 + %s5522_s15]]   ;;  %s5526_s15 = smov 23  }
  0x1b   :  { %s5660_s27 = sld [smem:[%s6422_s0 + %s5523_s22]]   ;;  %s5527_s22 = smov 24  }
  0x1c   :  { %s5665_s4 = sld [smem:[%s6422_s0 + %s5524_s28]]   ;;  %s5528_s28 = smov 25  }
  0x1f   :  { %6436 = sst [smem:[#allocation12_spill]] %s5650_s12 }
  0x20   :  { %6437 = sst [smem:[#allocation13_spill]] %s5655_s20 }
  0x21   :  { %6438 = sst [smem:[#allocation14_spill]] %s5660_s27 }
  0x22   :  { %6439 = sst [smem:[#allocation15_spill]] %s5665_s4 }
  0x23   :  { %s5670_s12 = sld [smem:[%s6422_s0 + %s5525_s7]]   ;;  %s5529_s7 = smov 26  }
  0x24   :  { %s5675_s20 = sld [smem:[%s6422_s0 + %s5526_s15]]   ;;  %s5530_s15 = smov 27  }
  0x25   :  { %s5680_s27 = sld [smem:[%s6422_s0 + %s5527_s22]]   ;;  %s5531_s22 = smov 28  }
  0x26   :  { %s5685_s4 = sld [smem:[%s6422_s0 + %s5528_s28]]   ;;  %s5532_s28 = smov 29  }
  0x29   :  { %6440 = sst [smem:[#allocation16_spill]] %s5670_s12 }
  0x2a   :  { %6441 = sst [smem:[#allocation17_spill]] %s5675_s20 }
  0x2b   :  { %6442 = sst [smem:[#allocation18_spill]] %s5680_s27 }
  0x2c   :  { %6443 = sst [smem:[#allocation19_spill]] %s5685_s4 }
  0x2d   :  { %s5690_s12 = sld [smem:[%s6422_s0 + %s5529_s7]]   ;;  %s5533_s7 = smov 30  }
  0x2e   :  { %s5695_s20 = sld [smem:[%s6422_s0 + %s5530_s15]]   ;;  %s5534_s15 = smov 31  }
  0x2f   :  { %s5700_s27 = sld [smem:[%s6422_s0 + %s5531_s22]]   ;;  %s5535_s22 = smov 32  }
  0x30   :  { %s5705_s4 = sld [smem:[%s6422_s0 + %s5532_s28]]   ;;  %s5536_s28 = smov 33  }
  0x33   :  { %6444 = sst [smem:[#allocation20_spill]] %s5690_s12 }
  0x34   :  { %6445 = sst [smem:[#allocation21_spill]] %s5695_s20 }
  0x35   :  { %6446 = sst [smem:[#allocation22_spill]] %s5700_s27 }
  0x36   :  { %6447 = sst [smem:[#allocation23_spill]] %s5705_s4 }
  0x37   :  { %s5710_s12 = sld [smem:[%s6422_s0 + %s5533_s7]]   ;;  %s5537_s7 = smov 34  }
  0x38   :  { %s5715_s20 = sld [smem:[%s6422_s0 + %s5534_s15]]   ;;  %s5538_s15 = smov 35  }
  0x39   :  { %s5720_s27 = sld [smem:[%s6422_s0 + %s5535_s22]]   ;;  %s5539_s22 = smov 36  }
  0x3a   :  { %s5725_s4 = sld [smem:[%s6422_s0 + %s5536_s28]]   ;;  %s5540_s28 = smov 37  }
  0x3d   :  { %6448 = sst [smem:[#allocation24_spill]] %s5710_s12 }
  0x3e   :  { %6449 = sst [smem:[#allocation25_spill]] %s5715_s20 }
  0x3f   :  { %6450 = sst [smem:[#allocation26_spill]] %s5720_s27 }
  0x40   :  { %6451 = sst [smem:[#allocation27_spill]] %s5725_s4 }
  0x41   :  { %s5730_s12 = sld [smem:[%s6422_s0 + %s5537_s7]]   ;;  %s5541_s7 = smov 38  }
  0x42   :  { %s5735_s20 = sld [smem:[%s6422_s0 + %s5538_s15]]   ;;  %s5542_s15 = smov 39  }
  0x43   :  { %s5740_s27 = sld [smem:[%s6422_s0 + %s5539_s22]]   ;;  %s5543_s22 = smov 40  }
  0x44   :  { %s5745_s4 = sld [smem:[%s6422_s0 + %s5540_s28]]   ;;  %s5544_s28 = smov 41  }
  0x47   :  { %6452 = sst [smem:[#allocation28_spill]] %s5730_s12 }
  0x48   :  { %6453 = sst [smem:[#allocation29_spill]] %s5735_s20 }
  0x49   :  { %6454 = sst [smem:[#allocation30_spill]] %s5740_s27 }
  0x4a   :  { %6455 = sst [smem:[#allocation31_spill]] %s5745_s4 }
  0x4b   :  { %s5750_s12 = sld [smem:[%s6422_s0 + %s5541_s7]]   ;;  %s5545_s7 = smov 42  }
  0x4c   :  { %s5755_s20 = sld [smem:[%s6422_s0 + %s5542_s15]]  }
  0x4d   :  { %s5760_s27 = sld [smem:[%s6422_s0 + %s5543_s22]]  }
  0x4e   :  { %s5765_s4 = sld [smem:[%s6422_s0 + %s5544_s28]]  }
  0x51   :  { %6456 = sst [smem:[#allocation32_spill]] %s5750_s12 }
  0x52   :  { %s5770_s12 = sld [smem:[%s6422_s0 + %s5545_s7]]  }
  0x53   :  { %91 = vsyncpa [#allocation3], 0  ;;  %v215_v0 = vld [vmem:[%s5565_s9 + $0x80] sm:$0xff]  ;;  %v216_v1 = vld [vmem:[%s5565_s9 + $0x88] sm:$0xff] }
  0x54   :  { %v199_v2 = vld [vmem:[%s5565_s9] sm:$0xff]  ;;  %v4964_v3 = vpack.c.bf16 %v216_v1, %v215_v0  ;;  %v200_v4 = vld [vmem:[%s5565_s9 + $0x8] sm:$0xff]  ;;  %v217_v11 = vld [vmem:[%s5565_s9 + $0x90] sm:$0xff] }
  0x55   :  { %v247_v5 = vld [vmem:[%s5565_s9 + $0x180] sm:$0xff]  ;;  %v248_v6 = vld [vmem:[%s5565_s9 + $0x188] sm:$0xff]  ;;  %v4966_v7 = vpack.c.bf16 %v200_v4, %v199_v2  ;;  %v218_v13 = vld [vmem:[%s5565_s9 + $0x98] sm:$0xff] }
  0x56   :  { %v4996_v8 = vpack.c.bf16 %v248_v6, %v247_v5  ;;  %v231_v9 = vld [vmem:[%s5565_s9 + $0x100] sm:$0xff]  ;;  %v232_v10 = vld [vmem:[%s5565_s9 + $0x108] sm:$0xff]  ;;  %4965 = vmatprep.subr.bf16.mxu0 %v4964_v3  ;;  %v201_v14 = vld [vmem:[%s5565_s9 + $0x10] sm:$0xff]  ;;  %v4968_v16 = vpack.c.bf16 %v218_v13, %v217_v11 }
  0x57   :  { %v4998_v12 = vpack.c.bf16 %v232_v10, %v231_v9  ;;  %v202_v15 = vld [vmem:[%s5565_s9 + $0x18] sm:$0xff]  ;;  %4967 = vmatpush3.bf16.msra.mxu0 %v4966_v7  ;;  %v249_v18 = vld [vmem:[%s5565_s9 + $0x190] sm:$0xff]  ;;  %v219_v23 = vld [vmem:[%s5565_s9 + $0xa0] sm:$0xff] }
  0x58   :  { %4997 = vmatprep.subr.bf16.mxu1 %v4996_v8  ;;  %v4970_v17 = vpack.c.bf16 %v202_v15, %v201_v14  ;;  %v250_v19 = vld [vmem:[%s5565_s9 + $0x198] sm:$0xff]  ;;  %v233_v20 = vld [vmem:[%s5565_s9 + $0x110] sm:$0xff]  ;;  %v220_v24 = vld [vmem:[%s5565_s9 + $0xa8] sm:$0xff]  ;;  %4969 = vmatprep.subr.bf16.mxu0 %v4968_v16 }
  0x59   :  { %4999 = vmatpush3.bf16.msra.mxu1 %v4998_v12  ;;  %v5000_v21 = vpack.c.bf16 %v250_v19, %v249_v18  ;;  %v234_v22 = vld [vmem:[%s5565_s9 + $0x118] sm:$0xff]  ;;  %v4972_v26 = vpack.c.bf16 %v220_v24, %v219_v23  ;;  %v203_v27 = vld [vmem:[%s5565_s9 + $0x20] sm:$0xff]  ;;  %v204_v28 = vld [vmem:[%s5565_s9 + $0x28] sm:$0xff] }
  0x5a   :  { %v5002_v25 = vpack.c.bf16 %v234_v22, %v233_v20  ;;  %v251_v29 = vld [vmem:[%s5565_s9 + $0x1a0] sm:$0xff]  ;;  %v252_v30 = vld [vmem:[%s5565_s9 + $0x1a8] sm:$0xff]  ;;  %v4974_v33 = vpack.c.bf16 %v204_v28, %v203_v27  ;;  %v221_v35 = vld [vmem:[%s5565_s9 + $0xb0] sm:$0xff] }
  0x5b   :  { %5001 = vmatprep.subr.bf16.mxu1 %v5000_v21  ;;  %v235_v31 = vld [vmem:[%s5565_s9 + $0x120] sm:$0xff]  ;;  %v236_v32 = vld [vmem:[%s5565_s9 + $0x128] sm:$0xff]  ;;  %4971 = vmatpush3.bf16.msra.mxu0 %v4970_v17  ;;  %v5004_v34 = vpack.c.bf16 %v252_v30, %v251_v29  ;;  %v222_v36 = vld [vmem:[%s5565_s9 + $0xb8] sm:$0xff] }
  0x5c   :  { %v205_v37 = vld [vmem:[%s5565_s9 + $0x30] sm:$0xff]  ;;  %4973 = vmatprep.subr.bf16.mxu0 %v4972_v26  ;;  %v5006_v38 = vpack.c.bf16 %v236_v32, %v235_v31  ;;  %v4976_v39 = vpack.c.bf16 %v222_v36, %v221_v35  ;;  %v206_v40 = vld [vmem:[%s5565_s9 + $0x38] sm:$0xff]  ;;  %v223_v46 = vld [vmem:[%s5565_s9 + $0xc0] sm:$0xff] }
  0x5d   :  { %5003 = vmatpush3.bf16.msra.mxu1 %v5002_v25  ;;  %v253_v41 = vld [vmem:[%s5565_s9 + $0x1b0] sm:$0xff]  ;;  %v254_v42 = vld [vmem:[%s5565_s9 + $0x1b8] sm:$0xff]  ;;  %v224_v47 = vld [vmem:[%s5565_s9 + $0xc8] sm:$0xff]  ;;  %v4978_v48 = vpack.c.bf16 %v206_v40, %v205_v37 }
  0x5e   :  { %5005 = vmatprep.subr.bf16.mxu1 %v5004_v34  ;;  %v5008_v43 = vpack.c.bf16 %v254_v42, %v253_v41  ;;  %v237_v44 = vld [vmem:[%s5565_s9 + $0x130] sm:$0xff]  ;;  %v238_v45 = vld [vmem:[%s5565_s9 + $0x138] sm:$0xff]  ;;  %v255_v49 = vld [vmem:[%s5565_s9 + $0x1c0] sm:$0xff]  ;;  %v4980_v52 = vpack.c.bf16 %v224_v47, %v223_v46 }
  0x5f   :  { %4975 = vmatpush3.bf16.msra.mxu0 %v4974_v33  ;;  %v256_v50 = vld [vmem:[%s5565_s9 + $0x1c8] sm:$0xff]  ;;  %v5010_v51 = vpack.c.bf16 %v238_v45, %v237_v44  ;;  %v207_v53 = vld [vmem:[%s5565_s9 + $0x40] sm:$0xff]  ;;  %v225_v58 = vld [vmem:[%s5565_s9 + $0xd0] sm:$0xff] }
  0x60   :  { %4977 = vmatprep.subr.bf16.mxu0 %v4976_v39  ;;  %v208_v54 = vld [vmem:[%s5565_s9 + $0x48] sm:$0xff]  ;;  %v239_v55 = vld [vmem:[%s5565_s9 + $0x140] sm:$0xff]  ;;  %v5012_v56 = vpack.c.bf16 %v256_v50, %v255_v49  ;;  %v226_v59 = vld [vmem:[%s5565_s9 + $0xd8] sm:$0xff] }
  0x61   :  { %5007 = vmatpush3.bf16.msra.mxu1 %v5006_v38  ;;  %v240_v57 = vld [vmem:[%s5565_s9 + $0x148] sm:$0xff]  ;;  %v257_v60 = vld [vmem:[%s5565_s9 + $0x1d0] sm:$0xff]  ;;  %v258_v61 = vld [vmem:[%s5565_s9 + $0x1d8] sm:$0xff]  ;;  %v4982_v62 = vpack.c.bf16 %v208_v54, %v207_v53  ;;  %v4984_v0 = vpack.c.bf16 %v226_v59, %v225_v58 }
  0x62   :  { %5009 = vmatprep.subr.bf16.mxu1 %v5008_v43  ;;  %v5014_v63 = vpack.c.bf16 %v240_v57, %v239_v55  ;;  %v209_v1 = vld [vmem:[%s5565_s9 + $0x50] sm:$0xff]  ;;  %v210_v2 = vld [vmem:[%s5565_s9 + $0x58] sm:$0xff]  ;;  %v5016_v4 = vpack.c.bf16 %v258_v61, %v257_v60  ;;  %v227_v6 = vld [vmem:[%s5565_s9 + $0xe0] sm:$0xff] }
  0x63   :  { %4979 = vmatpush3.bf16.msra.mxu0 %v4978_v48  ;;  %v241_v3 = vld [vmem:[%s5565_s9 + $0x150] sm:$0xff]  ;;  %v242_v5 = vld [vmem:[%s5565_s9 + $0x158] sm:$0xff]  ;;  %v228_v7 = vld [vmem:[%s5565_s9 + $0xe8] sm:$0xff]  ;;  %v4986_v10 = vpack.c.bf16 %v210_v2, %v209_v1 }
  0x64   :  { %4981 = vmatprep.subr.bf16.mxu0 %v4980_v52  ;;  %v259_v8 = vld [vmem:[%s5565_s9 + $0x1e0] sm:$0xff]  ;;  %v260_v9 = vld [vmem:[%s5565_s9 + $0x1e8] sm:$0xff]  ;;  %v5018_v13 = vpack.c.bf16 %v242_v5, %v241_v3  ;;  %v4988_v14 = vpack.c.bf16 %v228_v7, %v227_v6  ;;  %v229_v19 = vld [vmem:[%s5565_s9 + $0xf0] sm:$0xff] }
  0x65   :  { %5011 = vmatpush3.bf16.msra.mxu1 %v5010_v51  ;;  %v211_v11 = vld [vmem:[%s5565_s9 + $0x60] sm:$0xff]  ;;  %v176_v12 = vld [vmem:[%s5560_s5 + $0x8] sm:$0xff]  ;;  %v5020_v18 = vpack.c.bf16 %v260_v9, %v259_v8  ;;  %v230_v20 = vld [vmem:[%s5565_s9 + $0xf8] sm:$0xff] }
  0x66   :  { %5013 = vmatprep.subr.bf16.mxu1 %v5012_v56  ;;  %v212_v15 = vld [vmem:[%s5565_s9 + $0x68] sm:$0xff]  ;;  %v243_v16 = vld [vmem:[%s5565_s9 + $0x160] sm:$0xff]  ;;  %366 = vmatprep.mubr.f32.mxu0 %v176_v12  ;;  %v178_v21 = vld [vmem:[%s5560_s5 + $0x18] sm:$0xff]  ;;  %v4992_v26 = vpack.c.bf16 %v230_v20, %v229_v19 }
  0x67   :  { %4983 = vmatpush3.bf16.msra.mxu0 %v4982_v62  ;;  %v244_v17 = vld [vmem:[%s5565_s9 + $0x168] sm:$0xff]  ;;  %v261_v22 = vld [vmem:[%s5565_s9 + $0x1f0] sm:$0xff]  ;;  %v262_v23 = vld [vmem:[%s5565_s9 + $0x1f8] sm:$0xff]  ;;  %451 = vmatprep.mubr.f32.mxu1 %v178_v21  ;;  %v4990_v24 = vpack.c.bf16 %v212_v15, %v211_v11 }
  0x68   :  { %4985 = vmatprep.subr.bf16.mxu0 %v4984_v0  ;;  %v5022_v25 = vpack.c.bf16 %v244_v17, %v243_v16  ;;  %v213_v27 = vld [vmem:[%s5565_s9 + $0x70] sm:$0xff]  ;;  %v214_v28 = vld [vmem:[%s5565_s9 + $0x78] sm:$0xff]  ;;  %v5024_v30 = vpack.c.bf16 %v262_v23, %v261_v22  ;;  %v279_v32 = vld [vmem:[%s5565_s9 + $0x280] sm:$0xff] }
  0x69   :  { %5015 = vmatpush3.bf16.msra.mxu1 %v5014_v63  ;;  %v245_v29 = vld [vmem:[%s5565_s9 + $0x170] sm:$0xff]  ;;  %v246_v31 = vld [vmem:[%s5565_s9 + $0x178] sm:$0xff]  ;;  %v280_v33 = vld [vmem:[%s5565_s9 + $0x288] sm:$0xff]  ;;  %v4994_v34 = vpack.c.bf16 %v214_v28, %v213_v27 }
  0x6a   :  { %5017 = vmatprep.subr.bf16.mxu1 %v5016_v4  ;;  %v5026_v35 = vpack.c.bf16 %v246_v31, %v245_v29  ;;  %v5028_v36 = vpack.c.bf16 %v280_v33, %v279_v32  ;;  %v263_v37 = vld [vmem:[%s5565_s9 + $0x200] sm:$0xff]  ;;  %v264_v38 = vld [vmem:[%s5565_s9 + $0x208] sm:$0xff]  ;;  %v281_v39 = vld [vmem:[%s5565_s9 + $0x290] sm:$0xff] }
  0x6b   :  { %4987 = vmatpush3.bf16.msra.mxu0 %v4986_v10  ;;  %v282_v40 = vld [vmem:[%s5565_s9 + $0x298] sm:$0xff]  ;;  %v175_v41 = vld [vmem:[%s5560_s5] sm:$0xff]  ;;  %v5030_v42 = vpack.c.bf16 %v264_v38, %v263_v37  ;;  %v177_v43 = vld [vmem:[%s5560_s5 + $0x10] sm:$0xff] }
  0x6c   :  { %4989 = vmatprep.subr.bf16.mxu0 %v4988_v14  ;;  %v5032_v44 = vpack.c.bf16 %v282_v40, %v281_v39  ;;  %v265_v45 = vld [vmem:[%s5565_s9 + $0x210] sm:$0xff]  ;;  %v266_v46 = vld [vmem:[%s5565_s9 + $0x218] sm:$0xff]  ;;  %v283_v47 = vld [vmem:[%s5565_s9 + $0x2a0] sm:$0xff] }
  0x6d   :  { %5019 = vmatpush3.bf16.msra.mxu1 %v5018_v13  ;;  %v284_v48 = vld [vmem:[%s5565_s9 + $0x2a8] sm:$0xff]  ;;  %v182_v49 = vld [vmem:[%s5560_s5 + $0x38] sm:$0xff]  ;;  %v5034_v51 = vpack.c.bf16 %v266_v46, %v265_v45  ;;  %v181_v52 = vld [vmem:[%s5560_s5 + $0x30] sm:$0xff] }
  0x6e   :  { %5021 = vmatprep.subr.bf16.mxu1 %v5020_v18  ;;  %v184_v50 = vld [vmem:[%s5560_s5 + $0x48] sm:$0xff]  ;;  %v5036_v53 = vpack.c.bf16 %v284_v48, %v283_v47  ;;  %v267_v54 = vld [vmem:[%s5565_s9 + $0x220] sm:$0xff]  ;;  %v285_v57 = vld [vmem:[%s5565_s9 + $0x2b0] sm:$0xff] }
  0x6f   :  { %4991 = vmatpush3.bf16.msra.mxu0 %v4990_v24  ;;  %v268_v55 = vld [vmem:[%s5565_s9 + $0x228] sm:$0xff]  ;;  %v183_v56 = vld [vmem:[%s5560_s5 + $0x40] sm:$0xff]  ;;  %v286_v58 = vld [vmem:[%s5565_s9 + $0x2b8] sm:$0xff] }
  0x70   :  { %4993 = vmatprep.subr.bf16.mxu0 %v4992_v26  ;;  %v188_v59 = vld [vmem:[%s5560_s5 + $0x68] sm:$0xff]  ;;  %v190_v60 = vld [vmem:[%s5560_s5 + $0x78] sm:$0xff]  ;;  %v5038_v61 = vpack.c.bf16 %v268_v55, %v267_v54  ;;  %v187_v62 = vld [vmem:[%s5560_s5 + $0x60] sm:$0xff] }
  0x71   :  { %5023 = vmatpush3.bf16.msra.mxu1 %v5022_v25 }
  0x72   :  { %5025 = vmatprep.subr.bf16.mxu1 %v5024_v30 }
  0x73   :  { %4995 = vmatpush3.bf16.msra.mxu0 %v4994_v34 }
  0x74   :  { %5029 = vmatprep.subr.bf16.mxu0 %v5028_v36 }
  0x75   :  { %5027 = vmatpush3.bf16.msra.mxu1 %v5026_v35 }
  0x76   :  { %367 = vmatmul.mubr.f32.vlgmr.msra.gmra.mrb[0].mxu0 %v175_v41 }
  0x77   :  { %5031 = vmatpush3.bf16.msra.mxu0 %v5030_v42  ;;  %371 = vmatprep.mubr.f32.mxu0 %v182_v49 }
  0x78   :  { %452 = vmatmul.mubr.f32.vlgmr.msra.gmra.mrb[0].mxu1 %v177_v43  ;;  %5033 = vmatprep.subr.bf16.mxu0 %v5032_v44 }
  0x79   :  { %456 = vmatprep.mubr.f32.mxu1 %v184_v50 }
  0x7a   :  { %372 = vmatmul.mubr.f32.gmra.mrb[2].mxu0 %v181_v52 }
  0x7b   :  { %5035 = vmatpush3.bf16.msra.mxu0 %v5034_v51 }
  0x7c   :  { %457 = vmatmul.mubr.f32.gmra.mrb[2].mxu1 %v183_v56 }
  0x7d   :  { %92 = vsyncpa [#allocation5], 0  ;;  %5037 = vmatprep.subr.bf16.mxu0 %v5036_v53  ;;  %v5040_v63 = vpack.c.bf16 %v286_v58, %v285_v57  ;;  %v269_v0 = vld [vmem:[%s5565_s9 + $0x230] sm:$0xff]  ;;  %v270_v1 = vld [vmem:[%s5565_s9 + $0x238] sm:$0xff]  ;;  %376 = vmatprep.mubr.f32.mxu0 %v188_v59  ;;  %vm567_vm0 = vcmask 130048   ;;  %vm676_vm1 = vcmask 261120  }
  0x7e   :  { %v189_v2 = vld [vmem:[%s5560_s5 + $0x70] sm:$0xff]  ;;  %v287_v3 = vld [vmem:[%s5565_s9 + $0x2c0] sm:$0xff]  ;;  %v288_v4 = vld [vmem:[%s5565_s9 + $0x2c8] sm:$0xff]  ;;  %461 = vmatprep.mubr.f32.mxu1 %v190_v60  ;;  %377 = vmatmul.mubr.f32.gmra.mrb[4].mxu0 %v187_v62  ;;  %v5042_v7 = vpack.c.bf16 %v270_v1, %v269_v0  ;;  %s5546_s0 = smov 112   ;;  %vm2092_vm3 = vcmask 523264   ;;  %s6472_s15 = sld [smem:[#allocation21_spill]] }
  0x7f   :  { %v194_v5 = vld [vmem:[%s5560_s5 + $0x98] sm:$0xff]  ;;  %v196_v6 = vld [vmem:[%s5560_s5 + $0xa8] sm:$0xff]  ;;  %5039 = vmatpush3.bf16.msra.mxu0 %v5038_v61  ;;  %v193_v8 = vld [vmem:[%s5560_s5 + $0x90] sm:$0xff]  ;;  %v5044_v9 = vpack.c.bf16 %v288_v4, %v287_v3  ;;  %s6473_s16 = sld [smem:[#allocation22_spill]]  ;;  %s6474_s18 = sld [smem:[#allocation23_spill]] }
  0x80   :  { %462 = vmatmul.mubr.f32.gmra.mrb[4].mxu1 %v189_v2  ;;  %5041 = vmatprep.subr.bf16.mxu0 %v5040_v63  ;;  %v271_v10 = vld [vmem:[%s5565_s9 + $0x240] sm:$0xff]  ;;  %v272_v11 = vld [vmem:[%s5565_s9 + $0x248] sm:$0xff]  ;;  %v289_v13 = vld [vmem:[%s5565_s9 + $0x2d0] sm:$0xff]  ;;  %s6475_s22 = sld [smem:[#allocation24_spill]]  ;;  %s6476_s23 = sld [smem:[#allocation25_spill]] }
  0x81   :  { %381 = vmatprep.mubr.f32.mxu0 %v194_v5  ;;  %v195_v12 = vld [vmem:[%s5560_s5 + $0xa0] sm:$0xff]  ;;  %v290_v14 = vld [vmem:[%s5565_s9 + $0x2d8] sm:$0xff]  ;;  %466 = vmatprep.mubr.f32.mxu1 %v196_v6  ;;  %v180_v15 = vld [vmem:[%s5560_s5 + $0x28] sm:$0xff]  ;;  %v5046_v16 = vpack.c.bf16 %v272_v11, %v271_v10  ;;  %s6477_s26 = sld [smem:[#allocation27_spill]]  ;;  %s6478_s28 = sld [smem:[#allocation26_spill]] }
  0x82   :  { %382 = vmatmul.mubr.f32.gmra.mrb[6].mxu0 %v193_v8  ;;  %v5048_v17 = vpack.c.bf16 %v290_v14, %v289_v13  ;;  %v273_v18 = vld [vmem:[%s5565_s9 + $0x250] sm:$0xff]  ;;  %v274_v19 = vld [vmem:[%s5565_s9 + $0x258] sm:$0xff]  ;;  %v291_v20 = vld [vmem:[%s5565_s9 + $0x2e0] sm:$0xff]  ;;  %s6479_s1 = sld [smem:[#allocation28_spill]]  ;;  %s6480_s2 = sld [smem:[#allocation31_spill]] }
  0x83   :  { %5043 = vmatpush3.bf16.msra.mxu0 %v5042_v7  ;;  %536 = vmatprep.mubr.f32.mxu0 %v180_v15  ;;  %v292_v21 = vld [vmem:[%s5565_s9 + $0x2e8] sm:$0xff]  ;;  %v5050_v22 = vpack.c.bf16 %v274_v19, %v273_v18  ;;  %v275_v24 = vld [vmem:[%s5565_s9 + $0x260] sm:$0xff]  ;;  %v293_v26 = vld [vmem:[%s5565_s9 + $0x2f0] sm:$0xff]  ;;  %s6481_s7 = sld [smem:[#allocation29_spill]]  ;;  %s6482_s10 = sld [smem:[#allocation30_spill]] }
  0x84   :  { %467 = vmatmul.mubr.f32.gmra.mrb[6].mxu1 %v195_v12  ;;  %5045 = vmatprep.subr.bf16.mxu0 %v5044_v9  ;;  %v5052_v23 = vpack.c.bf16 %v292_v21, %v291_v20  ;;  %v276_v25 = vld [vmem:[%s5565_s9 + $0x268] sm:$0xff]  ;;  %v294_v27 = vld [vmem:[%s5565_s9 + $0x2f8] sm:$0xff]  ;;  %v277_v30 = vld [vmem:[%s5565_s9 + $0x270] sm:$0xff]  ;;  %s6483_s11 = sld [smem:[#allocation32_spill]] }
  0x85   :  { %v5054_v28 = vpack.c.bf16 %v276_v25, %v275_v24  ;;  %v5056_v29 = vpack.c.bf16 %v294_v27, %v293_v26  ;;  %v278_v31 = vld [vmem:[%s5565_s9 + $0x278] sm:$0xff]  ;;  %v179_v33 = vld [vmem:[%s5560_s5 + $0x20] sm:$0xff]  ;;  %v185_v35 = vld [vmem:[%s5560_s5 + $0x50] sm:$0xff]  ;;  %s6459_s9 = sld [smem:[#allocation8_spill]] }
  0x86   :  { %v5058_v32 = vpack.c.bf16 %v278_v31, %v277_v30  ;;  %v186_v34 = vld [vmem:[%s5560_s5 + $0x58] sm:$0xff]  ;;  %v192_v36 = vld [vmem:[%s5560_s5 + $0x88] sm:$0xff]  ;;  %v191_v37 = vld [vmem:[%s5560_s5 + $0x80] sm:$0xff] }
  0x87   :  { %5047 = vmatpush3.bf16.msra.mxu0 %v5046_v16  ;;  %v198_v38 = vld [vmem:[%s5560_s5 + $0xb8] sm:$0xff]  ;;  %v197_v39 = vld [vmem:[%s5560_s5 + $0xb0] sm:$0xff]  ;;  %v561_v40 = vld [vmem:[%s5575_s17] sm:$0xff]  ;;  %s5547_s5 = smov 16  }
  0x88   :  { %5049 = vmatprep.subr.bf16.mxu0 %v5048_v17  ;;  %v562_v41 = vld [vmem:[%s5575_s17 + $0x8] sm:$0xff]  ;;  %v665_v43 = vld [vmem:[%s5585_s25] sm:$0xff]  ;;  %vm5957_vm2 = vmpackc.low %vm567_vm0, %vm567_vm0  ;;  %s6461_s17 = sld [smem:[#allocation11_spill]] }
  0x89   :  { %v5060_v42 = vpack.c.bf16 %v562_v41, %v561_v40  ;;  %v666_v44 = vld [vmem:[%s5585_s25 + $0x8] sm:$0xff]  ;;  %v4177_v47 = vld [vmem:[%s5570_s13] ss:$0 sm:$0xff]  ;;  %s6460_s13 = sld [smem:[#allocation9_spill]] }
  0x8a   :  { %v5064_v45 = vpack.c.bf16 %v666_v44, %v665_v43  ;;  %v563_v41 = vld [vmem:[%s5580_s21] sm:$0xff]  ;;  %v776_v44 = vld [vmem:[%s5595_s3 + $0x10] sm:$0xff] }
  0x8b   :  { %5051 = vmatpush3.bf16.msra.mxu0 %v5050_v22  ;;  %5061 = vmatprep.subr.bf16.mxu1 %v5060_v42 }
  0x8c   :  { %5053 = vmatprep.subr.bf16.mxu0 %v5052_v23  ;;  %5063 = vmatpush3.bf16.msra.mxu1 %v5060_v42  ;;  %v564_v42 = vld [vmem:[%s5580_s21 + $0x8] sm:$0xff] }
  0x8d   :  { %5065 = vmatprep.subr.bf16.mxu1 %v5064_v45 }
  0x8f   :  { %5055 = vmatpush3.bf16.msra.mxu0 %v5054_v28 }
  0x90   :  { %5057 = vmatprep.subr.bf16.mxu0 %v5056_v29 }
  0x93   :  { %5059 = vmatpush3.bf16.msra.mxu0 %v5058_v32 }
  0x96   :  { %537 = vmatmul.mubr.f32.vlgmr.msra.gmra.mrb[8].mxu0 %v179_v33 }
  0x97   :  { %541 = vmatprep.mubr.f32.mxu0 %v186_v34 }
  0x9a   :  { %542 = vmatmul.mubr.f32.gmra.mrb[10].mxu0 %v185_v35  ;;  %v667_v35 = vld [vmem:[%s5585_s25 + $0x10] sm:$0xff] }
  0x9b   :  { %546 = vmatprep.mubr.f32.mxu0 %v192_v36  ;;  %v668_v36 = vld [vmem:[%s5585_s25 + $0x18] sm:$0xff]  ;;  %s6463_s25 = sld [smem:[#allocation12_spill]] }
  0x9e   :  { %547 = vmatmul.mubr.f32.gmra.mrb[12].mxu0 %v191_v37  ;;  %v5068_v37 = vpack.c.bf16 %v668_v36, %v667_v35 }
  0x9f   :  { %551 = vmatprep.mubr.f32.mxu0 %v198_v38  ;;  %v774_v38 = vld [vmem:[%s5595_s3] sm:$0xff] }
  0xa2   :  { %552 = vmatmul.mubr.f32.gmra.mrb[14].mxu0 %v197_v39  ;;  %v775_v39 = vld [vmem:[%s5595_s3 + $0x8] sm:$0xff] }
  0xa3   :  { %v5072_v40 = vpack.c.bf16 %v775_v39, %v774_v38 }
 0x149   :  { %v4340_v46 = vpop.f32.mrb[0].mxu0 }
 0x14a   :  { %v4341_v48 = vpop.f32.mrb[1].mxu0 }
 0x14b   :  { %v4384_v49 = vpop.f32.mrb[0].mxu1  ;;  %v4342_v50 = vadd.f32 %v4341_v48, %v4340_v46 }
 0x14c   :  { %v4385_v51 = vpop.f32.mrb[1].mxu1 }
 0x14d   :  { %v4386_v52 = vadd.f32 %v4385_v51, %v4384_v49  ;;  %v369_v53 = vadd.f32 %v4342_v50, %v4177_v47  ;;  %v4343_v54 = vpop.f32.mrb[2].mxu0  ;;  %v870_v50 = vld [vmem:[%s5605_s14] sm:$0xff]  ;;  %v871_v51 = vld [vmem:[%s5605_s14 + $0x8] sm:$0xff] }
 0x14e   :  { %v4344_v55 = vpop.f32.mrb[3].mxu0 }
 0x14f   :  { %v4387_v56 = vpop.f32.mrb[2].mxu1  ;;  %v454_v57 = vadd.f32 %v4386_v52, %v369_v53  ;;  %v4345_v58 = vadd.f32 %v4344_v55, %v4343_v54  ;;  %v565_v52 = vld [vmem:[%s5580_s21 + $0x10] sm:$0xff]  ;;  %v5080_v53 = vpack.c.bf16 %v871_v51, %v870_v50  ;;  %v566_v54 = vld [vmem:[%s5580_s21 + $0x18] sm:$0xff]  ;;  %s6462_s21 = sld [smem:[#allocation10_spill]] }
 0x150   :  { %v4388_v59 = vpop.f32.mrb[3].mxu1 }
 0x151   :  { %v4389_v60 = vadd.f32 %v4388_v59, %v4387_v56  ;;  %v374_v61 = vadd.f32 %v4345_v58, %v4177_v47  ;;  %v4346_v62 = vpop.f32.mrb[4].mxu0  ;;  %v872_v59 = vld [vmem:[%s5605_s14 + $0x10] sm:$0xff] }
 0x152   :  { %v4347_v63 = vpop.f32.mrb[5].mxu0 }
 0x153   :  { %v4390_v0 = vpop.f32.mrb[4].mxu1  ;;  %v459_v1 = vadd.f32 %v4389_v60, %v374_v61  ;;  %v4348_v2 = vadd.f32 %v4347_v63, %v4346_v62  ;;  %v873_v60 = vld [vmem:[%s5605_s14 + $0x18] sm:$0xff]  ;;  %v4182_v62 = vld [vmem:[%s5590_s29] ss:$0 sm:$0xff]  ;;  %s6464_s29 = sld [smem:[#allocation15_spill]]  ;;  %s6467_s14 = sld [smem:[#allocation14_spill]] }
 0x154   :  { %v4391_v3 = vpop.f32.mrb[5].mxu1  ;;  %v5084_v61 = vpack.c.bf16 %v873_v60, %v872_v59 }
 0x155   :  { %v4392_v4 = vadd.f32 %v4391_v3, %v4390_v0  ;;  %v379_v5 = vadd.f32 %v4348_v2, %v4177_v47  ;;  %v4349_v6 = vpop.f32.mrb[6].mxu0 }
 0x156   :  { %v4350_v7 = vpop.f32.mrb[7].mxu0 }
 0x157   :  { %v4393_v8 = vpop.f32.mrb[6].mxu1  ;;  %v464_v9 = vadd.f32 %v4392_v4, %v379_v5  ;;  %v4351_v10 = vadd.f32 %v4350_v7, %v4349_v6  ;;  %v4187_v7 = vld [vmem:[%s5600_s8] ss:$0 sm:$0xff]  ;;  %s6466_s8 = sld [smem:[#allocation13_spill]] }
 0x158   :  { %v4394_v11 = vpop.f32.mrb[7].mxu1 }
 0x159   :  { %v4395_v12 = vadd.f32 %v4394_v11, %v4393_v8  ;;  %v384_v13 = vadd.f32 %v4351_v10, %v4177_v47 }
 0x15b   :  { %v469_v14 = vadd.f32 %v4395_v12, %v384_v13 }
 0x169   :  { %v4428_v15 = vpop.f32.mrb[8].mxu0 }
 0x16a   :  { %v4429_v16 = vpop.f32.mrb[9].mxu0 }
 0x16b   :  { %v4430_v17 = vadd.f32 %v4429_v16, %v4428_v15 }
 0x16d   :  { %v539_v18 = vadd.f32 %v4430_v17, %v454_v57  ;;  %v4431_v19 = vpop.f32.mrb[10].mxu0 }
 0x16e   :  { %v4432_v20 = vpop.f32.mrb[11].mxu0 }
 0x16f   :  { %v557_v21 = vmax.f32 %v539_v18, 0.0  ;;  %v4433_v22 = vadd.f32 %v4432_v20, %v4431_v19  ;;  %v4192_v19 = vld [vmem:[%s5610_s19] ss:$0 sm:$0xff]  ;;  %s6468_s19 = sld [smem:[#allocation17_spill]] }
 0x171   :  { %v544_v23 = vadd.f32 %v4433_v22, %v459_v1  ;;  %v4434_v24 = vpop.f32.mrb[12].mxu0  ;;  %4634 = vmatprep.mubr.msk.f32.mxu1 %vm567_vm0, %v557_v21 }
 0x172   :  { %v4435_v25 = vpop.f32.mrb[13].mxu0 }
 0x173   :  { %v558_v26 = vmax.f32 %v544_v23, 0.0  ;;  %v4436_v27 = vadd.f32 %v4435_v25, %v4434_v24 }
 0x175   :  { %v549_v28 = vadd.f32 %v4436_v27, %v464_v9  ;;  %v4437_v29 = vpop.f32.mrb[14].mxu0  ;;  %4635 = vmatmul.mubr.msk.f32.vlgmr.msra.gmra.mrb[8].mxu1 %vm567_vm0, %v558_v26 }
 0x176   :  { %v4438_v30 = vpop.f32.mrb[15].mxu0  ;;  %5067 = vmatpush3.bf16.msra.mxu1 %v5064_v45  ;;  %v777_v45 = vld [vmem:[%s5595_s3 + $0x18] sm:$0xff]  ;;  %s6465_s3 = sld [smem:[#allocation19_spill]] }
 0x177   :  { %v559_v31 = vmax.f32 %v549_v28, 0.0  ;;  %v4439_v32 = vadd.f32 %v4438_v30, %v4437_v29  ;;  %5069 = vmatprep.subr.bf16.mxu1 %v5068_v37  ;;  %v5076_v49 = vpack.c.bf16 %v777_v45, %v776_v44 }
 0x179   :  { %v554_v33 = vadd.f32 %v4439_v32, %v469_v14  ;;  %4637 = vmatprep.mubr.msk.f32.mxu1 %vm567_vm0, %v559_v31 }
 0x17a   :  { %5071 = vmatpush3.bf16.msra.mxu1 %v5068_v37 }
 0x17b   :  { %v560_v34 = vmax.f32 %v554_v33, 0.0  ;;  %5073 = vmatprep.subr.bf16.mxu1 %v5072_v40 }
 0x17d   :  { %4638 = vmatmul.mubr.msk.f32.gmra.mrb[10].mxu1 %vm567_vm0, %v560_v34 }
 0x248   :  { %v4636_v43 = vpop.f32.mrb[8].mxu1 }
 0x249   :  { %v646_v46 = vpop.f32.mrb[9].mxu1  ;;  %v5911_v48 = vadd.f32 %v4636_v43, %v564_v42 }
 0x24a   :  { %v5909_v47 = vadd.f32 %v646_v46, %v563_v41 }
 0x24c   :  { %4648 = vmatprep.mubr.msk.f32.mxu1 %vm676_vm1, %v5909_v47 }
 0x24d   :  { %4649 = vmatmul.mubr.msk.f32.vlgmr.msra.gmra.mrb[12].mxu1 %vm676_vm1, %v5911_v48 }
 0x24e   :  { %5075 = vmatpush3.bf16.msra.mxu1 %v5072_v40 }
 0x24f   :  { %5077 = vmatprep.subr.bf16.mxu1 %v5076_v49 }
 0x250   :  { %v4639_v55 = vpop.f32.mrb[10].mxu1 }
 0x251   :  { %v656_v56 = vpop.f32.mrb[11].mxu1  ;;  %v5923_v58 = vadd.f32 %v4639_v55, %v566_v54 }
 0x252   :  { %v5921_v57 = vadd.f32 %v656_v56, %v565_v52  ;;  %5079 = vmatpush3.bf16.msra.mxu1 %v5076_v49 }
 0x253   :  { %5081 = vmatprep.subr.bf16.mxu1 %v5080_v53 }
 0x254   :  { %4651 = vmatprep.mubr.msk.f32.mxu1 %vm676_vm1, %v5921_v57 }
 0x255   :  { %4652 = vmatmul.mubr.msk.f32.gmra.mrb[14].mxu1 %vm676_vm1, %v5923_v58 }
 0x256   :  { %4662 = vmatprep.mubr.msk.f32.mxu1 %vm676_vm1, %v5909_v47 }
 0x259   :  { %4663 = vmatmul.mubr.msk.f32.vlgmr.msra.gmra.mrb[16].mxu1 %vm676_vm1, %v5911_v48 }
 0x25a   :  { %4665 = vmatprep.mubr.msk.f32.mxu1 %vm676_vm1, %v5921_v57  ;;  %5083 = vmatpush3.bf16.msra.mxu1 %v5080_v53 }
 0x25b   :  { %5085 = vmatprep.subr.bf16.mxu1 %v5084_v61 }
 0x25d   :  { %4666 = vmatmul.mubr.msk.f32.gmra.mrb[18].mxu1 %vm676_vm1, %v5923_v58 }
 0x25e   :  { %5087 = vmatpush3.bf16.msra.mxu1 %v5084_v61  ;;  %4676 = vmatprep.mubr.msk.f32.mxu1 %vm676_vm1, %v5909_v47 }
 0x261   :  { %4677 = vmatmul.mubr.msk.f32.vlgmr.msra.gmra.mrb[20].mxu1 %vm676_vm1, %v5911_v48 }
 0x262   :  { %4679 = vmatprep.mubr.msk.f32.mxu1 %vm676_vm1, %v5921_v57 }
 0x265   :  { %4680 = vmatmul.mubr.msk.f32.gmra.mrb[22].mxu1 %vm676_vm1, %v5923_v58 }
 0x320   :  { %v4650_v63 = vpop.f32.mrb[12].mxu1 }
 0x321   :  { %v761_v0 = vadd.f32 %v4650_v63, %v4182_v62  ;;  %v755_v1 = vpop.f32.mrb[13].mxu1 }
 0x322   :  { %v756_v2 = vadd.f32 %v4182_v62, %v755_v1 }
 0x323   :  { %1160 = vrot.lane.b32.xlu1 %v761_v0, %s5546_s0 }
 0x324   :  { %4686 = vmatprep.mubr.msk.f32.mxu0 %vm567_vm0, %v756_v2 }
 0x328   :  { %v4653_v3 = vpop.f32.mrb[14].mxu1 }
 0x329   :  { %v5950_v4 = vadd.f32 %v4653_v3, %v4182_v62  ;;  %v765_v5 = vpop.f32.mrb[15].mxu1 }
 0x32a   :  { %v5952_v6 = vadd.f32 %v4182_v62, %v765_v5 }
 0x32c   :  { %v4664_v8 = vpop.f32.mrb[16].mxu1 }
 0x32d   :  { %v857_v9 = vadd.f32 %v4664_v8, %v4187_v7  ;;  %v851_v10 = vpop.f32.mrb[17].mxu1 }
 0x32e   :  { %v852_v11 = vadd.f32 %v4187_v7, %v851_v10 }
 0x330   :  { %v5088_v13 = vpack.c.bf16 %v857_v9, %v852_v11  ;;  %v4667_v14 = vpop.f32.mrb[18].mxu1  ;;  %v5320_v15 = vpack.i.bf16 %v857_v9, %v852_v11 }
 0x331   :  { %v5961_v16 = vadd.f32 %v4667_v14, %v4187_v7  ;;  %v861_v17 = vpop.f32.mrb[19].mxu1 }
 0x332   :  { %v5963_v18 = vadd.f32 %v4187_v7, %v861_v17  ;;  %5321 = vrot.lane.b32.xlu0 %v5320_v15, %s5546_s0  ;;  %5090 = vmatprep.subr.msk.bf16.mxu0 %vm5957_vm2, %v5088_v13 }
 0x333   :  { %5093 = vmatpush3.bf16.xpose.msk.msra.mxu0 %vm5957_vm2, %v5088_v13 }
 0x334   :  { %v5330_v20 = vpack.i.bf16 %v5961_v16, %v5963_v18  ;;  %v5975_v21 = vpack.c.bf16 %v5961_v16, %v5963_v18  ;;  %v4678_v22 = vpop.f32.mrb[20].mxu1 }
 0x335   :  { %v5977_v23 = vadd.f32 %v4678_v22, %v4192_v19  ;;  %v947_v24 = vpop.f32.mrb[21].mxu1 }
 0x336   :  { %v5979_v25 = vadd.f32 %v4192_v19, %v947_v24  ;;  %1158 = vrot.lane.b32.xlu0 %v756_v2, %s5546_s0 }
 0x338   :  { %v5325_v26 = vpack.i.bf16 %v5977_v23, %v5979_v25  ;;  %v5094_v27 = vpack.c.bf16 %v5977_v23, %v5979_v25  ;;  %v4681_v28 = vpop.f32.mrb[22].mxu1 }
 0x339   :  { %v5986_v29 = vadd.f32 %v4681_v28, %v4192_v19  ;;  %v957_v30 = vpop.f32.mrb[23].mxu1 }
 0x33a   :  { %v5988_v31 = vadd.f32 %v4192_v19, %v957_v30  ;;  %4687 = vmatmul.mubr.msk.f32.vlgmr.msra.gmra.mrb[16].mxu0 %vm567_vm0, %v761_v0  ;;  %5095 = vmatprep.subr.bf16.mxu1 %v5094_v27 }
 0x33b   :  { %5097 = vmatpush3.bf16.msra.mxu1 %v5094_v27 }
 0x33c   :  { %v5335_v32 = vpack.i.bf16 %v5986_v29, %v5988_v31  ;;  %v5114_v33 = vpack.c.bf16 %v5986_v29, %v5988_v31 }
 0x395   :  { %v1161_v39 = vpop.permute.xlu1 %1160 }
 0x3a4   :  { %v5322_v34 = vpop.permute.xlu0 %5321 }
 0x3a5   :  { %v5324_v35 = vunpack.i.h.bf16 %v5322_v34  ;;  %v5323_v36 = vunpack.i.l.bf16 %v5322_v34 }
 0x3a7   :  { %v5098_v37 = vpack.c.bf16 %v5324_v35, %v5323_v36 }
 0x3a8   :  { %v1159_v38 = vpop.permute.xlu0 %1158 }
 0x3a9   :  { %5100 = vmatprep.subr.msk.bf16.mxu0 %vm5957_vm2, %v5098_v37  ;;  %4700 = vmatprep.mubr.msk.f32.mxu0 %vm567_vm0, %v1159_v38 }
 0x3aa   :  { %5103 = vmatpush3.bf16.xpose.msk.msra.mxu0 %vm5957_vm2, %v5098_v37 }
 0x3ab   :  { %5115 = vmatprep.subr.bf16.mxu0 %v5114_v33 }
 0x3b1   :  { %4701 = vmatmul.mubr.msk.f32.vlgmr.msra.gmra.mrb[18].mxu0 %vm567_vm0, %v1161_v39 }
 0x3b2   :  { %5117 = vmatpush3.bf16.msra.mxu0 %v5114_v33 }
 0x40d   :  { %v4688_v40 = vpop.f32.mrb[16].mxu0 }
 0x40e   :  { %v1054_v41 = vmul.f32 0.25, %v4688_v40  ;;  %v1044_v42 = vpop.f32.mrb[17].mxu0 }
 0x40f   :  { %v1053_v43 = vmul.f32 0.25, %v1044_v42 }
 0x410   :  { %v1058_v44 = vsel %vm567_vm0, %v1054_v41, -inf }
 0x411   :  { %1059 = vmax.xlane.f32.xlu0 %v1058_v44  ;;  %v1055_v45 = vsel %vm567_vm0, %v1053_v43, -inf }
 0x412   :  { %1056 = vmax.xlane.f32.xlu1 %v1055_v45 }
 0x484   :  { %v4702_v46 = vpop.f32.mrb[18].mxu0 }
 0x485   :  { %v1250_v49 = vmul.f32 0.25, %v4702_v46  ;;  %v1240_v50 = vpop.f32.mrb[19].mxu0 }
 0x486   :  { %v1249_v51 = vmul.f32 0.25, %v1240_v50 }
 0x487   :  { %v1254_v52 = vsel %vm567_vm0, %v1250_v49, -inf }
 0x488   :  { %1255 = vmax.xlane.f32.xlu1 %v1254_v52  ;;  %v1251_v53 = vsel %vm567_vm0, %v1249_v51, -inf }
 0x489   :  { %1252 = vmax.xlane.f32.xlu0 %v1251_v53 }
 0x49e   :  { %v1060_v54 = vpop.xlane.xlu0 %1059 }
 0x49f   :  { %v1062_v55 = vsub.f32 %v1054_v41, %v1060_v54  ;;  %v1057_v56 = vpop.xlane.xlu1 %1056 }
 0x4a0   :  { %v1061_v59 = vsub.f32 %v1053_v43, %v1057_v56 }
 0x4a1   :  { %v1065_v60 = vmul.f32 1.442695, %v1062_v55 }
 0x4a2   :  { %v1063_v61 = vmul.f32 1.442695, %v1061_v59 }
 0x4a3   :  { %5360 = vpow2.f32 %v1065_v60 }
 0x4a4   :  { %5362 = vpow2.f32 %v1063_v61 }
 0x4ad   :  { %v5361_v62 = vpop.eup %5360 }
 0x4ae   :  { %v5363_v63 = vpop.eup %5362  ;;  %v1070_v0 = vsel %vm567_vm0, %v5361_v62, 0.0 }
 0x4af   :  { %1071 = vadd.xlane.f32.xlu1 %v1070_v0  ;;  %v1067_v1 = vsel %vm567_vm0, %v5363_v63, 0.0 }
 0x4b0   :  { %1068 = vadd.xlane.f32.xlu0 %v1067_v1 }
 0x515   :  { %v1256_v2 = vpop.xlane.xlu1 %1255 }
 0x516   :  { %v1258_v3 = vsub.f32 %v1250_v49, %v1256_v2  ;;  %v1253_v5 = vpop.xlane.xlu0 %1252 }
 0x517   :  { %v1257_v7 = vsub.f32 %v1249_v51, %v1253_v5 }
 0x518   :  { %v1261_v8 = vmul.f32 1.442695, %v1258_v3 }
 0x519   :  { %v1259_v9 = vmul.f32 1.442695, %v1257_v7 }
 0x51a   :  { %5364 = vpow2.f32 %v1261_v8 }
 0x51b   :  { %5366 = vpow2.f32 %v1259_v9 }
 0x524   :  { %v5365_v10 = vpop.eup %5364 }
 0x525   :  { %v5367_v11 = vpop.eup %5366  ;;  %v1266_v13 = vsel %vm567_vm0, %v5365_v10, 0.0 }
 0x526   :  { %1267 = vadd.xlane.f32.xlu1 %v1266_v13  ;;  %v1263_v14 = vsel %vm567_vm0, %v5367_v11, 0.0 }
 0x527   :  { %1264 = vadd.xlane.f32.xlu0 %v1263_v14 }
 0x53c   :  { %v1072_v15 = vpop.xlane.xlu1 %1071 }
 0x53d   :  { %5368 = vrcp.f32 %v1072_v15  ;;  %5326 = vrot.lane.b32.xlu0 %v5325_v26, %s5546_s0  ;;  %v1069_v17 = vpop.xlane.xlu0 %1068 }
 0x53e   :  { %5370 = vrcp.f32 %v1069_v17 }
 0x541   :  { %1564 = vrot.lane.b32.xlu0 %v5952_v6, %s5546_s0 }
 0x545   :  { %1566 = vrot.lane.b32.xlu0 %v5950_v4, %s5546_s0 }
 0x547   :  { %v5369_v19 = vpop.eup %5368 }
 0x548   :  { %v5371_v22 = vpop.eup %5370  ;;  %v1076_v27 = vmul.f32 %v5369_v19, %v5361_v62 }
 0x549   :  { %v1075_v24 = vmul.f32 %v5371_v22, %v5363_v63 }
 0x54b   :  { %4693 = vmatprep.mubr.msk.f32.mxu1 %vm567_vm0, %v1075_v24 }
 0x54c   :  { %4694 = vmatmul.mubr.msk.f32.vlgmr.msra.gmra.mrb[24].mxu1 %vm567_vm0, %v1076_v27 }
 0x5b3   :  { %v1268_v28 = vpop.xlane.xlu1 %1267 }
 0x5b4   :  { %5372 = vrcp.f32 %v1268_v28  ;;  %v1265_v23 = vpop.xlane.xlu0 %1264 }
 0x5b5   :  { %5374 = vrcp.f32 %v1265_v23 }
 0x5b8   :  { %v5327_v25 = vpop.permute.xlu0 %5326 }
 0x5b9   :  { %v5329_v26 = vunpack.i.h.bf16 %v5327_v25  ;;  %v5328_v30 = vunpack.i.l.bf16 %v5327_v25 }
 0x5bb   :  { %v5104_v33 = vpack.c.bf16 %v5329_v26, %v5328_v30 }
 0x5bc   :  { %v1565_v7 = vpop.permute.xlu0 %1564 }
 0x5bd   :  { %5105 = vmatprep.subr.bf16.mxu1 %v5104_v33 }
 0x5be   :  { %v5373_v34 = vpop.eup %5372  ;;  %5107 = vmatpush3.bf16.msra.mxu1 %v5104_v33 }
 0x5bf   :  { %v5375_v35 = vpop.eup %5374  ;;  %5110 = vmatprep.subr.msk.bf16.mxu1 %vm5957_vm2, %v5975_v21  ;;  %v1272_v37 = vmul.f32 %v5373_v34, %v5365_v10 }
 0x5c0   :  { %v1271_v36 = vmul.f32 %v5375_v35, %v5367_v11  ;;  %v1567_v16 = vpop.permute.xlu0 %1566  ;;  %v1778_v35 = vld [vmem:[%s5615_s24] sm:$0xff] }
 0x5c2   :  { %4707 = vmatprep.mubr.msk.f32.mxu1 %vm567_vm0, %v1271_v36  ;;  %v1779_v36 = vld [vmem:[%s5615_s24 + $0x8] sm:$0xff] }
 0x5c3   :  { %4708 = vmatmul.mubr.msk.f32.vlgmr.msra.gmra.mrb[26].mxu1 %vm567_vm0, %v1272_v37 }
 0x5c4   :  { %4714 = vmatprep.mubr.msk.f32.mxu1 %vm567_vm0, %v5952_v6 }
 0x5c7   :  { %5113 = vmatpush3.bf16.xpose.msk.msra.mxu1 %vm5957_vm2, %v5975_v21 }
 0x5ce   :  { %4715 = vmatmul.mubr.msk.f32.vlgmr.msra.gmra.mrb[28].mxu1 %vm567_vm0, %v5950_v4 }
 0x61f   :  { %v6031_v38 = vpop.f32.mrb[24].mxu1 }
 0x620   :  { %v6033_v39 = vpop.f32.mrb[25].mxu1 }
 0x696   :  { %v4709_v40 = vpop.f32.mrb[26].mxu1 }
 0x697   :  { %v1353_v41 = vpop.f32.mrb[27].mxu1 }
 0x6a1   :  { %v4716_v42 = vpop.f32.mrb[28].mxu1 }
 0x6a2   :  { %v1450_v43 = vpop.f32.mrb[29].mxu1  ;;  %v1460_v45 = vmul.f32 0.25, %v4716_v42  ;;  %v5128_v42 = vpack.c.bf16 %v1779_v36, %v1778_v35  ;;  %v1968_v35 = vld [vmem:[%s6460_s13 + $0x18] sm:$0xff] }
 0x6a3   :  { %v1459_v44 = vmul.f32 0.25, %v1450_v43 }
 0x6a4   :  { %v1464_v6 = vsel %vm567_vm0, %v1460_v45, -inf }
 0x6a5   :  { %v1461_v46 = vsel %vm567_vm0, %v1459_v44, -inf }
 0x6a6   :  { %1462 = vmax.xlane.f32.xlu1 %v1461_v46 }
 0x6aa   :  { %1465 = vmax.xlane.f32.xlu1 %v1464_v6 }
 0x733   :  { %v1463_v21 = vpop.xlane.xlu1 %1462 }
 0x734   :  { %v1467_v49 = vsub.f32 %v1459_v44, %v1463_v21  ;;  %v1780_v44 = vld [vmem:[%s5615_s24 + $0x10] sm:$0xff] }
 0x736   :  { %v1469_v51 = vmul.f32 1.442695, %v1467_v49 }
 0x737   :  { %v1466_v50 = vpop.xlane.xlu1 %1465 }
 0x738   :  { %v1468_v4 = vsub.f32 %v1460_v45, %v1466_v50  ;;  %v1781_v45 = vld [vmem:[%s5615_s24 + $0x18] sm:$0xff]  ;;  %s6469_s24 = sld [smem:[#allocation20_spill]] }
 0x739   :  { %v5132_v6 = vpack.c.bf16 %v1781_v45, %v1780_v44 }
 0x73a   :  { %v1471_v52 = vmul.f32 1.442695, %v1468_v4 }
 0x73c   :  { %5376 = vpow2.f32 %v1471_v52 }
 0x73d   :  { %5378 = vpow2.f32 %v1469_v51 }
 0x746   :  { %v5377_v53 = vpop.eup %5376 }
 0x747   :  { %v1476_v54 = vsel %vm567_vm0, %v5377_v53, 0.0  ;;  %v5379_v55 = vpop.eup %5378 }
 0x748   :  { %1477 = vadd.xlane.f32.xlu1 %v1476_v54  ;;  %v1473_v56 = vsel %vm567_vm0, %v5379_v55, 0.0 }
 0x74c   :  { %1474 = vadd.xlane.f32.xlu1 %v1473_v56 }
 0x75d   :  { %5331 = vrot.lane.b32.xlu1 %v5330_v20, %s5546_s0 }
 0x7d5   :  { %v1478_v59 = vpop.xlane.xlu1 %1477 }
 0x7d6   :  { %5380 = vrcp.f32 %v1478_v59 }
 0x7d9   :  { %v1475_v60 = vpop.xlane.xlu1 %1474 }
 0x7da   :  { %5382 = vrcp.f32 %v1475_v60 }
 0x7dd   :  { %v5332_v61 = vpop.permute.xlu1 %5331 }
 0x7de   :  { %v5334_v62 = vunpack.i.h.bf16 %v5332_v61  ;;  %v5333_v63 = vunpack.i.l.bf16 %v5332_v61 }
 0x7e0   :  { %v5118_v0 = vpack.c.bf16 %v5334_v62, %v5333_v63  ;;  %v5381_v1 = vpop.eup %5380 }
 0x7e1   :  { %v1482_v5 = vmul.f32 %v5381_v1, %v5377_v53  ;;  %v4221_v53 = vld [vmem:[%s5620_s30] ss:$0 sm:$0xff]  ;;  %s6470_s30 = sld [smem:[#allocation16_spill]] }
 0x7e2   :  { %5120 = vmatprep.subr.msk.bf16.mxu0 %vm5957_vm2, %v5118_v0 }
 0x7e4   :  { %v5383_v2 = vpop.eup %5382 }
 0x7e5   :  { %v1481_v3 = vmul.f32 %v5383_v2, %v5379_v55 }
 0x7e7   :  { %4721 = vmatprep.mubr.msk.f32.mxu0 %vm567_vm0, %v1481_v3 }
 0x7e8   :  { %4722 = vmatmul.mubr.msk.f32.vlgmr.msra.gmra.mrb[20].mxu0 %vm567_vm0, %v1482_v5 }
 0x7e9   :  { %5123 = vmatpush3.bf16.xpose.msk.msra.mxu0 %vm5957_vm2, %v5118_v0  ;;  %4728 = vmatprep.mubr.msk.f32.mxu0 %vm567_vm0, %v1565_v7 }
 0x7f0   :  { %4729 = vmatmul.mubr.msk.f32.vlgmr.msra.gmra.mrb[22].mxu0 %vm567_vm0, %v1567_v16 }
 0x8bb   :  { %v6051_v18 = vpop.f32.mrb[20].mxu0 }
 0x8bc   :  { %v6053_v20 = vpop.f32.mrb[21].mxu0 }
 0x8c3   :  { %v4730_v8 = vpop.f32.mrb[22].mxu0 }
 0x8c4   :  { %v1656_v9 = vmul.f32 0.25, %v4730_v8  ;;  %v1646_v10 = vpop.f32.mrb[23].mxu0 }
 0x8c5   :  { %v1655_v11 = vmul.f32 0.25, %v1646_v10 }
 0x8c6   :  { %v1660_v13 = vsel %vm567_vm0, %v1656_v9, -inf }
 0x8c7   :  { %1661 = vmax.xlane.f32.xlu1 %v1660_v13  ;;  %v1657_v14 = vsel %vm567_vm0, %v1655_v11, -inf }
 0x8c8   :  { %1658 = vmax.xlane.f32.xlu0 %v1657_v14 }
 0x8d8   :  { %1364 = vrot.lane.b32.xlu1 %v1353_v41, %s5547_s5 }
 0x8dc   :  { %1366 = vrot.lane.b32.xlu1 %v4709_v40, %s5547_s5 }
 0x954   :  { %v1662_v15 = vpop.xlane.xlu1 %1661 }
 0x955   :  { %v1664_v17 = vsub.f32 %v1656_v9, %v1662_v15  ;;  %v1659_v19 = vpop.xlane.xlu0 %1658 }
 0x956   :  { %v1663_v22 = vsub.f32 %v1655_v11, %v1659_v19 }
 0x957   :  { %v1667_v24 = vmul.f32 1.442695, %v1664_v17 }
 0x958   :  { %v1665_v27 = vmul.f32 1.442695, %v1663_v22  ;;  %v1365_v31 = vpop.permute.xlu1 %1364  ;;  %v6095_v22 = vld [vmem:[%s5625_s6] ss:$0 sm:$0xff]  ;;  %s6471_s6 = sld [smem:[#allocation18_spill]] }
 0x959   :  { %5384 = vpow2.f32 %v1667_v24  ;;  %v1370_v21 = vsel %vm567_vm0, %v6033_v39, %v1365_v31 }
 0x95a   :  { %5386 = vpow2.f32 %v1665_v27 }
 0x95c   :  { %v1367_v49 = vpop.permute.xlu1 %1366 }
 0x95d   :  { %v1371_v50 = vsel %vm567_vm0, %v6031_v38, %v1367_v49 }
 0x963   :  { %v5385_v28 = vpop.eup %5384 }
 0x964   :  { %v1672_v23 = vsel %vm567_vm0, %v5385_v28, 0.0  ;;  %v5387_v25 = vpop.eup %5386 }
 0x965   :  { %1673 = vadd.xlane.f32.xlu0 %v1672_v23  ;;  %v1669_v26 = vsel %vm567_vm0, %v5387_v25, 0.0  ;;  %v6099_v23 = vld [vmem:[%s6459_s9] ss:$0 sm:$0xff] }
 0x969   :  { %1670 = vadd.xlane.f32.xlu0 %v1669_v26  ;;  %v1965_v26 = vld [vmem:[%s6460_s13] sm:$0xff] }
 0x97f   :  { %5336 = vrot.lane.b32.xlu0 %v5335_v32, %s5546_s0 }
 0x9f2   :  { %v1674_v30 = vpop.xlane.xlu0 %1673 }
 0x9f3   :  { %5388 = vrcp.f32 %v1674_v30  ;;  %v1966_v30 = vld [vmem:[%s6460_s13 + $0x8] sm:$0xff] }
 0x9f6   :  { %v1671_v33 = vpop.xlane.xlu0 %1670 }
 0x9f7   :  { %5390 = vrcp.f32 %v1671_v33  ;;  %v5136_v33 = vpack.c.bf16 %v1966_v30, %v1965_v26  ;;  %v4233_v26 = vld [vmem:[%s6463_s25] ss:$0 sm:$0xff] }
 0x9f9   :  { %5137 = vmatprep.subr.bf16.mxu0 %v5136_v33 }
 0x9fa   :  { %v5337_v34 = vpop.permute.xlu0 %5336  ;;  %5139 = vmatpush3.bf16.msra.mxu0 %v5136_v33 }
 0x9fb   :  { %v5339_v37 = vunpack.i.h.bf16 %v5337_v34  ;;  %v5338_v40 = vunpack.i.l.bf16 %v5337_v34  ;;  %v1967_v34 = vld [vmem:[%s6460_s13 + $0x10] sm:$0xff] }
 0x9fc   :  { %v5140_v36 = vpack.c.bf16 %v1968_v35, %v1967_v34 }
 0x9fd   :  { %v5124_v41 = vpack.c.bf16 %v5339_v37, %v5338_v40  ;;  %v5389_v43 = vpop.eup %5388 }
 0x9fe   :  { %v1678_v46 = vmul.f32 %v5389_v43, %v5385_v28  ;;  %5141 = vmatprep.subr.bf16.mxu0 %v5140_v36 }
 0x9ff   :  { %5125 = vmatprep.subr.bf16.mxu1 %v5124_v41  ;;  %5143 = vmatpush3.bf16.msra.mxu0 %v5140_v36 }
 0xa00   :  { %5127 = vmatpush3.bf16.msra.mxu1 %v5124_v41 }
 0xa01   :  { %v5391_v29 = vpop.eup %5390  ;;  %5129 = vmatprep.subr.bf16.mxu1 %v5128_v42 }
 0xa02   :  { %v1677_v32 = vmul.f32 %v5391_v29, %v5387_v25 }
 0xa04   :  { %4735 = vmatprep.mubr.msk.f32.mxu1 %vm567_vm0, %v1677_v32 }
 0xa05   :  { %4736 = vmatmul.mubr.msk.f32.vlgmr.msra.gmra.mrb[30].mxu1 %vm567_vm0, %v1678_v46 }
 0xa06   :  { %5131 = vmatpush3.bf16.msra.mxu1 %v5128_v42  ;;  %4746 = vmatprep.mubr.msk.f32.mxu1 %vm676_vm1, %v1370_v21 }
 0xa07   :  { %5133 = vmatprep.subr.bf16.mxu1 %v5132_v6 }
 0xa0a   :  { %5135 = vmatpush3.bf16.msra.mxu1 %v5132_v6 }
 0xa0d   :  { %4747 = vmatmul.mubr.msk.f32.vlgmr.msra.gmra.mrb[32].mxu1 %vm676_vm1, %v1371_v50 }
 0xad8   :  { %v4737_v4 = vpop.f32.mrb[30].mxu1 }
 0xad9   :  { %1772 = vrot.lane.b32.xlu1 %v4737_v4, %s5547_s5  ;;  %v1759_v51 = vpop.f32.mrb[31].mxu1 }
 0xada   :  { %1770 = vrot.lane.b32.xlu0 %v1759_v51, %s5547_s5 }
 0xae0   :  { %v4748_v39 = vpop.f32.mrb[32].mxu1 }
 0xae1   :  { %v1867_v52 = vpop.f32.mrb[33].mxu1  ;;  %v1873_v55 = vadd.f32 %v4748_v39, %v4221_v53  ;;  %v2077_v39 = vld [vmem:[%s6461_s17] sm:$0xff] }
 0xae2   :  { %v1868_v54 = vadd.f32 %v4221_v53, %v1867_v52  ;;  %v2078_v52 = vld [vmem:[%s6461_s17 + $0x8] sm:$0xff] }
 0xae3   :  { %v1887_v60 = vadd.f32 %v1873_v55, %v5911_v48  ;;  %v2080_v55 = vld [vmem:[%s6461_s17 + $0x18] sm:$0xff] }
 0xae4   :  { %v1886_v56 = vadd.f32 %v1868_v54, %v5909_v47  ;;  %v5144_v54 = vpack.c.bf16 %v2078_v52, %v2077_v39 }
 0xae5   :  { %v1895_v38 = vsel %vm676_vm1, %v1887_v60, 0.0 }
 0xae6   :  { %v1892_v59 = vsel %vm676_vm1, %v1886_v56, 0.0  ;;  %5145 = vmatprep.subr.bf16.mxu1 %v5144_v54 }
 0xae7   :  { %5147 = vmatpush3.bf16.msra.mxu1 %v5144_v54  ;;  %v2268_v54 = vld [vmem:[%s6464_s29] sm:$0xff] }
 0xaf9   :  { %1893 = vadd.xlane.f32.xlu0 %v1892_v59  ;;  %v2081_v59 = vld [vmem:[%s6461_s17 + $0x20] sm:$0xff] }
 0xafd   :  { %1896 = vadd.xlane.f32.xlu1 %v1895_v38 }
 0xb4b   :  { %v1773_v61 = vpop.permute.xlu1 %1772 }
 0xb4c   :  { %v1771_v62 = vpop.permute.xlu0 %1770  ;;  %v1777_v0 = vsel %vm567_vm0, %v6051_v18, %v1773_v61  ;;  %v2083_v61 = vld [vmem:[%s6461_s17 + $0x30] sm:$0xff] }
 0xb4d   :  { %v1776_v63 = vsel %vm567_vm0, %v6053_v20, %v1771_v62  ;;  %v2084_v62 = vld [vmem:[%s6461_s17 + $0x38] sm:$0xff] }
 0xb4e   :  { %4749 = vmatprep.mubr.msk.f32.mxu1 %vm676_vm1, %v1776_v63  ;;  %v5156_v63 = vpack.c.bf16 %v2084_v62, %v2083_v61  ;;  %v2270_v61 = vld [vmem:[%s6464_s29 + $0x10] sm:$0xff]  ;;  %v2271_v62 = vld [vmem:[%s6464_s29 + $0x18] sm:$0xff] }
 0xb4f   :  { %4750 = vmatmul.mubr.msk.f32.gmra.mrb[34].mxu1 %vm676_vm1, %v1777_v0 }
 0xb86   :  { %v1894_v47 = vpop.xlane.xlu0 %1893 }
 0xb87   :  { %v1905_v1 = vmul.f32 0.03125, %v1894_v47 }
 0xb89   :  { %v1909_v2 = vsub.f32 %v1886_v56, %v1905_v1 }
 0xb8a   :  { %v1897_v5 = vpop.xlane.xlu1 %1896 }
 0xb8b   :  { %v1913_v48 = vmul.f32 %v1909_v2, %v1909_v2  ;;  %v1906_v9 = vmul.f32 0.03125, %v1897_v5 }
 0xb8d   :  { %v1917_v3 = vsel %vm676_vm1, %v1913_v48, 0.0  ;;  %v1910_v14 = vsub.f32 %v1887_v60, %v1906_v9  ;;  %v2082_v60 = vld [vmem:[%s6461_s17 + $0x28] sm:$0xff] }
 0xb8e   :  { %1918 = vadd.xlane.f32.xlu1 %v1917_v3  ;;  %v5152_v38 = vpack.c.bf16 %v2082_v60, %v2081_v59  ;;  %v2473_v60 = vld [vmem:[%s6465_s3 + $0x8] sm:$0xff] }
 0xb8f   :  { %v1914_v28 = vmul.f32 %v1910_v14, %v1910_v14 }
 0xc1b   :  { %v1919_v7 = vpop.xlane.xlu1 %1918 }
 0xc1c   :  { %v1929_v16 = vmul.f32 0.03125, %v1919_v7 }
 0xc1e   :  { %v1933_v8 = vadd.f32 1e-05, %v1929_v16 }
 0xc20   :  { %5392 = vrsqrt.f32 %v1933_v8 }
 0xc22   :  { %v4751_v20 = vpop.f32.mrb[34].mxu1 }
 0xc23   :  { %v1877_v18 = vpop.f32.mrb[35].mxu1  ;;  %v1883_v10 = vadd.f32 %v4751_v20, %v4221_v53 }
 0xc24   :  { %v1878_v11 = vadd.f32 %v4221_v53, %v1877_v18  ;;  %v2079_v53 = vld [vmem:[%s6461_s17 + $0x10] sm:$0xff] }
 0xc25   :  { %v1889_v17 = vadd.f32 %v1883_v10, %v5923_v58  ;;  %v1920_v58 = vsel %vm676_vm1, %v1914_v28, 0.0  ;;  %v5148_v56 = vpack.c.bf16 %v2080_v55, %v2079_v53  ;;  %v2269_v55 = vld [vmem:[%s6464_s29 + $0x8] sm:$0xff] }
 0xc26   :  { %v1888_v13 = vadd.f32 %v1878_v11, %v5921_v57  ;;  %v4228_v11 = vld [vmem:[%s6462_s21] ss:$0 sm:$0xff]  ;;  %v5160_v59 = vpack.c.bf16 %v2269_v55, %v2268_v54 }
 0xc27   :  { %v1901_v27 = vsel %vm676_vm1, %v1889_v17, 0.0  ;;  %5149 = vmatprep.subr.bf16.mxu1 %v5148_v56 }
 0xc28   :  { %v1898_v15 = vsel %vm676_vm1, %v1888_v13, 0.0  ;;  %5151 = vmatpush3.bf16.msra.mxu1 %v5148_v56  ;;  %v2472_v56 = vld [vmem:[%s6465_s3] sm:$0xff]  ;;  %5161 = vmatprep.subr.bf16.mxu0 %v5160_v59 }
 0xc29   :  { %1899 = vadd.xlane.f32.xlu0 %v1898_v15  ;;  %5153 = vmatprep.subr.bf16.mxu1 %v5152_v38 }
 0xc2a   :  { %v5393_v19 = vpop.eup %5392 }
 0xc2b   :  { %v1941_v24 = vmul.f32 %v5393_v19, %v1909_v2 }
 0xc2c   :  { %5155 = vmatpush3.bf16.msra.mxu1 %v5152_v38  ;;  %v5176_v38 = vpack.c.bf16 %v2473_v60, %v2472_v56 }
 0xc2d   :  { %1902 = vadd.xlane.f32.xlu0 %v1901_v27  ;;  %v1951_v57 = vmul.f32 %v6095_v22, %v1941_v24  ;;  %5157 = vmatprep.subr.bf16.mxu1 %v5156_v63 }
 0xc2f   :  { %v6103_v25 = vadd.f32 %v6099_v23, %v1951_v57 }
 0xc30   :  { %5159 = vmatpush3.bf16.msra.mxu1 %v5156_v63  ;;  %v2474_v63 = vld [vmem:[%s6465_s3 + $0x10] sm:$0xff] }
 0xc31   :  { %1921 = vadd.xlane.f32.xlu0 %v1920_v58  ;;  %4760 = vmatprep.mubr.msk.f32.mxu0 %vm676_vm1, %v6103_v25 }
 0xc32   :  { %5177 = vmatprep.subr.bf16.mxu1 %v5176_v38 }
 0xcb6   :  { %v1900_v37 = vpop.xlane.xlu0 %1899 }
 0xcb7   :  { %v1907_v40 = vmul.f32 0.03125, %v1900_v37 }
 0xcb9   :  { %v1911_v41 = vsub.f32 %v1888_v13, %v1907_v40 }
 0xcba   :  { %v1903_v42 = vpop.xlane.xlu0 %1902 }
 0xcbb   :  { %v1908_v43 = vmul.f32 0.03125, %v1903_v42  ;;  %v1915_v44 = vmul.f32 %v1911_v41, %v1911_v41 }
 0xcbd   :  { %v1912_v45 = vsub.f32 %v1889_v17, %v1908_v43  ;;  %v1923_v29 = vsel %vm676_vm1, %v1915_v44, 0.0 }
 0xcbe   :  { %1924 = vadd.xlane.f32.xlu1 %v1923_v29  ;;  %v1922_v31 = vpop.xlane.xlu0 %1921 }
 0xcbf   :  { %v1930_v32 = vmul.f32 0.03125, %v1922_v31  ;;  %v1916_v46 = vmul.f32 %v1912_v45, %v1912_v45 }
 0xcc1   :  { %v1934_v6 = vadd.f32 1e-05, %v1930_v32  ;;  %v1926_v21 = vsel %vm676_vm1, %v1916_v46, 0.0 }
 0xcc2   :  { %1927 = vadd.xlane.f32.xlu0 %v1926_v21 }
 0xcc3   :  { %5394 = vrsqrt.f32 %v1934_v6 }
 0xccd   :  { %v5395_v49 = vpop.eup %5394 }
 0xcce   :  { %v1942_v50 = vmul.f32 %v5395_v49, %v1910_v14 }
 0xcd0   :  { %v1952_v4 = vmul.f32 %v6095_v22, %v1942_v50 }
 0xcd2   :  { %v6116_v51 = vadd.f32 %v6099_v23, %v1952_v4 }
 0xcd4   :  { %4761 = vmatmul.mubr.msk.f32.vlgmr.msra.gmra.mrb[24].mxu0 %vm676_vm1, %v6116_v51 }
 0xcd5   :  { %5163 = vmatpush3.bf16.msra.mxu0 %v5160_v59 }
 0xd4b   :  { %v1925_v0 = vpop.xlane.xlu1 %1924 }
 0xd4c   :  { %v1931_v47 = vmul.f32 0.03125, %v1925_v0  ;;  %v5164_v0 = vpack.c.bf16 %v2271_v62, %v2270_v61 }
 0xd4e   :  { %v1935_v1 = vadd.f32 1e-05, %v1931_v47  ;;  %v2475_v47 = vld [vmem:[%s6465_s3 + $0x18] sm:$0xff]  ;;  %5165 = vmatprep.subr.bf16.mxu0 %v5164_v0 }
 0xd4f   :  { %v1928_v2 = vpop.xlane.xlu0 %1927  ;;  %5167 = vmatpush3.bf16.msra.mxu0 %v5164_v0 }
 0xd50   :  { %5396 = vrsqrt.f32 %v1935_v1  ;;  %v1932_v48 = vmul.f32 0.03125, %v1928_v2  ;;  %v5180_v1 = vpack.c.bf16 %v2475_v47, %v2474_v63 }
 0xd52   :  { %v1936_v3 = vadd.f32 1e-05, %v1932_v48 }
 0xd54   :  { %5398 = vrsqrt.f32 %v1936_v3 }
 0xd5a   :  { %v5397_v5 = vpop.eup %5396 }
 0xd5b   :  { %v1943_v7 = vmul.f32 %v5397_v5, %v1911_v41 }
 0xd5d   :  { %v1953_v16 = vmul.f32 %v6095_v22, %v1943_v7 }
 0xd5e   :  { %v5399_v8 = vpop.eup %5398 }
 0xd5f   :  { %v1963_v20 = vadd.f32 %v6099_v23, %v1953_v16  ;;  %v1944_v18 = vmul.f32 %v5399_v8, %v1912_v45 }
 0xd61   :  { %4763 = vmatprep.mubr.msk.f32.mxu0 %vm676_vm1, %v1963_v20  ;;  %v1954_v9 = vmul.f32 %v6095_v22, %v1944_v18 }
 0xd63   :  { %v1964_v10 = vadd.f32 %v6099_v23, %v1954_v9 }
 0xd65   :  { %4764 = vmatmul.mubr.msk.f32.gmra.mrb[26].mxu0 %vm676_vm1, %v1964_v10 }
 0xda7   :  { %v4762_v13 = vpop.f32.mrb[24].mxu0 }
 0xda8   :  { %v2060_v14 = vadd.f32 %v4762_v13, %v4228_v11  ;;  %v2054_v15 = vpop.f32.mrb[25].mxu0 }
 0xda9   :  { %v2055_v17 = vadd.f32 %v4228_v11, %v2054_v15 }
 0xdaa   :  { %v2074_v24 = vmax.f32 %v2060_v14, 0.0 }
 0xdab   :  { %v2073_v19 = vmax.f32 %v2055_v17, 0.0 }
 0xdad   :  { %4782 = vmatprep.mubr.msk.f32.mxu1 %vm2092_vm3, %v2073_v19 }
 0xdae   :  { %4783 = vmatmul.mubr.msk.f32.vlgmr.msra.gmra.mrb[36].mxu1 %vm2092_vm3, %v2074_v24  ;;  %v4238_v24 = vld [vmem:[%s6466_s8] ss:$0 sm:$0xff] }
 0xdaf   :  { %5179 = vmatpush3.bf16.msra.mxu1 %v5176_v38 }
 0xdb0   :  { %5181 = vmatprep.subr.bf16.mxu1 %v5180_v1 }
 0xdb3   :  { %5183 = vmatpush3.bf16.msra.mxu1 %v5180_v1 }
 0xe38   :  { %v4765_v27 = vpop.f32.mrb[26].mxu0 }
 0xe39   :  { %v2070_v28 = vadd.f32 %v4765_v27, %v4228_v11  ;;  %v2064_v22 = vpop.f32.mrb[27].mxu0 }
 0xe3a   :  { %v2065_v57 = vadd.f32 %v4228_v11, %v2064_v22 }
 0xe3b   :  { %v2076_v58 = vmax.f32 %v2070_v28, 0.0 }
 0xe3c   :  { %v2075_v23 = vmax.f32 %v2065_v57, 0.0  ;;  %v4239_v57 = vld [vmem:[%s6467_s14] ss:$0 sm:$0xff] }
 0xe3e   :  { %4785 = vmatprep.mubr.msk.f32.mxu1 %vm2092_vm3, %v2075_v23 }
 0xe3f   :  { %4786 = vmatmul.mubr.msk.f32.gmra.mrb[38].mxu1 %vm2092_vm3, %v2076_v58 }
 0xe81   :  { %v4784_v30 = vpop.f32.mrb[36].mxu1 }
 0xe82   :  { %v2177_v33 = vadd.f32 %v4784_v30, %v4233_v26  ;;  %v2171_v34 = vpop.f32.mrb[37].mxu1 }
 0xe83   :  { %v2172_v35 = vadd.f32 %v4233_v26, %v2171_v34  ;;  %v2377_v34 = vld [vmem:[%s6468_s19 + $0x8] sm:$0xff] }
 0xe84   :  { %v2191_v36 = vadd.f32 %v2177_v33, %v6116_v51  ;;  %v2376_v33 = vld [vmem:[%s6468_s19] sm:$0xff] }
 0xe85   :  { %v2190_v37 = vadd.f32 %v2172_v35, %v6103_v25  ;;  %v5168_v35 = vpack.c.bf16 %v2377_v34, %v2376_v33 }
 0xe86   :  { %v2199_v40 = vsel %vm676_vm1, %v2191_v36, 0.0 }
 0xe87   :  { %2200 = vadd.xlane.f32.xlu0 %v2199_v40  ;;  %v2196_v41 = vsel %vm676_vm1, %v2190_v37, 0.0  ;;  %5169 = vmatprep.subr.bf16.mxu0 %v5168_v35 }
 0xe88   :  { %2197 = vadd.xlane.f32.xlu1 %v2196_v41 }
 0xf12   :  { %v4787_v42 = vpop.f32.mrb[38].mxu1 }
 0xf13   :  { %v2187_v43 = vadd.f32 %v4787_v42, %v4233_v26  ;;  %v2181_v44 = vpop.f32.mrb[39].mxu1 }
 0xf14   :  { %v2182_v45 = vadd.f32 %v4233_v26, %v2181_v44  ;;  %v2201_v29 = vpop.xlane.xlu0 %2200 }
 0xf15   :  { %v2209_v31 = vmul.f32 0.03125, %v2201_v29  ;;  %v2198_v32 = vpop.xlane.xlu1 %2197  ;;  %v2193_v46 = vadd.f32 %v2187_v43, %v1964_v10 }
 0xf16   :  { %v2208_v6 = vmul.f32 0.03125, %v2198_v32  ;;  %v2192_v21 = vadd.f32 %v2182_v45, %v1963_v20 }
 0xf17   :  { %v2213_v25 = vsub.f32 %v2191_v36, %v2209_v31  ;;  %v2205_v49 = vsel %vm676_vm1, %v2193_v46, 0.0  ;;  %v2378_v36 = vld [vmem:[%s6468_s19 + $0x10] sm:$0xff] }
 0xf18   :  { %v2212_v50 = vsub.f32 %v2190_v37, %v2208_v6  ;;  %2206 = vadd.xlane.f32.xlu0 %v2205_v49  ;;  %v2202_v4 = vsel %vm676_vm1, %v2192_v21, 0.0  ;;  %v2379_v37 = vld [vmem:[%s6468_s19 + $0x18] sm:$0xff] }
 0xf19   :  { %2203 = vadd.xlane.f32.xlu1 %v2202_v4  ;;  %v2217_v51 = vmul.f32 %v2213_v25, %v2213_v25  ;;  %v5172_v40 = vpack.c.bf16 %v2379_v37, %v2378_v36  ;;  %v4250_v4 = vld [vmem:[%s6469_s24] ss:$0 sm:$0xff] }
 0xf1a   :  { %v2216_v39 = vmul.f32 %v2212_v50, %v2212_v50 }
 0xf1b   :  { %v2223_v52 = vsel %vm676_vm1, %v2217_v51, 0.0  ;;  %v4240_v51 = vld [vmem:[%s6470_s30] ss:$0 sm:$0xff] }
 0xf1c   :  { %2224 = vadd.xlane.f32.xlu0 %v2223_v52  ;;  %v2220_v53 = vsel %vm676_vm1, %v2216_v39, 0.0 }
 0xf1d   :  { %2221 = vadd.xlane.f32.xlu1 %v2220_v53 }
 0xfa5   :  { %v2207_v2 = vpop.xlane.xlu0 %2206 }
 0xfa6   :  { %v2211_v48 = vmul.f32 0.03125, %v2207_v2  ;;  %v2204_v3 = vpop.xlane.xlu1 %2203 }
 0xfa7   :  { %v2210_v5 = vmul.f32 0.03125, %v2204_v3 }
 0xfa8   :  { %v2215_v7 = vsub.f32 %v2193_v46, %v2211_v48  ;;  %v4245_v48 = vld [vmem:[%s6471_s6] ss:$0 sm:$0xff] }
 0xfa9   :  { %v2214_v16 = vsub.f32 %v2192_v21, %v2210_v5  ;;  %v2225_v8 = vpop.xlane.xlu0 %2224 }
 0xfaa   :  { %v2233_v20 = vmul.f32 0.03125, %v2225_v8  ;;  %v2222_v18 = vpop.xlane.xlu1 %2221  ;;  %v2219_v9 = vmul.f32 %v2215_v7, %v2215_v7 }
 0xfab   :  { %v2232_v10 = vmul.f32 0.03125, %v2222_v18  ;;  %v2218_v11 = vmul.f32 %v2214_v16, %v2214_v16 }
 0xfac   :  { %v2237_v13 = vadd.f32 1e-05, %v2233_v20  ;;  %v2229_v14 = vsel %vm676_vm1, %v2219_v9, 0.0 }
 0xfad   :  { %v2236_v15 = vadd.f32 1e-05, %v2232_v10  ;;  %2230 = vadd.xlane.f32.xlu0 %v2229_v14  ;;  %v2226_v17 = vsel %vm676_vm1, %v2218_v11, 0.0 }
 0xfae   :  { %5400 = vrsqrt.f32 %v2237_v13  ;;  %2227 = vadd.xlane.f32.xlu1 %v2226_v17 }
 0xfaf   :  { %5402 = vrsqrt.f32 %v2236_v15 }
 0xfb8   :  { %v5401_v19 = vpop.eup %5400 }
 0xfb9   :  { %v5403_v27 = vpop.eup %5402  ;;  %v2245_v28 = vmul.f32 %v5401_v19, %v2213_v25 }
 0xfba   :  { %v2244_v22 = vmul.f32 %v5403_v27, %v2212_v50 }
 0xfbb   :  { %v2255_v23 = vmul.f32 %v4238_v24, %v2245_v28 }
 0xfbc   :  { %v2254_v58 = vmul.f32 %v4238_v24, %v2244_v22 }
 0xfbd   :  { %v6162_v30 = vadd.f32 %v4239_v57, %v2255_v23 }
 0xfbe   :  { %v6160_v26 = vadd.f32 %v4239_v57, %v2254_v58 }
 0xfc0   :  { %4796 = vmatprep.mubr.msk.f32.mxu0 %vm676_vm1, %v6160_v26  ;;  %4824 = vmatprep.mubr.msk.f32.mxu1 %vm676_vm1, %v6160_v26 }
 0xfc1   :  { %4797 = vmatmul.mubr.msk.f32.vlgmr.msra.gmra.mrb[28].mxu0 %vm676_vm1, %v6162_v30  ;;  %4825 = vmatmul.mubr.msk.f32.vlgmr.msra.gmra.mrb[40].mxu1 %vm676_vm1, %v6162_v30 }
 0xfc2   :  { %5171 = vmatpush3.bf16.msra.mxu0 %v5168_v35 }
 0xfc3   :  { %5173 = vmatprep.subr.bf16.mxu0 %v5172_v40 }
 0xfc6   :  { %5175 = vmatpush3.bf16.msra.mxu0 %v5172_v40 }
0x103a   :  { %v2231_v41 = vpop.xlane.xlu0 %2230 }
0x103b   :  { %v2235_v42 = vmul.f32 0.03125, %v2231_v41  ;;  %v2228_v43 = vpop.xlane.xlu1 %2227 }
0x103c   :  { %v2234_v44 = vmul.f32 0.03125, %v2228_v43 }
0x103d   :  { %v2239_v45 = vadd.f32 1e-05, %v2235_v42 }
0x103e   :  { %v2238_v29 = vadd.f32 1e-05, %v2234_v44 }
0x103f   :  { %5404 = vrsqrt.f32 %v2239_v45 }
0x1040   :  { %5406 = vrsqrt.f32 %v2238_v29 }
0x1049   :  { %v5405_v31 = vpop.eup %5404 }
0x104a   :  { %v5407_v32 = vpop.eup %5406  ;;  %v2247_v46 = vmul.f32 %v5405_v31, %v2215_v7 }
0x104b   :  { %v2246_v6 = vmul.f32 %v5407_v32, %v2214_v16 }
0x104c   :  { %v2257_v21 = vmul.f32 %v4238_v24, %v2247_v46 }
0x104d   :  { %v2256_v25 = vmul.f32 %v4238_v24, %v2246_v6 }
0x104e   :  { %v6178_v50 = vadd.f32 %v4239_v57, %v2257_v21 }
0x104f   :  { %v6176_v49 = vadd.f32 %v4239_v57, %v2256_v25 }
0x1051   :  { %4799 = vmatprep.mubr.msk.f32.mxu0 %vm676_vm1, %v6176_v49  ;;  %4827 = vmatprep.mubr.msk.f32.mxu1 %vm676_vm1, %v6176_v49 }
0x1052   :  { %4800 = vmatmul.mubr.msk.f32.gmra.mrb[30].mxu0 %vm676_vm1, %v6178_v50  ;;  %4828 = vmatmul.mubr.msk.f32.gmra.mrb[42].mxu1 %vm676_vm1, %v6178_v50 }
0x1053   :  { %4810 = vmatprep.mubr.msk.f32.mxu0 %vm676_vm1, %v6160_v26 }
0x1056   :  { %4811 = vmatmul.mubr.msk.f32.vlgmr.msra.gmra.mrb[32].mxu0 %vm676_vm1, %v6162_v30 }
0x1057   :  { %4813 = vmatprep.mubr.msk.f32.mxu0 %vm676_vm1, %v6176_v49 }
0x105a   :  { %4814 = vmatmul.mubr.msk.f32.gmra.mrb[34].mxu0 %vm676_vm1, %v6178_v50 }
0x1094   :  { %v4798_v39 = vpop.f32.mrb[28].mxu0  ;;  %v4826_v52 = vpop.f32.mrb[40].mxu1 }
0x1095   :  { %v6198_v53 = vadd.f32 %v4826_v52, %v4250_v4  ;;  %v2357_v54 = vpop.f32.mrb[29].mxu0  ;;  %v2549_v55 = vpop.f32.mrb[41].mxu1  ;;  %v2363_v15 = vadd.f32 %v4798_v39, %v4240_v51 }
0x1096   :  { %v2358_v56 = vadd.f32 %v4240_v51, %v2357_v54  ;;  %v6200_v59 = vadd.f32 %v4250_v4, %v2549_v55 }
0x1098   :  { %v5345_v60 = vpack.i.bf16 %v6198_v53, %v6200_v59  ;;  %v5190_v38 = vpack.c.bf16 %v6198_v53, %v6200_v59  ;;  %2762 = vrot.lane.b32.xlu0 %v2358_v56, %s5546_s0  ;;  %4834 = vmatprep.mubr.msk.f32.mxu0 %vm567_vm0, %v2358_v56 }
0x110a   :  { %v2763_v61 = vpop.permute.xlu0 %2762 }
0x110b   :  { %4848 = vmatprep.mubr.msk.f32.mxu1 %vm567_vm0, %v2763_v61 }
0x1125   :  { %v4801_v62 = vpop.f32.mrb[30].mxu0  ;;  %v4829_v63 = vpop.f32.mrb[42].mxu1 }
0x1126   :  { %v6209_v0 = vadd.f32 %v4829_v63, %v4250_v4  ;;  %v2367_v47 = vpop.f32.mrb[31].mxu0  ;;  %v2559_v1 = vpop.f32.mrb[43].mxu1  ;;  %v6248_v58 = vadd.f32 %v4801_v62, %v4240_v51 }
0x1127   :  { %v6211_v2 = vadd.f32 %v4250_v4, %v2559_v1  ;;  %v6241_v57 = vadd.f32 %v4240_v51, %v2367_v47 }
0x1129   :  { %v5355_v3 = vpack.i.bf16 %v6209_v0, %v6211_v2  ;;  %v6218_v5 = vpack.c.bf16 %v6209_v0, %v6211_v2  ;;  %v4812_v7 = vpop.f32.mrb[32].mxu0 }
0x112a   :  { %v2459_v16 = vadd.f32 %v4812_v7, %v4245_v48  ;;  %v2453_v8 = vpop.f32.mrb[33].mxu0 }
0x112b   :  { %v2454_v20 = vadd.f32 %v4245_v48, %v2453_v8 }
0x112d   :  { %v5340_v18 = vpack.i.bf16 %v2459_v16, %v2454_v20  ;;  %v5184_v9 = vpack.c.bf16 %v2459_v16, %v2454_v20  ;;  %v4815_v10 = vpop.f32.mrb[34].mxu0 }
0x112e   :  { %v6220_v11 = vadd.f32 %v4815_v10, %v4245_v48  ;;  %v2463_v13 = vpop.f32.mrb[35].mxu0 }
0x112f   :  { %v6222_v14 = vadd.f32 %v4245_v48, %v2463_v13  ;;  %5341 = vrot.lane.b32.xlu1 %v5340_v18, %s5546_s0  ;;  %5186 = vmatprep.subr.msk.bf16.mxu0 %vm5957_vm2, %v5184_v9 }
0x1130   :  { %5189 = vmatpush3.bf16.xpose.msk.msra.mxu0 %vm5957_vm2, %v5184_v9 }
0x1131   :  { %v5350_v17 = vpack.i.bf16 %v6220_v11, %v6222_v14  ;;  %v5204_v19 = vpack.c.bf16 %v6220_v11, %v6222_v14  ;;  %5191 = vmatprep.subr.bf16.mxu0 %v5190_v38 }
0x1133   :  { %2764 = vrot.lane.b32.xlu1 %v2363_v15, %s5546_s0 }
0x1137   :  { %4835 = vmatmul.mubr.msk.f32.vlgmr.msra.gmra.mrb[36].mxu0 %vm567_vm0, %v2363_v15 }
0x1138   :  { %5193 = vmatpush3.bf16.msra.mxu0 %v5190_v38 }
0x11a1   :  { %v5342_v24 = vpop.permute.xlu1 %5341 }
0x11a2   :  { %v5344_v27 = vunpack.i.h.bf16 %v5342_v24  ;;  %v5343_v28 = vunpack.i.l.bf16 %v5342_v24 }
0x11a4   :  { %v5194_v22 = vpack.c.bf16 %v5344_v27, %v5343_v28 }
0x11a5   :  { %v2765_v23 = vpop.permute.xlu1 %2764 }
0x11a6   :  { %5196 = vmatprep.subr.msk.bf16.mxu1 %vm5957_vm2, %v5194_v22 }
0x11a7   :  { %5199 = vmatpush3.bf16.xpose.msk.msra.mxu1 %vm5957_vm2, %v5194_v22 }
0x11a8   :  { %5206 = vmatprep.subr.msk.bf16.mxu1 %vm5957_vm2, %v5204_v19 }
0x11ae   :  { %4849 = vmatmul.mubr.msk.f32.vlgmr.msra.gmra.mrb[44].mxu1 %vm567_vm0, %v2765_v23 }
0x11af   :  { %5209 = vmatpush3.bf16.xpose.msk.msra.mxu1 %vm5957_vm2, %v5204_v19  ;;  %4862 = vmatprep.mubr.msk.f32.mxu1 %vm567_vm0, %v6241_v57 }
0x11b6   :  { %4863 = vmatmul.mubr.msk.f32.vlgmr.msra.gmra.mrb[46].mxu1 %vm567_vm0, %v6248_v58 }
0x120a   :  { %v4836_v33 = vpop.f32.mrb[36].mxu0 }
0x120b   :  { %v2656_v34 = vmul.f32 0.25, %v4836_v33  ;;  %v2646_v35 = vpop.f32.mrb[37].mxu0 }
0x120c   :  { %v2655_v36 = vmul.f32 0.25, %v2646_v35 }
0x120d   :  { %v2660_v37 = vsel %vm567_vm0, %v2656_v34, -inf }
0x120e   :  { %2661 = vmax.xlane.f32.xlu0 %v2660_v37  ;;  %v2657_v40 = vsel %vm567_vm0, %v2655_v36, -inf }
0x120f   :  { %2658 = vmax.xlane.f32.xlu1 %v2657_v40 }
0x1281   :  { %v4850_v41 = vpop.f32.mrb[44].mxu1 }
0x1282   :  { %v2854_v42 = vmul.f32 0.25, %v4850_v41  ;;  %v2844_v43 = vpop.f32.mrb[45].mxu1 }
0x1283   :  { %v2853_v44 = vmul.f32 0.25, %v2844_v43 }
0x1284   :  { %v2858_v45 = vsel %vm567_vm0, %v2854_v42, -inf }
0x1285   :  { %2859 = vmax.xlane.f32.xlu1 %v2858_v45  ;;  %v2855_v29 = vsel %vm567_vm0, %v2853_v44, -inf }
0x1286   :  { %2856 = vmax.xlane.f32.xlu0 %v2855_v29 }
0x1289   :  { %v4864_v31 = vpop.f32.mrb[46].mxu1 }
0x128a   :  { %v3067_v32 = vmul.f32 0.25, %v4864_v31  ;;  %v3057_v46 = vpop.f32.mrb[47].mxu1 }
0x128b   :  { %v3066_v6 = vmul.f32 0.25, %v3057_v46 }
0x128c   :  { %v3071_v21 = vsel %vm567_vm0, %v3067_v32, -inf }
0x128d   :  { %3072 = vmax.xlane.f32.xlu1 %v3071_v21  ;;  %v3068_v25 = vsel %vm567_vm0, %v3066_v6, -inf }
0x128e   :  { %3069 = vmax.xlane.f32.xlu0 %v3068_v25 }
0x129b   :  { %v2662_v4 = vpop.xlane.xlu0 %2661 }
0x129c   :  { %v2664_v51 = vsub.f32 %v2656_v34, %v2662_v4  ;;  %v2659_v39 = vpop.xlane.xlu1 %2658 }
0x129d   :  { %v2663_v52 = vsub.f32 %v2655_v36, %v2659_v39 }
0x129e   :  { %v2667_v54 = vmul.f32 1.442695, %v2664_v51 }
0x129f   :  { %v2665_v55 = vmul.f32 1.442695, %v2663_v52 }
0x12a0   :  { %5408 = vpow2.f32 %v2667_v54 }
0x12a1   :  { %5410 = vpow2.f32 %v2665_v55 }
0x12aa   :  { %v5409_v56 = vpop.eup %5408 }
0x12ab   :  { %v5411_v38 = vpop.eup %5410  ;;  %v2672_v61 = vsel %vm567_vm0, %v5409_v56, 0.0 }
0x12ac   :  { %2673 = vadd.xlane.f32.xlu1 %v2672_v61  ;;  %v2669_v62 = vsel %vm567_vm0, %v5411_v38, 0.0 }
0x12ad   :  { %2670 = vadd.xlane.f32.xlu0 %v2669_v62 }
0x1312   :  { %v2860_v63 = vpop.xlane.xlu1 %2859 }
0x1313   :  { %v2862_v47 = vsub.f32 %v2854_v42, %v2860_v63  ;;  %v2857_v1 = vpop.xlane.xlu0 %2856 }
0x1314   :  { %v2861_v48 = vsub.f32 %v2853_v44, %v2857_v1 }
0x1315   :  { %v2865_v7 = vmul.f32 1.442695, %v2862_v47 }
0x1316   :  { %v2863_v16 = vmul.f32 1.442695, %v2861_v48 }
0x1317   :  { %5412 = vpow2.f32 %v2865_v7 }
0x1318   :  { %5414 = vpow2.f32 %v2863_v16 }
0x131a   :  { %v3073_v8 = vpop.xlane.xlu1 %3072 }
0x131b   :  { %v3075_v20 = vsub.f32 %v3067_v32, %v3073_v8  ;;  %v3070_v18 = vpop.xlane.xlu0 %3069 }
0x131c   :  { %v3074_v9 = vsub.f32 %v3066_v6, %v3070_v18 }
0x131d   :  { %v3078_v10 = vmul.f32 1.442695, %v3075_v20 }
0x131e   :  { %v3076_v13 = vmul.f32 1.442695, %v3074_v9 }
0x131f   :  { %5416 = vpow2.f32 %v3078_v10 }
0x1320   :  { %5418 = vpow2.f32 %v3076_v13 }
0x1321   :  { %v5413_v15 = vpop.eup %5412 }
0x1322   :  { %v5415_v19 = vpop.eup %5414  ;;  %v2870_v24 = vsel %vm567_vm0, %v5413_v15, 0.0 }
0x1323   :  { %2871 = vadd.xlane.f32.xlu1 %v2870_v24  ;;  %v2867_v27 = vsel %vm567_vm0, %v5415_v19, 0.0 }
0x1324   :  { %2868 = vadd.xlane.f32.xlu0 %v2867_v27 }
0x1329   :  { %v5417_v28 = vpop.eup %5416 }
0x132a   :  { %v5419_v22 = vpop.eup %5418  ;;  %v3083_v23 = vsel %vm567_vm0, %v5417_v28, 0.0 }
0x132b   :  { %3084 = vadd.xlane.f32.xlu1 %v3083_v23  ;;  %v3080_v33 = vsel %vm567_vm0, %v5419_v22, 0.0 }
0x132c   :  { %3081 = vadd.xlane.f32.xlu0 %v3080_v33 }
0x1339   :  { %v2674_v34 = vpop.xlane.xlu1 %2673 }
0x133a   :  { %5420 = vrcp.f32 %v2674_v34  ;;  %v2671_v35 = vpop.xlane.xlu0 %2670 }
0x133b   :  { %5422 = vrcp.f32 %v2671_v35 }
0x133c   :  { %5351 = vrot.lane.b32.xlu1 %v5350_v17, %s5546_s0 }
0x1340   :  { %3174 = vrot.lane.b32.xlu1 %v6241_v57, %s5546_s0 }
0x1342   :  { %5346 = vrot.lane.b32.xlu0 %v5345_v60, %s5546_s0 }
0x1344   :  { %v5421_v36 = vpop.eup %5420 }
0x1345   :  { %v5423_v37 = vpop.eup %5422  ;;  %v2678_v40 = vmul.f32 %v5421_v36, %v5409_v56 }
0x1346   :  { %3176 = vrot.lane.b32.xlu0 %v6248_v58, %s5546_s0  ;;  %v2677_v41 = vmul.f32 %v5423_v37, %v5411_v38  ;;  %v3393_v37 = vld [vmem:[%s6472_s15 + $0x10] sm:$0xff] }
0x1347   :  { %2680 = vst.msk [vmem:[#allocation4 + $0x8] sm:$0xff] %vm567_vm0, %v2678_v40 }
0x1348   :  { %2679 = vst.msk [vmem:[#allocation4] sm:$0xff] %vm567_vm0, %v2677_v41  ;;  %4841 = vmatprep.mubr.msk.f32.mxu0 %vm567_vm0, %v2677_v41 }
0x1349   :  { %4842 = vmatmul.mubr.msk.f32.vlgmr.msra.gmra.mrb[38].mxu0 %vm567_vm0, %v2678_v40  ;;  %v3394_v40 = vld [vmem:[%s6472_s15 + $0x18] sm:$0xff] }
0x13b0   :  { %v2872_v11 = vpop.xlane.xlu1 %2871 }
0x13b1   :  { %5424 = vrcp.f32 %v2872_v11  ;;  %v2869_v14 = vpop.xlane.xlu0 %2868  ;;  %v5228_v11 = vpack.c.bf16 %v3394_v40, %v3393_v37 }
0x13b2   :  { %5426 = vrcp.f32 %v2869_v14 }
0x13b8   :  { %v3085_v53 = vpop.xlane.xlu1 %3084 }
0x13b9   :  { %5428 = vrcp.f32 %v3085_v53  ;;  %v3082_v59 = vpop.xlane.xlu0 %3081 }
0x13ba   :  { %5430 = vrcp.f32 %v3082_v59 }
0x13bb   :  { %v5425_v60 = vpop.eup %5424 }
0x13bc   :  { %v5427_v17 = vpop.eup %5426  ;;  %v2876_v57 = vmul.f32 %v5425_v60, %v5413_v15  ;;  %v5352_v45 = vpop.permute.xlu1 %5351 }
0x13bd   :  { %v5347_v58 = vpop.permute.xlu0 %5346  ;;  %v2875_v42 = vmul.f32 %v5427_v17, %v5415_v19  ;;  %v5354_v31 = vunpack.i.h.bf16 %v5352_v45  ;;  %v5353_v32 = vunpack.i.l.bf16 %v5352_v45 }
0x13be   :  { %2879 = vst.msk [vmem:[#allocation4 + $0x18] sm:$0xff] %vm567_vm0, %v2876_v57  ;;  %v5349_v43 = vunpack.i.h.bf16 %v5347_v58  ;;  %v5348_v44 = vunpack.i.l.bf16 %v5347_v58 }
0x13bf   :  { %2878 = vst.msk [vmem:[#allocation4 + $0x10] sm:$0xff] %vm567_vm0, %v2875_v42  ;;  %4855 = vmatprep.mubr.msk.f32.mxu0 %vm567_vm0, %v2875_v42  ;;  %v5214_v4 = vpack.c.bf16 %v5354_v31, %v5353_v32  ;;  %v4279_v42 = vld [vmem:[%s6473_s16] ss:$0 sm:$0xff] }
0x13c0   :  { %v5200_v29 = vpack.c.bf16 %v5349_v43, %v5348_v44  ;;  %v3175_v51 = vpop.permute.xlu1 %3174 }
0x13c1   :  { %v3177_v39 = vpop.permute.xlu0 %3176 }
0x13c2   :  { %5201 = vmatprep.subr.bf16.mxu0 %v5200_v29 }
0x13c3   :  { %v5429_v46 = vpop.eup %5428  ;;  %5203 = vmatpush3.bf16.msra.mxu0 %v5200_v29 }
0x13c4   :  { %v5431_v6 = vpop.eup %5430  ;;  %v3089_v21 = vmul.f32 %v5429_v46, %v5417_v28  ;;  %5211 = vmatprep.subr.bf16.mxu0 %v6218_v5  ;;  %v3391_v28 = vld [vmem:[%s6472_s15] sm:$0xff] }
0x13c5   :  { %v3088_v25 = vmul.f32 %v5431_v6, %v5419_v22  ;;  %v3392_v22 = vld [vmem:[%s6472_s15 + $0x8] sm:$0xff] }
0x13c6   :  { %3092 = vst.msk [vmem:[#allocation4 + $0x28] sm:$0xff] %vm567_vm0, %v3089_v21  ;;  %4856 = vmatmul.mubr.msk.f32.vlgmr.msra.gmra.mrb[40].mxu0 %vm567_vm0, %v2876_v57  ;;  %v5224_v35 = vpack.c.bf16 %v3392_v22, %v3391_v28 }
0x13c7   :  { %5213 = vmatpush3.bf16.msra.mxu0 %v6218_v5  ;;  %3091 = vst.msk [vmem:[#allocation4 + $0x20] sm:$0xff] %vm567_vm0, %v3088_v25  ;;  %4869 = vmatprep.mubr.msk.f32.mxu0 %vm567_vm0, %v3088_v25 }
0x13c8   :  { %5216 = vmatprep.subr.msk.bf16.mxu0 %vm5957_vm2, %v5214_v4 }
0x13ca   :  { %4870 = vmatmul.mubr.msk.f32.vlgmr.msra.gmra.mrb[42].mxu0 %vm567_vm0, %v3089_v21 }
0x13cb   :  { %4876 = vmatprep.mubr.msk.f32.mxu0 %vm567_vm0, %v3175_v51 }
0x13d0   :  { %5219 = vmatpush3.bf16.xpose.msk.msra.mxu0 %vm5957_vm2, %v5214_v4 }
0x13d7   :  { %4877 = vmatmul.mubr.msk.f32.vlgmr.msra.gmra.mrb[44].mxu0 %vm567_vm0, %v3177_v39 }
0x141c   :  { %v6296_v52 = vpop.f32.mrb[38].mxu0 }
0x141d   :  { %v2753_v5 = vpop.f32.mrb[39].mxu0 }
0x1499   :  { %v4857_v54 = vpop.f32.mrb[40].mxu0 }
0x149a   :  { %v2960_v55 = vpop.f32.mrb[41].mxu0 }
0x149d   :  { %v6298_v56 = vpop.f32.mrb[42].mxu0 }
0x149e   :  { %v6300_v38 = vpop.f32.mrb[43].mxu0 }
0x14aa   :  { %v4878_v61 = vpop.f32.mrb[44].mxu0 }
0x14ab   :  { %v3266_v62 = vmul.f32 0.25, %v4878_v61  ;;  %v3256_v63 = vpop.f32.mrb[45].mxu0 }
0x14ac   :  { %v3265_v47 = vmul.f32 0.25, %v3256_v63 }
0x14ad   :  { %v3270_v1 = vsel %vm567_vm0, %v3266_v62, -inf }
0x14ae   :  { %3271 = vmax.xlane.f32.xlu0 %v3270_v1  ;;  %v3267_v12 = vsel %vm567_vm0, %v3265_v47, -inf }
0x14af   :  { %3268 = vmax.xlane.f32.xlu1 %v3267_v12 }
0x153b   :  { %v3272_v48 = vpop.xlane.xlu0 %3271 }
0x153c   :  { %v3274_v7 = vsub.f32 %v3266_v62, %v3272_v48  ;;  %v3269_v16 = vpop.xlane.xlu1 %3268 }
0x153d   :  { %v3273_v8 = vsub.f32 %v3265_v47, %v3269_v16  ;;  %v6343_v16 = vld [vmem:[%s6474_s18] ss:$0 sm:$0xff] }
0x153e   :  { %v3277_v20 = vmul.f32 1.442695, %v3274_v7 }
0x153f   :  { %v3275_v18 = vmul.f32 1.442695, %v3273_v8 }
0x1540   :  { %5432 = vpow2.f32 %v3277_v20 }
0x1541   :  { %5434 = vpow2.f32 %v3275_v18 }
0x154a   :  { %v5433_v9 = vpop.eup %5432 }
0x154b   :  { %v5435_v10 = vpop.eup %5434  ;;  %v3282_v13 = vsel %vm567_vm0, %v5433_v9, 0.0 }
0x154c   :  { %3283 = vadd.xlane.f32.xlu1 %v3282_v13  ;;  %v3279_v15 = vsel %vm567_vm0, %v5435_v10, 0.0  ;;  %v3577_v13 = vld [vmem:[%s6476_s23] sm:$0xff] }
0x154d   :  { %3280 = vadd.xlane.f32.xlu0 %v3279_v15  ;;  %v3578_v15 = vld [vmem:[%s6476_s23 + $0x8] sm:$0xff] }
0x155d   :  { %2971 = vrot.lane.b32.xlu1 %v2960_v55, %s5547_s5 }
0x1561   :  { %2973 = vrot.lane.b32.xlu1 %v4857_v54, %s5547_s5 }
0x1563   :  { %5356 = vrot.lane.b32.xlu0 %v5355_v3, %s5546_s0 }
0x15d9   :  { %v3284_v19 = vpop.xlane.xlu1 %3283 }
0x15da   :  { %5436 = vrcp.f32 %v3284_v19  ;;  %v3281_v24 = vpop.xlane.xlu0 %3280  ;;  %v5232_v19 = vpack.c.bf16 %v3578_v15, %v3577_v13 }
0x15db   :  { %5438 = vrcp.f32 %v3281_v24  ;;  %v3579_v24 = vld [vmem:[%s6476_s23 + $0x10] sm:$0xff] }
0x15dc   :  { %5233 = vmatprep.subr.bf16.mxu0 %v5232_v19 }
0x15dd   :  { %v2972_v3 = vpop.permute.xlu1 %2971  ;;  %5235 = vmatpush3.bf16.msra.mxu0 %v5232_v19 }
0x15de   :  { %v5357_v27 = vpop.permute.xlu0 %5356  ;;  %v2977_v14 = vsel %vm567_vm0, %v2753_v5, %v2972_v3 }
0x15df   :  { %v5359_v23 = vunpack.i.h.bf16 %v5357_v27  ;;  %v5358_v33 = vunpack.i.l.bf16 %v5357_v27  ;;  %v3580_v27 = vld [vmem:[%s6476_s23 + $0x18] sm:$0xff] }
0x15e0   :  { %v5236_v28 = vpack.c.bf16 %v3580_v27, %v3579_v24 }
0x15e1   :  { %v5220_v34 = vpack.c.bf16 %v5359_v23, %v5358_v33  ;;  %v2974_v53 = vpop.permute.xlu1 %2973 }
0x15e2   :  { %v2978_v59 = vsel %vm567_vm0, %v6296_v52, %v2974_v53  ;;  %5237 = vmatprep.subr.bf16.mxu0 %v5236_v28 }
0x15e3   :  { %5221 = vmatprep.subr.bf16.mxu1 %v5220_v34  ;;  %5239 = vmatpush3.bf16.msra.mxu0 %v5236_v28 }
0x15e4   :  { %v5437_v36 = vpop.eup %5436  ;;  %5223 = vmatpush3.bf16.msra.mxu1 %v5220_v34 }
0x15e5   :  { %v5439_v0 = vpop.eup %5438  ;;  %v3288_v2 = vmul.f32 %v5437_v36, %v5433_v9  ;;  %5225 = vmatprep.subr.bf16.mxu1 %v5224_v35  ;;  %v6347_v9 = vld [vmem:[%s6475_s22] ss:$0 sm:$0xff] }
0x15e6   :  { %v3287_v41 = vmul.f32 %v5439_v0, %v5435_v10 }
0x15e7   :  { %3291 = vst.msk [vmem:[#allocation4 + $0x38] sm:$0xff] %vm567_vm0, %v3288_v2 }
0x15e8   :  { %3290 = vst.msk [vmem:[#allocation4 + $0x30] sm:$0xff] %vm567_vm0, %v3287_v41  ;;  %4883 = vmatprep.mubr.msk.f32.mxu1 %vm567_vm0, %v3287_v41 }
0x15e9   :  { %4884 = vmatmul.mubr.msk.f32.vlgmr.msra.gmra.mrb[48].mxu1 %vm567_vm0, %v3288_v2 }
0x15ea   :  { %5227 = vmatpush3.bf16.msra.mxu1 %v5224_v35  ;;  %4894 = vmatprep.mubr.msk.f32.mxu1 %vm676_vm1, %v2977_v14 }
0x15eb   :  { %5229 = vmatprep.subr.bf16.mxu1 %v5228_v11 }
0x15ee   :  { %5231 = vmatpush3.bf16.msra.mxu1 %v5228_v11 }
0x15f1   :  { %4895 = vmatmul.mubr.msk.f32.vlgmr.msra.gmra.mrb[50].mxu1 %vm676_vm1, %v2978_v59 }
0x16bc   :  { %v4885_v60 = vpop.f32.mrb[48].mxu1 }
0x16bd   :  { %3385 = vrot.lane.b32.xlu1 %v4885_v60, %s5547_s5  ;;  %v3372_v17 = vpop.f32.mrb[49].mxu1 }
0x16be   :  { %3383 = vrot.lane.b32.xlu0 %v3372_v17, %s5547_s5  ;;  %v3689_v17 = vld [vmem:[%s6477_s26] sm:$0xff] }
0x16c4   :  { %v4896_v57 = vpop.f32.mrb[50].mxu1 }
0x16c5   :  { %v3480_v58 = vpop.f32.mrb[51].mxu1  ;;  %v3486_v44 = vadd.f32 %v4896_v57, %v4279_v42  ;;  %v3690_v57 = vld [vmem:[%s6477_s26 + $0x8] sm:$0xff] }
0x16c6   :  { %v3481_v43 = vadd.f32 %v4279_v42, %v3480_v58  ;;  %v3691_v58 = vld [vmem:[%s6477_s26 + $0x10] sm:$0xff] }
0x16c7   :  { %v3500_v31 = vadd.f32 %v3486_v44, %v6162_v30 }
0x16c8   :  { %v3499_v45 = vadd.f32 %v3481_v43, %v6160_v26  ;;  %v3692_v43 = vld [vmem:[%s6477_s26 + $0x18] sm:$0xff] }
0x16c9   :  { %v3508_v32 = vsel %vm676_vm1, %v3500_v31, 0.0  ;;  %v5244_v44 = vpack.c.bf16 %v3692_v43, %v3691_v58  ;;  %v3879_v58 = vld [vmem:[%s6480_s2] sm:$0xff] }
0x16ca   :  { %v3505_v29 = vsel %vm676_vm1, %v3499_v45, 0.0 }
0x16dd   :  { %3506 = vadd.xlane.f32.xlu0 %v3505_v29  ;;  %v3694_v29 = vld [vmem:[%s6477_s26 + $0x28] sm:$0xff] }
0x16e1   :  { %3509 = vadd.xlane.f32.xlu1 %v3508_v32  ;;  %v3695_v32 = vld [vmem:[%s6477_s26 + $0x30] sm:$0xff] }
0x172f   :  { %v3386_v46 = vpop.permute.xlu1 %3385 }
0x1730   :  { %v3384_v6 = vpop.permute.xlu0 %3383  ;;  %v3390_v25 = vsel %vm567_vm0, %v6298_v56, %v3386_v46  ;;  %v3696_v46 = vld [vmem:[%s6477_s26 + $0x38] sm:$0xff] }
0x1731   :  { %v3389_v21 = vsel %vm567_vm0, %v6300_v38, %v3384_v6  ;;  %v5252_v6 = vpack.c.bf16 %v3696_v46, %v3695_v32 }
0x1732   :  { %4897 = vmatprep.mubr.msk.f32.mxu1 %vm676_vm1, %v3389_v21 }
0x1733   :  { %4898 = vmatmul.mubr.msk.f32.gmra.mrb[52].mxu1 %vm676_vm1, %v3390_v25 }
0x176a   :  { %v3507_v26 = vpop.xlane.xlu0 %3506 }
0x176b   :  { %v3517_v4 = vmul.f32 0.03125, %v3507_v26 }
0x176d   :  { %v3521_v51 = vsub.f32 %v3499_v45, %v3517_v4  ;;  %v3693_v45 = vld [vmem:[%s6477_s26 + $0x20] sm:$0xff] }
0x176e   :  { %v3510_v52 = vpop.xlane.xlu1 %3509 }
0x176f   :  { %v3525_v30 = vmul.f32 %v3521_v51, %v3521_v51  ;;  %v3518_v61 = vmul.f32 0.03125, %v3510_v52 }
0x1771   :  { %v3529_v39 = vsel %vm676_vm1, %v3525_v30, 0.0  ;;  %v3522_v1 = vsub.f32 %v3500_v31, %v3518_v61  ;;  %v5248_v31 = vpack.c.bf16 %v3694_v29, %v3693_v45  ;;  %v3882_v45 = vld [vmem:[%s6480_s2 + $0x18] sm:$0xff] }
0x1772   :  { %3530 = vadd.xlane.f32.xlu1 %v3529_v39 }
0x1773   :  { %v3526_v18 = vmul.f32 %v3522_v1, %v3522_v1 }
0x17ff   :  { %v3531_v5 = vpop.xlane.xlu1 %3530 }
0x1800   :  { %v3541_v54 = vmul.f32 0.03125, %v3531_v5 }
0x1802   :  { %v3545_v55 = vadd.f32 1e-05, %v3541_v54 }
0x1804   :  { %5440 = vrsqrt.f32 %v3545_v55 }
0x1806   :  { %v4899_v38 = vpop.f32.mrb[52].mxu1 }
0x1807   :  { %v3490_v56 = vpop.f32.mrb[53].mxu1  ;;  %v3496_v62 = vadd.f32 %v4899_v38, %v4279_v42 }
0x1808   :  { %v3491_v63 = vadd.f32 %v4279_v42, %v3490_v56  ;;  %v5240_v42 = vpack.c.bf16 %v3690_v57, %v3689_v17 }
0x1809   :  { %v3502_v48 = vadd.f32 %v3496_v62, %v6178_v50  ;;  %v3532_v50 = vsel %vm676_vm1, %v3526_v18, 0.0  ;;  %v4286_v62 = vld [vmem:[%s6478_s28] ss:$0 sm:$0xff] }
0x180a   :  { %v3501_v47 = vadd.f32 %v3491_v63, %v6176_v49  ;;  %5241 = vmatprep.subr.bf16.mxu1 %v5240_v42 }
0x180b   :  { %v3514_v20 = vsel %vm676_vm1, %v3502_v48, 0.0  ;;  %5243 = vmatpush3.bf16.msra.mxu1 %v5240_v42  ;;  %v3880_v42 = vld [vmem:[%s6480_s2 + $0x8] sm:$0xff] }
0x180c   :  { %v3511_v12 = vsel %vm676_vm1, %v3501_v47, 0.0  ;;  %5245 = vmatprep.subr.bf16.mxu1 %v5244_v44  ;;  %v5256_v43 = vpack.c.bf16 %v3880_v42, %v3879_v58  ;;  %v4303_v42 = vld [vmem:[%s5760_s27] ss:$0 sm:$0xff] }
0x180d   :  { %3512 = vadd.xlane.f32.xlu0 %v3511_v12 }
0x180e   :  { %v5441_v7 = vpop.eup %5440  ;;  %5257 = vmatprep.subr.bf16.mxu0 %v5256_v43 }
0x180f   :  { %v3553_v8 = vmul.f32 %v5441_v7, %v3521_v51  ;;  %5247 = vmatpush3.bf16.msra.mxu1 %v5244_v44  ;;  %v3881_v44 = vld [vmem:[%s6480_s2 + $0x10] sm:$0xff] }
0x1810   :  { %5249 = vmatprep.subr.bf16.mxu1 %v5248_v31  ;;  %v5260_v29 = vpack.c.bf16 %v3882_v45, %v3881_v44 }
0x1811   :  { %3515 = vadd.xlane.f32.xlu0 %v3514_v20  ;;  %v3563_v49 = vmul.f32 %v6343_v16, %v3553_v8 }
0x1813   :  { %v6351_v10 = vadd.f32 %v6347_v9, %v3563_v49  ;;  %5251 = vmatpush3.bf16.msra.mxu1 %v5248_v31 }
0x1814   :  { %5253 = vmatprep.subr.bf16.mxu1 %v5252_v6 }
0x1815   :  { %3533 = vadd.xlane.f32.xlu0 %v3532_v50  ;;  %4908 = vmatprep.mubr.msk.f32.mxu0 %vm676_vm1, %v6351_v10  ;;  %v4291_v50 = vld [vmem:[%s6479_s1] ss:$0 sm:$0xff] }
0x1817   :  { %5255 = vmatpush3.bf16.msra.mxu1 %v5252_v6 }
0x189a   :  { %v3513_v22 = vpop.xlane.xlu0 %3512 }
0x189b   :  { %v3519_v23 = vmul.f32 0.03125, %v3513_v22 }
0x189d   :  { %v3523_v33 = vsub.f32 %v3501_v47, %v3519_v23 }
0x189e   :  { %v3516_v34 = vpop.xlane.xlu0 %3515 }
0x189f   :  { %v3520_v35 = vmul.f32 0.03125, %v3516_v34  ;;  %v3527_v36 = vmul.f32 %v3523_v33, %v3523_v33 }
0x18a1   :  { %v3524_v37 = vsub.f32 %v3502_v48, %v3520_v35  ;;  %v3535_v40 = vsel %vm676_vm1, %v3527_v36, 0.0 }
0x18a2   :  { %3536 = vadd.xlane.f32.xlu1 %v3535_v40  ;;  %v3534_v0 = vpop.xlane.xlu0 %3533 }
0x18a3   :  { %v3542_v2 = vmul.f32 0.03125, %v3534_v0  ;;  %v3528_v3 = vmul.f32 %v3524_v37, %v3524_v37 }
0x18a5   :  { %v3546_v41 = vadd.f32 1e-05, %v3542_v2  ;;  %v3538_v11 = vsel %vm676_vm1, %v3528_v3, 0.0 }
0x18a6   :  { %3539 = vadd.xlane.f32.xlu0 %v3538_v11 }
0x18a7   :  { %5442 = vrsqrt.f32 %v3546_v41 }
0x18b1   :  { %v5443_v14 = vpop.eup %5442 }
0x18b2   :  { %v3554_v53 = vmul.f32 %v5443_v14, %v3522_v1 }
0x18b4   :  { %v3564_v59 = vmul.f32 %v6343_v16, %v3554_v53 }
0x18b6   :  { %v3574_v60 = vadd.f32 %v6347_v9, %v3564_v59 }
0x18b8   :  { %4909 = vmatmul.mubr.msk.f32.vlgmr.msra.gmra.mrb[46].mxu0 %vm676_vm1, %v3574_v60 }
0x18b9   :  { %5259 = vmatpush3.bf16.msra.mxu0 %v5256_v43 }
0x18ba   :  { %5261 = vmatprep.subr.bf16.mxu0 %v5260_v29 }
0x18bd   :  { %5263 = vmatpush3.bf16.msra.mxu0 %v5260_v29 }
0x192f   :  { %v3537_v21 = vpop.xlane.xlu1 %3536 }
0x1930   :  { %v3543_v25 = vmul.f32 0.03125, %v3537_v21 }
0x1932   :  { %v3547_v26 = vadd.f32 1e-05, %v3543_v25 }
0x1933   :  { %v3540_v4 = vpop.xlane.xlu0 %3539 }
0x1934   :  { %5444 = vrsqrt.f32 %v3547_v26  ;;  %v3544_v51 = vmul.f32 0.03125, %v3540_v4 }
0x1936   :  { %v3548_v30 = vadd.f32 1e-05, %v3544_v51 }
0x1938   :  { %5446 = vrsqrt.f32 %v3548_v30 }
0x193e   :  { %v5445_v39 = vpop.eup %5444 }
0x193f   :  { %v3555_v52 = vmul.f32 %v5445_v39, %v3523_v33 }
0x1941   :  { %v3565_v5 = vmul.f32 %v6343_v16, %v3555_v52 }
0x1942   :  { %v5447_v54 = vpop.eup %5446 }
0x1943   :  { %v3575_v55 = vadd.f32 %v6347_v9, %v3565_v5  ;;  %v3556_v38 = vmul.f32 %v5447_v54, %v3524_v37 }
0x1945   :  { %4911 = vmatprep.mubr.msk.f32.mxu0 %vm676_vm1, %v3575_v55  ;;  %v3566_v56 = vmul.f32 %v6343_v16, %v3556_v38 }
0x1947   :  { %v3576_v61 = vadd.f32 %v6347_v9, %v3566_v56 }
0x1949   :  { %4912 = vmatmul.mubr.msk.f32.gmra.mrb[48].mxu0 %vm676_vm1, %v3576_v61 }
0x198b   :  { %v4910_v63 = vpop.f32.mrb[46].mxu0 }
0x198c   :  { %v3672_v47 = vadd.f32 %v4910_v63, %v4286_v62  ;;  %v3666_v1 = vpop.f32.mrb[47].mxu0 }
0x198d   :  { %v3667_v12 = vadd.f32 %v4286_v62, %v3666_v1  ;;  %v4297_v1 = vld [vmem:[%s6482_s10] ss:$0 sm:$0xff] }
0x198e   :  { %v3686_v7 = vmax.f32 %v3672_v47, 0.0 }
0x198f   :  { %v3685_v48 = vmax.f32 %v3667_v12, 0.0 }
0x1991   :  { %4930 = vmatprep.mubr.msk.f32.mxu1 %vm2092_vm3, %v3685_v48 }
0x1992   :  { %4931 = vmatmul.mubr.msk.f32.vlgmr.msra.gmra.mrb[54].mxu1 %vm2092_vm3, %v3686_v7 }
0x1a1c   :  { %v4913_v8 = vpop.f32.mrb[48].mxu0 }
0x1a1d   :  { %v3682_v20 = vadd.f32 %v4913_v8, %v4286_v62  ;;  %v3676_v18 = vpop.f32.mrb[49].mxu0 }
0x1a1e   :  { %v3677_v16 = vadd.f32 %v4286_v62, %v3676_v18  ;;  %v3992_v18 = vld [vmem:[%s5755_s20 + $0x8] sm:$0xff] }
0x1a1f   :  { %v3688_v9 = vmax.f32 %v3682_v20, 0.0  ;;  %v3991_v20 = vld [vmem:[%s5755_s20] sm:$0xff] }
0x1a20   :  { %v3687_v49 = vmax.f32 %v3677_v16, 0.0  ;;  %v5264_v16 = vpack.c.bf16 %v3992_v18, %v3991_v20 }
0x1a22   :  { %4933 = vmatprep.mubr.msk.f32.mxu1 %vm2092_vm3, %v3687_v49  ;;  %5265 = vmatprep.subr.bf16.mxu0 %v5264_v16  ;;  %v3993_v49 = vld [vmem:[%s5755_s20 + $0x10] sm:$0xff] }
0x1a23   :  { %4934 = vmatmul.mubr.msk.f32.gmra.mrb[56].mxu1 %vm2092_vm3, %v3688_v9  ;;  %v3994_v9 = vld [vmem:[%s5755_s20 + $0x18] sm:$0xff]  ;;  %s5548_s20 = smov [#allocation4]  }
0x1a24   :  { %s4120_s0 = sshll.u32 %s5548_s20, 4  ;;  %s4121_s0 = int_to_ptr.vmem [resolvable:$true] %s4120_s0 }
0x1a25   :  { %s5456_s5 = scalar_lea.vmem %s4121_s0, 1024  ;;  %p5461_p1 = scmp.lt.s32.totalorder %s4121_s0, %s4121_s0 }
0x1a26   :  { %p5457_p0 = scmp.ne.s32.totalorder %s4121_s0, %s5456_s5  ;;  %p5462_p2 = scmp.lt.s32.totalorder %s5456_s5, %s5456_s5 }
0x1a28   :  { %p5463_p3 = por %p5462_p2, %p5461_p1 }
0x1a2a   :  { %p5464_p4 = pnand %p5463_p3, %p5457_p0 }
0x1a65   :  { %v4932_v13 = vpop.f32.mrb[54].mxu1 }
0x1a66   :  { %v3788_v15 = vadd.f32 %v4932_v13, %v4291_v50  ;;  %v3782_v19 = vpop.f32.mrb[55].mxu1 }
0x1a67   :  { %v3783_v24 = vadd.f32 %v4291_v50, %v3782_v19 }
0x1a68   :  { %v3802_v27 = vadd.f32 %v3788_v15, %v3574_v60 }
0x1a69   :  { %v3801_v28 = vadd.f32 %v3783_v24, %v6351_v10 }
0x1a6a   :  { %v3810_v22 = vsel %vm676_vm1, %v3802_v27, 0.0 }
0x1a6b   :  { %3811 = vadd.xlane.f32.xlu0 %v3810_v22  ;;  %v3807_v23 = vsel %vm676_vm1, %v3801_v28, 0.0 }
0x1a6c   :  { %3808 = vadd.xlane.f32.xlu1 %v3807_v23 }
0x1af6   :  { %v4935_v33 = vpop.f32.mrb[56].mxu1 }
0x1af7   :  { %v3798_v34 = vadd.f32 %v4935_v33, %v4291_v50  ;;  %v3792_v35 = vpop.f32.mrb[57].mxu1 }
0x1af8   :  { %v3793_v36 = vadd.f32 %v4291_v50, %v3792_v35  ;;  %v3812_v37 = vpop.xlane.xlu0 %3811  ;;  %v5268_v50 = vpack.c.bf16 %v3994_v9, %v3993_v49 }
0x1af9   :  { %v3820_v40 = vmul.f32 0.03125, %v3812_v37  ;;  %v3809_v0 = vpop.xlane.xlu1 %3808  ;;  %v3804_v2 = vadd.f32 %v3798_v34, %v3576_v61  ;;  %v4296_v61 = vld [vmem:[%s6481_s7] ss:$0 sm:$0xff] }
0x1afa   :  { %v3819_v3 = vmul.f32 0.03125, %v3809_v0  ;;  %v3803_v41 = vadd.f32 %v3793_v36, %v3575_v55  ;;  %v4298_v0 = vld [vmem:[%s6483_s11] ss:$0 sm:$0xff] }
0x1afb   :  { %v3824_v10 = vsub.f32 %v3802_v27, %v3820_v40  ;;  %v3816_v11 = vsel %vm676_vm1, %v3804_v2, 0.0 }
0x1afc   :  { %v3823_v14 = vsub.f32 %v3801_v28, %v3819_v3  ;;  %3817 = vadd.xlane.f32.xlu0 %v3816_v11  ;;  %v3813_v53 = vsel %vm676_vm1, %v3803_v41, 0.0 }
0x1afd   :  { %3814 = vadd.xlane.f32.xlu1 %v3813_v53  ;;  %v3828_v59 = vmul.f32 %v3824_v10, %v3824_v10 }
0x1afe   :  { %v3827_v60 = vmul.f32 %v3823_v14, %v3823_v14 }
0x1aff   :  { %v3834_v17 = vsel %vm676_vm1, %v3828_v59, 0.0 }
0x1b00   :  { %3835 = vadd.xlane.f32.xlu0 %v3834_v17  ;;  %v3831_v57 = vsel %vm676_vm1, %v3827_v60, 0.0 }
0x1b01   :  { %3832 = vadd.xlane.f32.xlu1 %v3831_v57 }
0x1b89   :  { %v3818_v31 = vpop.xlane.xlu0 %3817 }
0x1b8a   :  { %v3822_v32 = vmul.f32 0.03125, %v3818_v31  ;;  %v3815_v46 = vpop.xlane.xlu1 %3814 }
0x1b8b   :  { %v3821_v6 = vmul.f32 0.03125, %v3815_v46 }
0x1b8c   :  { %v3826_v21 = vsub.f32 %v3804_v2, %v3822_v32 }
0x1b8d   :  { %v3825_v25 = vsub.f32 %v3803_v41, %v3821_v6  ;;  %v3836_v26 = vpop.xlane.xlu0 %3835 }
0x1b8e   :  { %v3844_v4 = vmul.f32 0.03125, %v3836_v26  ;;  %v3833_v51 = vpop.xlane.xlu1 %3832  ;;  %v3830_v30 = vmul.f32 %v3826_v21, %v3826_v21 }
0x1b8f   :  { %v3843_v39 = vmul.f32 0.03125, %v3833_v51  ;;  %v3829_v52 = vmul.f32 %v3825_v25, %v3825_v25 }
0x1b90   :  { %v3848_v5 = vadd.f32 1e-05, %v3844_v4  ;;  %v3840_v54 = vsel %vm676_vm1, %v3830_v30, 0.0 }
0x1b91   :  { %v3847_v55 = vadd.f32 1e-05, %v3843_v39  ;;  %3841 = vadd.xlane.f32.xlu0 %v3840_v54  ;;  %v3837_v38 = vsel %vm676_vm1, %v3829_v52, 0.0 }
0x1b92   :  { %5448 = vrsqrt.f32 %v3848_v5  ;;  %3838 = vadd.xlane.f32.xlu1 %v3837_v38 }
0x1b93   :  { %5450 = vrsqrt.f32 %v3847_v55 }
0x1b9c   :  { %v5449_v56 = vpop.eup %5448 }
0x1b9d   :  { %v5451_v62 = vpop.eup %5450  ;;  %v3856_v63 = vmul.f32 %v5449_v56, %v3824_v10 }
0x1b9e   :  { %v3855_v47 = vmul.f32 %v5451_v62, %v3823_v14 }
0x1b9f   :  { %v3866_v12 = vmul.f32 %v4296_v61, %v3856_v63 }
0x1ba0   :  { %v3865_v48 = vmul.f32 %v4296_v61, %v3855_v47 }
0x1ba1   :  { %v3876_v8 = vadd.f32 %v4297_v1, %v3866_v12 }
0x1ba2   :  { %v3875_v7 = vadd.f32 %v4297_v1, %v3865_v48 }
0x1ba4   :  { %4944 = vmatprep.mubr.msk.f32.mxu0 %vm676_vm1, %v3875_v7 }
0x1ba5   :  { %4945 = vmatmul.mubr.msk.f32.vlgmr.msra.gmra.mrb[50].mxu0 %vm676_vm1, %v3876_v8 }
0x1ba6   :  { %5267 = vmatpush3.bf16.msra.mxu0 %v5264_v16 }
0x1ba7   :  { %5269 = vmatprep.subr.bf16.mxu0 %v5268_v50 }
0x1baa   :  { %5271 = vmatpush3.bf16.msra.mxu0 %v5268_v50 }
0x1c1e   :  { %v3842_v13 = vpop.xlane.xlu0 %3841 }
0x1c1f   :  { %v3846_v15 = vmul.f32 0.03125, %v3842_v13  ;;  %v3839_v19 = vpop.xlane.xlu1 %3838 }
0x1c20   :  { %v3845_v24 = vmul.f32 0.03125, %v3839_v19 }
0x1c21   :  { %v3850_v27 = vadd.f32 1e-05, %v3846_v15 }
0x1c22   :  { %v3849_v28 = vadd.f32 1e-05, %v3845_v24 }
0x1c23   :  { %5452 = vrsqrt.f32 %v3850_v27 }
0x1c24   :  { %5454 = vrsqrt.f32 %v3849_v28 }
0x1c2d   :  { %v5453_v22 = vpop.eup %5452 }
0x1c2e   :  { %v5455_v23 = vpop.eup %5454  ;;  %v3858_v33 = vmul.f32 %v5453_v22, %v3826_v21 }
0x1c2f   :  { %v3857_v34 = vmul.f32 %v5455_v23, %v3825_v25 }
0x1c30   :  { %v3868_v35 = vmul.f32 %v4296_v61, %v3858_v33 }
0x1c31   :  { %v3867_v36 = vmul.f32 %v4296_v61, %v3857_v34 }
0x1c32   :  { %v3878_v40 = vadd.f32 %v4297_v1, %v3868_v35 }
0x1c33   :  { %v3877_v37 = vadd.f32 %v4297_v1, %v3867_v36 }
0x1c35   :  { %4947 = vmatprep.mubr.msk.f32.mxu0 %vm676_vm1, %v3877_v37 }
0x1c36   :  { %4948 = vmatmul.mubr.msk.f32.gmra.mrb[52].mxu0 %vm676_vm1, %v3878_v40 }
0x1c78   :  { %v4946_v2 = vpop.f32.mrb[50].mxu0 }
0x1c79   :  { %v3974_v3 = vadd.f32 %v4946_v2, %v4298_v0  ;;  %v3968_v41 = vpop.f32.mrb[51].mxu0 }
0x1c7a   :  { %v3969_v10 = vadd.f32 %v4298_v0, %v3968_v41 }
0x1c7b   :  { %v3988_v14 = vmax.f32 %v3974_v3, 0.0 }
0x1c7c   :  { %v3987_v11 = vmax.f32 %v3969_v10, 0.0 }
0x1c7e   :  { %4958 = vmatprep.mubr.msk.f32.mxu0 %vm676_vm1, %v3987_v11 }
0x1c7f   :  { %4959 = vmatmul.mubr.msk.f32.vlgmr.msra.gmra.mrb[54].mxu0 %vm676_vm1, %v3988_v14 }
0x1d09   :  { %v4949_v53 = vpop.f32.mrb[52].mxu0 }
0x1d0a   :  { %v3984_v59 = vadd.f32 %v4949_v53, %v4298_v0  ;;  %v3978_v60 = vpop.f32.mrb[53].mxu0 }
0x1d0b   :  { %v3979_v17 = vadd.f32 %v4298_v0, %v3978_v60 }
0x1d0c   :  { %v3990_v58 = vmax.f32 %v3984_v59, 0.0 }
0x1d0d   :  { %v3989_v57 = vmax.f32 %v3979_v17, 0.0 }
0x1d0f   :  { %4961 = vmatprep.mubr.msk.f32.mxu0 %vm676_vm1, %v3989_v57 }
0x1d10   :  { %4962 = vmatmul.mubr.msk.f32.gmra.mrb[56].mxu0 %vm676_vm1, %v3990_v58 }
0x1d52   :  { %v4960_v43 = vpop.f32.mrb[54].mxu0 }
0x1d53   :  { %v4086_v44 = vadd.f32 %v4960_v43, %v4303_v42  ;;  %v4080_v45 = vpop.f32.mrb[55].mxu0 }
0x1d54   :  { %v4081_v29 = vadd.f32 %v4303_v42, %v4080_v45 }
0x1d55   :  { %4100 = vst [vmem:[#allocation2 + $0x8] sm:$0xff] %v4086_v44 }
0x1d56   :  { %4099 = vst [vmem:[#allocation2] sm:$0xff] %v4081_v29 }
0x1d57   :  { %5467 = shalt.err (!%p5464_p4)
}
0x1d58   :  { %s5468_s27 = scalar_lea.hbm %s5770_s12, 1024 }
0x1d59   :  { %p5469_p5 = scmp.ne.s32.totalorder %s5770_s12, %s5468_s27  ;;  %p5472_p6 = scmp.lt.u32.totalorder %s5468_s27, %s5770_s12 }
0x1d5b   :  { %p5474_p7 = pnand %p5472_p6, %p5469_p5 }
0x1d5d   :  { %5477 = shalt.err (!%p5474_p7)
}
0x1d5e   :  { %s5549_s9 = smov 128   ;;  %s5550_s13 = smov 8  }
0x1d5f   :  { %4126 = dma.vmem_to_hbm [thread:$0]  %s4121_s0, 1024, %s5770_s12, [#allocation5], %s5549_s9, %s5549_s9, %s5550_s13  }
0x1d60   :  { %s5551_s17 = smov [#allocation2]  }
0x1d61   :  { %s4108_s21 = sshll.u32 %s5551_s17, 4  ;;  %s4109_s21 = int_to_ptr.vmem [resolvable:$true] %s4108_s21 }
0x1d62   :  { %s5478_s25 = scalar_lea.vmem %s4109_s21, 512  ;;  %p5483_p9 = scmp.lt.s32.totalorder %s4109_s21, %s4109_s21 }
0x1d63   :  { %p5479_p8 = scmp.ne.s32.totalorder %s4109_s21, %s5478_s25  ;;  %p5484_p10 = scmp.lt.s32.totalorder %s5478_s25, %s5478_s25 }
0x1d65   :  { %p5485_p11 = por %p5484_p10, %p5483_p9 }
0x1d67   :  { %p5486_p12 = pnand %p5485_p11, %p5479_p8 }
0x1de3   :  { %v4963_v31 = vpop.f32.mrb[56].mxu0 }
0x1de4   :  { %v4096_v32 = vadd.f32 %v4963_v31, %v4303_v42  ;;  %v4090_v46 = vpop.f32.mrb[57].mxu0 }
0x1de5   :  { %v4091_v6 = vadd.f32 %v4303_v42, %v4090_v46 }
0x1de6   :  { %4102 = vst [vmem:[#allocation2 + $0x18] sm:$0xff] %v4096_v32 }
0x1de7   :  { %4101 = vst [vmem:[#allocation2 + $0x10] sm:$0xff] %v4091_v6 }
0x1de8   :  { %5489 = shalt.err (!%p5486_p12)
}
0x1de9   :  { %s5490_s12 = scalar_lea.hbm %s5765_s4, 512 }
0x1dea   :  { %p5491_p13 = scmp.ne.s32.totalorder %s5765_s4, %s5490_s12  ;;  %p5494_p0 = scmp.lt.u32.totalorder %s5490_s12, %s5765_s4 }
0x1dec   :  { %p5496_p1 = pnand %p5494_p0, %p5491_p13 }
0x1dee   :  { %5499 = shalt.err (!%p5496_p1)
}
0x1def   :  { %4114 = dma.vmem_to_hbm [thread:$0]  %s4109_s21, 512, %s5765_s4, [#allocation3], %s5549_s9, %s5549_s9, %s5550_s13  }
0x1df0   :  { %5500 = dma.done.wait [#allocation3], 512  }
0x1df1   :  { %5501 = vsyncadd [#allocation3], 4294966784 }
0x1df2   :  { %5502 = dma.done.wait [#allocation5], 1024  }
0x1df3   :  { %5503 = vsyncadd [#allocation5], 4294966272 }
0x1df4   :  { %4133 = vsyncpa [#allocation3], 1 }
0x1df5   :  { %4134 = vsyncpa [#allocation5], 1 }

</bundles_post_ra>
